<compile_context>
chip_gen: v6e
topology: v6e:2x2x1
jax: 0.10.0
libtpu: 0.0.40
codegen_flags: <defaults>
</compile_context>

<pallas_src>
import functools

import jax
import jax.numpy as jnp
from jax.experimental import pallas as pl
from jax.experimental.pallas import tpu as pltpu

EPS = 1e-5  # BatchNorm2d default eps


def _ceil_to(a, m):
    return -(-a // m) * m


def _vmem_limit_bytes():
    try:
        kind = jax.devices()[0].device_kind.lower()
    except Exception:
        kind = ""
    if any(t in kind for t in ("v4", "v5", "v6")):
        return 64 * 1024 * 1024      # 128 MiB physical VMEM -> raise scoped limit
    return 32 * 1024 * 1024          # safe on v7x (64 MiB per TensorCore)


VMEM_LIMIT = _vmem_limit_bytes()


# ----------------------------------------------------------------------------
# Fused 1x1-conv / matmul kernel:
#   y = out_act( sum_g dot( act_g(A_g + shift'_g), B'_g ) + bias )
# B' already has the producer BN scale folded in; prologue stays in bf16.
# Optionally emits per-channel sum / sum-of-squares (BN batch stats) outputs.
# ----------------------------------------------------------------------------
def _mm_kernel(*refs, n_groups, in_acts, out_act, emit_stats, m_valid, tm):
    o_idx = 3 * n_groups + 1
    o_ref = refs[o_idx]
    acc = None
    for g in range(n_groups):
        a_ref, sh_ref, b_ref = refs[3 * g: 3 * g + 3]
        a = a_ref[...] + sh_ref[...]                       # bf16 prologue
        act = in_acts[g]
        if act == "lrelu":
            a = jnp.where(a >= 0, a, a * 0.2)
        elif act == "relu":
            a = jnp.maximum(a, 0.0)
        d = jnp.dot(a, b_ref[...], preferred_element_type=jnp.float32)
        acc = d if acc is None else acc + d
    y = acc + refs[3 * n_groups][...]                      # bias (1, n) f32
    if out_act == "sigmoid":
        y = jax.nn.sigmoid(y)
    o_ref[...] = y.astype(o_ref.dtype)

    if emit_stats:
        s_ref, q_ref = refs[o_idx + 1], refs[o_idx + 2]

        @pl.when(pl.program_id(0) == 0)
        def _():
            s_ref[...] = jnp.zeros_like(s_ref)
            q_ref[...] = jnp.zeros_like(q_ref)

        if m_valid is not None:                            # mask padded M rows
            rows = (jax.lax.broadcasted_iota(jnp.int32, y.shape, 0)
                    + pl.program_id(0) * tm)
            y = jnp.where(rows < m_valid, y, 0.0)
        s_ref[...] += jnp.sum(y, axis=0, keepdims=True)
        q_ref[...] += jnp.sum(y * y, axis=0, keepdims=True)


def _pick_tm(m):
    if m <= 256:
        if m % 32 == 0:
            return m // 2            # two M blocks so v7x's 2 TCs both work
        return _ceil_to(m, 16)
    if m >= 1024 and m % 512 == 0:
        return 512                   # big tiles amortize grid-step overhead
    if m % 256 == 0:
        return 256
    if m % 128 == 0:
        return 128
    return 256


def _mm_call(groups, bias, out_act, out_dtype, emit_stats=False):
    """groups: list of (A (m,K), shift' (K,), W' (K,n_out), act)."""
    m = groups[0][0].shape[0]
    n_out = int(bias.shape[0])
    tm = _pick_tm(m)

    def footprint(t):                 # rough double-buffered per-step bytes
        b = 0
        for (a, _, w, _) in groups:
            k = _ceil_to(a.shape[1], 8)
            b += 2 * (t * k * 2) + 2 * (k * n_out * 2)
        return b + 2 * t * n_out * jnp.dtype(out_dtype).itemsize

    while footprint(tm) > (VMEM_LIMIT * 3) // 4 and tm > 64:
        tm //= 2
    mp = _ceil_to(m, tm)

    inputs, in_specs, in_acts = [], [], []
    flops, bytes_acc = 0, 0
    for (a, sh, w, act) in groups:
        k = a.shape[1]
        kp = _ceil_to(k, 8)           # only align K to the sublane tile
        a_p = a.astype(jnp.bfloat16)
        sh_p = sh.astype(jnp.bfloat16).reshape(1, k)
        w_p = w.astype(jnp.bfloat16)
        if kp != k:
            a_p = jnp.pad(a_p, ((0, 0), (0, kp - k)))
            sh_p = jnp.pad(sh_p, ((0, 0), (0, kp - k)))
            w_p = jnp.pad(w_p, ((0, kp - k), (0, 0)))       # zero rows -> no-op
        if mp != m:
            a_p = jnp.pad(a_p, ((0, mp - m), (0, 0)))
        inputs += [a_p, sh_p, w_p]
        in_specs += [pl.BlockSpec((tm, kp), lambda i: (i, 0)),
                     pl.BlockSpec((1, kp), lambda i: (0, 0)),
                     pl.BlockSpec((kp, n_out), lambda i: (0, 0))]
        in_acts.append(act)
        flops += 2 * mp * kp * n_out
        bytes_acc += 2 * mp * kp + 2 * kp * n_out + 2 * kp
    inputs.append(bias.reshape(1, n_out).astype(jnp.float32))
    in_specs.append(pl.BlockSpec((1, n_out), lambda i: (0, 0)))
    bytes_acc += 4 * n_out + mp * n_out * jnp.dtype(out_dtype).itemsize

    out_shape = [jax.ShapeDtypeStruct((mp, n_out), out_dtype)]
    out_specs = [pl.BlockSpec((tm, n_out), lambda i: (i, 0))]
    if emit_stats:
        out_shape += [jax.ShapeDtypeStruct((1, n_out), jnp.float32)] * 2
        out_specs += [pl.BlockSpec((1, n_out), lambda i: (0, 0))] * 2

    kernel = functools.partial(
        _mm_kernel, n_groups=len(groups), in_acts=tuple(in_acts),
        out_act=out_act, emit_stats=emit_stats,
        m_valid=(m if (emit_stats and mp != m) else None), tm=tm)

    res = pl.pallas_call(
        kernel,
        out_shape=tuple(out_shape) if emit_stats else out_shape[0],
        grid_spec=pltpu.PrefetchScalarGridSpec(
            num_scalar_prefetch=0,
            grid=(mp // tm,),
            in_specs=in_specs,
            out_specs=tuple(out_specs) if emit_stats else out_specs[0]),
        compiler_params=pltpu.CompilerParams(
            dimension_semantics=(("arbitrary",) if emit_stats else ("parallel",)),
            vmem_limit_bytes=VMEM_LIMIT),
        cost_estimate=pl.CostEstimate(
            flops=int(flops),
            transcendentals=int(mp * n_out) if out_act == "sigmoid" else 0,
            bytes_accessed=int(bytes_acc)),
    )(*inputs)

    if emit_stats:
        y, s, q = res
        return y[:m], s, q
    return res[:m] if mp != m else res


def _bn_from_sums(s, q, count):
    mean = s / count
    var = jnp.maximum(q / count - mean * mean, 0.0)
    scale = jax.lax.rsqrt(var + EPS)
    return scale, -mean * scale


def conv1x1_fused(groups, w_mat, bias, out_act, out_dtype=jnp.bfloat16,
                  emit_stats=False):
    """1x1 conv over the (un-materialized) channel concat of `groups`.
    groups: list of (x NHWC, scale(C,), shift(C,), act); w_mat: (C_total, n_out)."""
    n, h, w_, _ = groups[0][0].shape
    n_out = w_mat.shape[1]
    mm_groups, off = [], 0
    for (x, scale, shift, act) in groups:
        c = x.shape[-1]
        wg = w_mat[off:off + c, :] * scale[:, None]     # fold BN scale into B
        mm_groups.append((x.reshape(-1, c), shift / scale, wg, act))
        off += c
    res = _mm_call(mm_groups, bias, out_act, out_dtype, emit_stats=emit_stats)
    if emit_stats:
        y, s, q = res
        bscale, bshift = _bn_from_sums(s[0], q[0], n * h * w_)
        return y.reshape(n, h, w_, n_out), bscale, bshift
    return res.reshape(n, h, w_, n_out)


# ----------------------------------------------------------------------------
# Spatial convs with in-kernel tap gather (no host-side im2col)
# ----------------------------------------------------------------------------
def _pad_spatial1(x, pad_val_c):
    """Pad H/W by 1 with a per-channel value (so act(pad + shift') == 0)."""
    n, h, w, c = x.shape
    canvas = jnp.broadcast_to(pad_val_c.astype(x.dtype), (n, h + 2, w + 2, c))
    return canvas.at[:, 1:-1, 1:-1, :].set(x)


def _down_kernel(xa_ref, xb_ref, sh_ref, w_ref, o_ref, s_ref, q_ref, *, act, wo):
    @pl.when(jnp.logical_and(pl.program_id(0) == 0, pl.program_id(1) == 0))
    def _():
        s_ref[...] = jnp.zeros_like(s_ref)
        q_ref[...] = jnp.zeros_like(q_ref)

    sh = sh_ref[...]                                     # (1, 2C) bf16

    def prep(v):                                         # bf16 shift + activation
        v = v + sh
        if act == "lrelu":
            v = jnp.where(v >= 0, v, v * 0.2)
        elif act == "relu":
            v = jnp.maximum(v, 0.0)
        return v

    xa = prep(xa_ref[...])[0]                            # (2, Wp, 2C) padded rows 2j..2j+1
    xb = prep(xb_ref[...])[0]                            # (2, Wp, 2C) padded rows 2j+2..2j+3
    acc = None
    for ky in range(4):                                  # 4x4/s2 conv = 8 tap matmuls
        row = (xa if ky < 2 else xb)[ky % 2]             # (Wp, 2C)
        for kxp in range(2):
            a = row[kxp:kxp + wo, :]                     # (Wo, 2C) unit-stride slice
            d = jnp.dot(a, w_ref[ky * 2 + kxp],
                        preferred_element_type=jnp.float32)
            acc = d if acc is None else acc + d
    o_ref[0, 0, :, :] = acc.astype(o_ref.dtype)
    s_ref[...] += jnp.sum(acc, axis=0, keepdims=True)
    q_ref[...] += jnp.sum(acc * acc, axis=0, keepdims=True)


def conv_down4x4_fused(x, scale, shift, w_torch, act="lrelu"):
    """Conv2d(k=4, s=2, p=1, bias=False) with the producer BN affine + LeakyReLU
    fused into the prologue and BN batch stats of the output fused into the
    epilogue.  x: (N,H,W,Cin) bf16 raw; w_torch: (Cout, Cin, 4, 4)."""
    n, h, w_, c = x.shape
    assert h % 2 == 0 and w_ % 2 == 0
    cout = int(w_torch.shape[0])
    ho, wo, wp = h // 2, w_ // 2, (w_ + 2) // 2
    shiftp = shift / scale                               # == -batch mean here
    xpad = _pad_spatial1(x, -shiftp)                     # act(pad + shift') == 0
    xpair = xpad.reshape(n, h + 2, wp, 2 * c)            # free reshape: W-pairs

    # weights: (ky, kxpair) taps of shape (phase*C+ci, cout), BN scale folded in
    wt = jnp.transpose(w_torch, (2, 3, 1, 0)) * scale[None, None, :, None]
    wt = wt.reshape(4, 2, 2, c, cout).reshape(8, 2 * c, cout).astype(jnp.bfloat16)
    sh2 = jnp.concatenate([shiftp, shiftp]).reshape(1, 2 * c).astype(jnp.bfloat16)

    x_spec = lambda d: pl.BlockSpec((1, 2, wp, 2 * c),
                                    lambda i, j, d=d: (i, j + d, 0, 0))
    kernel = functools.partial(_down_kernel, act=act, wo=wo)
    out, s, q = pl.pallas_call(
        kernel,
        out_shape=(jax.ShapeDtypeStruct((n, ho, wo, cout), jnp.bfloat16),
                   jax.ShapeDtypeStruct((1, cout), jnp.float32),
                   jax.ShapeDtypeStruct((1, cout), jnp.float32)),
        grid_spec=pltpu.PrefetchScalarGridSpec(
            num_scalar_prefetch=0,
            grid=(n, ho),
            in_specs=[x_spec(0), x_spec(1),
                      pl.BlockSpec((1, 2 * c), lambda i, j: (0, 0)),
                      pl.BlockSpec((8, 2 * c, cout), lambda i, j: (0, 0, 0))],
            out_specs=(pl.BlockSpec((1, 1, wo, cout), lambda i, j: (i, j, 0, 0)),
                       pl.BlockSpec((1, cout), lambda i, j: (0, 0)),
                       pl.BlockSpec((1, cout), lambda i, j: (0, 0)))),
        compiler_params=pltpu.CompilerParams(
            dimension_semantics=("arbitrary", "arbitrary"),
            vmem_limit_bytes=VMEM_LIMIT),
        cost_estimate=pl.CostEstimate(
            flops=int(2 * n * ho * wo * 16 * c * cout),
            transcendentals=0,
            bytes_accessed=int(4 * n * (h + 2) * (w_ + 2) * c
                               + 32 * c * cout + 2 * n * ho * wo * cout)),
    )(xpair, xpair, sh2, wt)

    bscale, bshift = _bn_from_sums(s[0], q[0], n * ho * wo)
    return out, bscale, bshift


def _convT_taps(w, scale):
    """ConvTranspose2d(k=4,s=2,p=1) weight slice (Cin,Cout,4,4) -> 9 taps of an
    equivalent 3x3/s1 conv emitting all 4 output parities: (9, Cin, 4*Cout),
    column order (py, px, cout); the producer BN scale is folded into the rows."""
    cin, cout = int(w.shape[0]), int(w.shape[1])
    w9 = jnp.zeros((3, 3, cin, 2, 2, cout), jnp.float32)
    for r in range(3):
        for s in range(3):
            for py in range(2):
                for px in range(2):
                    kh = 3 + py - 2 * r
                    kw = 3 + px - 2 * s
                    if 0 <= kh <= 3 and 0 <= kw <= 3:
                        w9 = w9.at[r, s, :, py, px, :].set(w[:, :, kh, kw])
    w9 = w9 * scale[None, None, :, None, None, None]
    return w9.reshape(9, cin, 4 * cout)


def _up_kernel(*refs, n_groups, wlow, cout):
    o_ref = refs[5 * n_groups]
    s_ref = refs[5 * n_groups + 1]
    q_ref = refs[5 * n_groups + 2]

    @pl.when(jnp.logical_and(pl.program_id(0) == 0, pl.program_id(1) == 0))
    def _():
        s_ref[...] = jnp.zeros_like(s_ref)
        q_ref[...] = jnp.zeros_like(q_ref)

    acc = None
    for g in range(n_groups):
        x0, x1, x2, sh_ref, w_ref = refs[5 * g: 5 * g + 5]
        sh = sh_ref[...]
        # ReLU prologue in bf16, once per input element (not per tap)
        rows = [jnp.maximum(x[...] + sh, 0.0)[0, 0] for x in (x0, x1, x2)]
        for r in range(3):
            for s in range(3):
                a = rows[r][s:s + wlow, :]               # (Wlow, Cg) unit-stride
                d = jnp.dot(a, w_ref[r * 3 + s],
                            preferred_element_type=jnp.float32)
                acc = d if acc is None else acc + d
    # parity py lives in the lane halves -> store 2 output rows (pixel shuffle
    # is folded into the (N, 2H, W, 2*Cout) output layout)
    o_ref[0, 0, :, :] = acc[:, :2 * cout].astype(o_ref.dtype)
    o_ref[0, 1, :, :] = acc[:, 2 * cout:].astype(o_ref.dtype)
    s_ref[...] += jnp.sum(acc, axis=0, keepdims=True)
    q_ref[...] += jnp.sum(acc * acc, axis=0, keepdims=True)


def conv_up4x4_fused(groups, w_torch):
    """ConvTranspose2d(k=4, s=2, p=1, bias=False) over the un-materialized channel
    concat of `groups` (each (x NHWC, scale, shift)); ReLU + producer BN affines
    fused into the prologue, pixel shuffle folded into the output layout, and BN
    batch stats of the output fused into the epilogue.  w_torch: (Cin_tot, Cout, 4, 4)."""
    n, h, w_, _ = groups[0][0].shape
    cout = int(w_torch.shape[1])
    inputs, in_specs = [], []
    off, flops, byt = 0, 0, 0
    for (x, scale, shift) in groups:
        c = x.shape[-1]
        shiftp = shift / scale
        xpad = _pad_spatial1(x, -shiftp)                 # absent taps contribute 0
        w9 = _convT_taps(w_torch[off:off + c], scale).astype(jnp.bfloat16)
        off += c
        inputs += [xpad, xpad, xpad,
                   shiftp.reshape(1, c).astype(jnp.bfloat16), w9]
        x_spec = lambda d, c=c: pl.BlockSpec((1, 1, w_ + 2, c),
                                             lambda i, j, d=d: (i, j + d, 0, 0))
        in_specs += [x_spec(0), x_spec(1), x_spec(2),
                     pl.BlockSpec((1, c), lambda i, j: (0, 0)),
                     pl.BlockSpec((9, c, 4 * cout), lambda i, j: (0, 0, 0))]
        flops += 2 * n * h * w_ * 9 * c * 4 * cout
        byt += 6 * n * (h + 2) * (w_ + 2) * c + 2 * 9 * c * 4 * cout
    byt += 2 * n * 4 * h * w_ * cout

    kernel = functools.partial(_up_kernel, n_groups=len(groups),
                               wlow=w_, cout=cout)
    out, s4, q4 = pl.pallas_call(
        kernel,
        out_shape=(jax.ShapeDtypeStruct((n, 2 * h, w_, 2 * cout), jnp.bfloat16),
                   jax.ShapeDtypeStruct((1, 4 * cout), jnp.float32),
                   jax.ShapeDtypeStruct((1, 4 * cout), jnp.float32)),
        grid_spec=pltpu.PrefetchScalarGridSpec(
            num_scalar_prefetch=0,
            grid=(n, h),
            in_specs=in_specs,
            out_specs=(pl.BlockSpec((1, 2, w_, 2 * cout), lambda i, j: (i, j, 0, 0)),
                       pl.BlockSpec((1, 4 * cout), lambda i, j: (0, 0)),
                       pl.BlockSpec((1, 4 * cout), lambda i, j: (0, 0)))),
        compiler_params=pltpu.CompilerParams(
            dimension_semantics=("arbitrary", "arbitrary"),
            vmem_limit_bytes=VMEM_LIMIT),
        cost_estimate=pl.CostEstimate(flops=int(flops), transcendentals=0,
                                      bytes_accessed=int(byt)),
    )(*inputs)

    u = out.reshape(n, 2 * h, 2 * w_, cout)  # free row-major reshape == pixel shuffle
    s = jnp.sum(s4.reshape(4, cout), axis=0)
    q = jnp.sum(q4.reshape(4, cout), axis=0)
    bscale, bshift = _bn_from_sums(s, q, n * 4 * h * w_)
    return u, bscale, bshift


# ----------------------------------------------------------------------------
# CustomUnetGenerator (num_downs middle blocks, keep_size inner/outer blocks)
# ----------------------------------------------------------------------------
def init_params(key, input_nc, output_nc, num_downs, ngf):
    keys = iter(jax.random.split(key, 8 + 4 * num_downs))

    def nrm(shape, scale=0.05):
        return scale * jax.random.normal(next(keys), shape, dtype=jnp.float32)

    inc = ngf * 2 ** num_downs
    p = {
        # innermost (keep_size): Conv1x1 (no bias), ConvTranspose1x1 (bias), BN(inc)
        "inner_down_w": nrm((inc, inc, 1, 1)),
        "inner_up_w": nrm((inc, inc, 1, 1)),
        "inner_up_b": nrm((inc,)),
        # outermost (keep_size): Conv1x1 (no bias), ConvTranspose1x1 (bias), Sigmoid
        "out_down_w": nrm((ngf, input_nc, 1, 1)),
        "out_up_w": nrm((ngf * 2, output_nc, 1, 1)),
        "out_up_b": nrm((output_nc,)),
    }
    for k in range(num_downs, 0, -1):
        oc = ngf * 2 ** (k - 1)
        icn = ngf * 2 ** k
        p[f"mid{k}_down_w"] = nrm((icn, oc, 4, 4))     # Conv2d(oc->icn, 4, s2, p1)
        p[f"mid{k}_up_w"] = nrm((icn * 2, oc, 4, 4))   # ConvT(2*icn->oc, 4, s2, p1)
    return p


def custom_unet_forward(x_nchw, p, num_downs):
    ngf = p["out_down_w"].shape[0]
    x = jnp.transpose(x_nchw, (0, 2, 3, 1)).astype(jnp.bfloat16)   # NCHW -> NHWC
    in_nc = x.shape[-1]

    def ident(c):
        return jnp.ones((c,), jnp.float32), jnp.zeros((c,), jnp.float32)

    # outermost down: Conv1x1(input_nc -> ngf), no bias, no act, no norm
    h0 = conv1x1_fused([(x,) + ident(in_nc) + ("none",)],
                       p["out_down_w"][:, :, 0, 0].T,
                       jnp.zeros((ngf,), jnp.float32), "none")
    h0_dt = (h0,) + ident(ngf)

    def innermost(x_dt):
        inc = x_dt[0].shape[-1]
        # LeakyReLU + Conv1x1 (producer BN affine folded into weights / shift)
        di = conv1x1_fused([(x_dt[0], x_dt[1], x_dt[2], "lrelu")],
                           p["inner_down_w"][:, :, 0, 0].T,
                           jnp.zeros((inc,), jnp.float32), "none")
        # ReLU + ConvT1x1 + bias; the following BN's batch stats are fused in
        ui, usc, ush = conv1x1_fused([(di,) + ident(inc) + ("relu",)],
                                     p["inner_up_w"][:, :, 0, 0],
                                     p["inner_up_b"], "none", emit_stats=True)
        return [x_dt, (ui, usc, ush)]              # deferred cat([x, BN(ui)])

    def run_block(k, x_dt):
        d, dsc, dsh = conv_down4x4_fused(x_dt[0], x_dt[1], x_dt[2],
                                         p[f"mid{k}_down_w"], act="lrelu")
        d_dt = (d, dsc, dsh)
        groups = innermost(d_dt) if k == num_downs else run_block(k + 1, d_dt)
        u, usc, ush = conv_up4x4_fused([(g[0], g[1], g[2]) for g in groups],
                                       p[f"mid{k}_up_w"])
        return [x_dt, (u, usc, ush)]               # deferred cat([x, BN(u)])

    groups = run_block(1, h0_dt) if num_downs >= 1 else innermost(h0_dt)

    # outermost up: ReLU + ConvT1x1 + bias + Sigmoid over the deferred concat
    out = conv1x1_fused([(g[0], g[1], g[2], "relu") for g in groups],
                        p["out_up_w"][:, :, 0, 0],
                        p["out_up_b"], "sigmoid", out_dtype=jnp.float32)
    return jnp.transpose(out, (0, 3, 1, 2))        # NHWC -> NCHW


if __name__ == "__main__":
    B, INPUT_NC, OUTPUT_NC, NUM_DOWNS, NGF, HW = 2, 3, 2, 2, 8, 16

    key = jax.random.PRNGKey(0)
    kx, kp = jax.random.split(key)
    x = jax.random.normal(kx, (B, INPUT_NC, HW, HW), dtype=jnp.float32)
    params = init_params(kp, INPUT_NC, OUTPUT_NC, NUM_DOWNS, NGF)

    fwd = jax.jit(functools.partial(custom_unet_forward, num_downs=NUM_DOWNS))
    out = fwd(x, params)
    jax.block_until_ready(out)

    assert out.shape == (B, OUTPUT_NC, HW, HW), out.shape
    assert bool(jnp.all(jnp.isfinite(out)))
    assert bool(jnp.all((out >= 0.0) & (out <= 1.0)))  # sigmoid output range
    print("KERNEL_OK")
</pallas_src>

<mosaic_0001>
module attributes {stable_mosaic.version = 11 : i64} {
  func.func @_mm_kernel(%arg0: i32, %arg1: memref<256x8xbf16, #tpu.memory_space<vmem>>, %arg2: memref<1x8xbf16, #tpu.memory_space<vmem>>, %arg3: memref<8x8xbf16, #tpu.memory_space<vmem>>, %arg4: memref<1x8xf32, #tpu.memory_space<vmem>>, %arg5: memref<256x8xbf16, #tpu.memory_space<vmem>>) attributes {dimension_semantics = [#tpu.dimension_semantics<parallel>], iteration_bounds = array<i64: 2>, scalar_prefetch = 0 : i64, scratch_operands = 0 : i64, tpu.core_type = #tpu.core_type<tc>, window_params = [{transform_indices = @transform_0, window_bounds = array<i64: 256, 8>}, {pipeline_mode = #tpu.pipeline_mode<synchronous>, transform_indices = @transform_1, window_bounds = array<i64: 1, 8>}, {pipeline_mode = #tpu.pipeline_mode<synchronous>, transform_indices = @transform_2, window_bounds = array<i64: 8, 8>}, {pipeline_mode = #tpu.pipeline_mode<synchronous>, transform_indices = @transform_3, window_bounds = array<i64: 1, 8>}, {transform_indices = @transform_4, window_bounds = array<i64: 256, 8>}]} {
    %c0 = arith.constant 0 : index
    %c0_0 = arith.constant 0 : index
    %0 = vector.load %arg1[%c0, %c0_0] : memref<256x8xbf16, #tpu.memory_space<vmem>>, vector<256x8xbf16>
    %c0_1 = arith.constant 0 : index
    %c0_2 = arith.constant 0 : index
    %1 = vector.load %arg2[%c0_1, %c0_2] : memref<1x8xbf16, #tpu.memory_space<vmem>>, vector<1x8xbf16>
    %2 = vector.broadcast %1 : vector<1x8xbf16> to vector<256x8xbf16>
    %3 = arith.addf %0, %2 : vector<256x8xbf16>
    %c0_3 = arith.constant 0 : index
    %c0_4 = arith.constant 0 : index
    %4 = vector.load %arg3[%c0_3, %c0_4] : memref<8x8xbf16, #tpu.memory_space<vmem>>, vector<8x8xbf16>
    %cst = arith.constant dense<0.000000e+00> : vector<256x8xf32>
    %5 = tpu.matmul %3, %4, %cst {dimension_numbers = #tpu.dot_dimension_numbers<[1], [0], [0], [1], [0, 0, 1, 1], [], []>} : vector<256x8xbf16>, vector<8x8xbf16>, vector<256x8xf32> -> vector<256x8xf32>
    %c0_5 = arith.constant 0 : index
    %c0_6 = arith.constant 0 : index
    %6 = vector.load %arg4[%c0_5, %c0_6] : memref<1x8xf32, #tpu.memory_space<vmem>>, vector<1x8xf32>
    %7 = vector.broadcast %6 : vector<1x8xf32> to vector<256x8xf32>
    %8 = arith.addf %5, %7 : vector<256x8xf32>
    %9 = arith.truncf %8 : vector<256x8xf32> to vector<256x8xbf16>
    %c0_7 = arith.constant 0 : index
    %c0_8 = arith.constant 0 : index
    %10 = vector.load %arg5[%c0_7, %c0_8] : memref<256x8xbf16, #tpu.memory_space<vmem>>, vector<256x8xbf16>
    tpu.vector_store %arg5[%c0_7, %c0_8], %9 {strides = array<i32>} : memref<256x8xbf16, #tpu.memory_space<vmem>>, vector<256x8xbf16>,
    return
  }
  func.func @transform_0(%arg0: i32) -> (i32, i32) {
    %c0_i32 = arith.constant 0 : i32
    %c0_i32_0 = arith.constant 0 : i32
    return %arg0, %c0_i32 : i32, i32
  }
  func.func @transform_1(%arg0: i32) -> (i32, i32) {
    %c0_i32 = arith.constant 0 : i32
    %c0_i32_0 = arith.constant 0 : i32
    %c0_i32_1 = arith.constant 0 : i32
    return %c0_i32, %c0_i32_0 : i32, i32
  }
  func.func @transform_2(%arg0: i32) -> (i32, i32) {
    %c0_i32 = arith.constant 0 : i32
    %c0_i32_0 = arith.constant 0 : i32
    %c0_i32_1 = arith.constant 0 : i32
    return %c0_i32, %c0_i32_0 : i32, i32
  }
  func.func @transform_3(%arg0: i32) -> (i32, i32) {
    %c0_i32 = arith.constant 0 : i32
    %c0_i32_0 = arith.constant 0 : i32
    %c0_i32_1 = arith.constant 0 : i32
    return %c0_i32, %c0_i32_0 : i32, i32
  }
  func.func @transform_4(%arg0: i32) -> (i32, i32) {
    %c0_i32 = arith.constant 0 : i32
    %c0_i32_0 = arith.constant 0 : i32
    return %arg0, %c0_i32 : i32, i32
  }
}

module attributes {stable_mosaic.version = 11 : i64} {
  func.func @_down_kernel(%arg0: i32, %arg1: i32, %arg2: memref<1x2x9x16xbf16, #tpu.memory_space<vmem>>, %arg3: memref<1x2x9x16xbf16, #tpu.memory_space<vmem>>, %arg4: memref<1x16xbf16, #tpu.memory_space<vmem>>, %arg5: memref<8x16x16xbf16, #tpu.memory_space<vmem>>, %arg6: memref<1x1x8x16xbf16, #tpu.memory_space<vmem>>, %arg7: memref<1x16xf32, #tpu.memory_space<vmem>>, %arg8: memref<1x16xf32, #tpu.memory_space<vmem>>) attributes {dimension_semantics = [#tpu.dimension_semantics<arbitrary>, #tpu.dimension_semantics<arbitrary>], iteration_bounds = array<i64: 2, 8>, scalar_prefetch = 0 : i64, scratch_operands = 0 : i64, tpu.core_type = #tpu.core_type<tc>, window_params = [{transform_indices = @transform_0, window_bounds = array<i64: 1, 2, 9, 16>}, {transform_indices = @transform_1, window_bounds = array<i64: 1, 2, 9, 16>}, {pipeline_mode = #tpu.pipeline_mode<synchronous>, transform_indices = @transform_2, window_bounds = array<i64: 1, 16>}, {pipeline_mode = #tpu.pipeline_mode<synchronous>, transform_indices = @transform_3, window_bounds = array<i64: 8, 16, 16>}, {transform_indices = @transform_4, window_bounds = array<i64: 1, 1, 8, 16>}, {pipeline_mode = #tpu.pipeline_mode<synchronous>, transform_indices = @transform_5, window_bounds = array<i64: 1, 16>}, {pipeline_mode = #tpu.pipeline_mode<synchronous>, transform_indices = @transform_6, window_bounds = array<i64: 1, 16>}]} {
    %c0_i32 = arith.constant 0 : i32
    %0 = arith.cmpi eq, %arg0, %c0_i32 : i32
    %c0_i32_0 = arith.constant 0 : i32
    %1 = arith.cmpi eq, %arg1, %c0_i32_0 : i32
    %2 = arith.andi %0, %1 : i1
    %3 = arith.extui %2 : i1 to i32
    %c0_i32_1 = arith.constant 0 : i32
    %4 = arith.cmpi ne, %3, %c0_i32_1 : i32
    scf.if %4 {
      %cst_53 = arith.constant 0.000000e+00 : f32
      %88 = vector.broadcast %cst_53 : f32 to vector<1x16xf32>
      %c0_54 = arith.constant 0 : index
      %c0_55 = arith.constant 0 : index
      %89 = vector.load %arg7[%c0_54, %c0_55] : memref<1x16xf32, #tpu.memory_space<vmem>>, vector<1x16xf32>
      tpu.vector_store %arg7[%c0_54, %c0_55], %88 {strides = array<i32>} : memref<1x16xf32, #tpu.memory_space<vmem>>, vector<1x16xf32>,
      %cst_56 = arith.constant 0.000000e+00 : f32
      %90 = vector.broadcast %cst_56 : f32 to vector<1x16xf32>
      %c0_57 = arith.constant 0 : index
      %c0_58 = arith.constant 0 : index
      %91 = vector.load %arg8[%c0_57, %c0_58] : memref<1x16xf32, #tpu.memory_space<vmem>>, vector<1x16xf32>
      tpu.vector_store %arg8[%c0_57, %c0_58], %90 {strides = array<i32>} : memref<1x16xf32, #tpu.memory_space<vmem>>, vector<1x16xf32>,
    } else {
    }
    %c0 = arith.constant 0 : index
    %c0_2 = arith.constant 0 : index
    %5 = vector.load %arg4[%c0, %c0_2] : memref<1x16xbf16, #tpu.memory_space<vmem>>, vector<1x16xbf16>
    %c0_3 = arith.constant 0 : index
    %c0_4 = arith.constant 0 : index
    %c0_5 = arith.constant 0 : index
    %c0_6 = arith.constant 0 : index
    %6 = vector.load %arg2[%c0_3, %c0_4, %c0_5, %c0_6] : memref<1x2x9x16xbf16, #tpu.memory_space<vmem>>, vector<1x2x9x16xbf16>
    %7 = vector.shape_cast %5 : vector<1x16xbf16> to vector<1x1x1x16xbf16>
    %8 = vector.broadcast %7 : vector<1x1x1x16xbf16> to vector<1x2x9x16xbf16>
    %9 = arith.addf %6, %8 : vector<1x2x9x16xbf16>
    %cst = arith.constant 0.000000e+00 : bf16
    %10 = vector.broadcast %cst : bf16 to vector<1x2x9x16xbf16>
    %11 = arith.cmpf oge, %9, %10 : vector<1x2x9x16xbf16>
    %cst_7 = arith.constant 2.001950e-01 : bf16
    %12 = vector.broadcast %cst_7 : bf16 to vector<1x2x9x16xbf16>
    %13 = arith.mulf %9, %12 : vector<1x2x9x16xbf16>
    %14 = arith.select %11, %9, %13 : vector<1x2x9x16xi1>, vector<1x2x9x16xbf16>
    %15 = vector.shape_cast %14 : vector<1x2x9x16xbf16> to vector<2x9x16xbf16>
    %c0_8 = arith.constant 0 : index
    %c0_9 = arith.constant 0 : index
    %c0_10 = arith.constant 0 : index
    %c0_11 = arith.constant 0 : index
    %16 = vector.load %arg3[%c0_8, %c0_9, %c0_10, %c0_11] : memref<1x2x9x16xbf16, #tpu.memory_space<vmem>>, vector<1x2x9x16xbf16>
    %17 = vector.shape_cast %5 : vector<1x16xbf16> to vector<1x1x1x16xbf16>
    %18 = vector.broadcast %17 : vector<1x1x1x16xbf16> to vector<1x2x9x16xbf16>
    %19 = arith.addf %16, %18 : vector<1x2x9x16xbf16>
    %cst_12 = arith.constant 0.000000e+00 : bf16
    %20 = vector.broadcast %cst_12 : bf16 to vector<1x2x9x16xbf16>
    %21 = arith.cmpf oge, %19, %20 : vector<1x2x9x16xbf16>
    %cst_13 = arith.constant 2.001950e-01 : bf16
    %22 = vector.broadcast %cst_13 : bf16 to vector<1x2x9x16xbf16>
    %23 = arith.mulf %19, %22 : vector<1x2x9x16xbf16>
    %24 = arith.select %21, %19, %23 : vector<1x2x9x16xi1>, vector<1x2x9x16xbf16>
    %25 = vector.shape_cast %24 : vector<1x2x9x16xbf16> to vector<2x9x16xbf16>
    %26 = vector.extract_strided_slice %15 {offsets = [0, 0, 0], sizes = [1, 9, 16], strides = [1, 1, 1]} : vector<2x9x16xbf16> to vector<1x9x16xbf16>
    %27 = vector.shape_cast %26 : vector<1x9x16xbf16> to vector<9x16xbf16>
    %28 = vector.extract_strided_slice %27 {offsets = [0, 0], sizes = [8, 16], strides = [1, 1]} : vector<9x16xbf16> to vector<8x16xbf16>
    %c0_14 = arith.constant 0 : index
    %c0_15 = arith.constant 0 : index
    %c0_16 = arith.constant 0 : index
    %29 = vector.load %arg5[%c0_14, %c0_15, %c0_16] : memref<8x16x16xbf16, #tpu.memory_space<vmem>>, vector<1x16x16xbf16>
    %30 = vector.shape_cast %29 : vector<1x16x16xbf16> to vector<16x16xbf16>
    %cst_17 = arith.constant dense<0.000000e+00> : vector<8x16xf32>
    %31 = tpu.matmul %28, %30, %cst_17 {dimension_numbers = #tpu.dot_dimension_numbers<[1], [0], [0], [1], [0, 0, 1, 1], [], []>} : vector<8x16xbf16>, vector<16x16xbf16>, vector<8x16xf32> -> vector<8x16xf32>
    %32 = vector.extract_strided_slice %27 {offsets = [1, 0], sizes = [8, 16], strides = [1, 1]} : vector<9x16xbf16> to vector<8x16xbf16>
    %c1 = arith.constant 1 : index
    %c0_18 = arith.constant 0 : index
    %c0_19 = arith.constant 0 : index
    %33 = vector.load %arg5[%c1, %c0_18, %c0_19] : memref<8x16x16xbf16, #tpu.memory_space<vmem>>, vector<1x16x16xbf16>
    %34 = vector.shape_cast %33 : vector<1x16x16xbf16> to vector<16x16xbf16>
    %cst_20 = arith.constant dense<0.000000e+00> : vector<8x16xf32>
    %35 = tpu.matmul %32, %34, %cst_20 {dimension_numbers = #tpu.dot_dimension_numbers<[1], [0], [0], [1], [0, 0, 1, 1], [], []>} : vector<8x16xbf16>, vector<16x16xbf16>, vector<8x16xf32> -> vector<8x16xf32>
    %36 = arith.addf %31, %35 : vector<8x16xf32>
    %37 = vector.extract_strided_slice %15 {offsets = [1, 0, 0], sizes = [1, 9, 16], strides = [1, 1, 1]} : vector<2x9x16xbf16> to vector<1x9x16xbf16>
    %38 = vector.shape_cast %37 : vector<1x9x16xbf16> to vector<9x16xbf16>
    %39 = vector.extract_strided_slice %38 {offsets = [0, 0], sizes = [8, 16], strides = [1, 1]} : vector<9x16xbf16> to vector<8x16xbf16>
    %c2 = arith.constant 2 : index
    %c0_21 = arith.constant 0 : index
    %c0_22 = arith.constant 0 : index
    %40 = vector.load %arg5[%c2, %c0_21, %c0_22] : memref<8x16x16xbf16, #tpu.memory_space<vmem>>, vector<1x16x16xbf16>
    %41 = vector.shape_cast %40 : vector<1x16x16xbf16> to vector<16x16xbf16>
    %cst_23 = arith.constant dense<0.000000e+00> : vector<8x16xf32>
    %42 = tpu.matmul %39, %41, %cst_23 {dimension_numbers = #tpu.dot_dimension_numbers<[1], [0], [0], [1], [0, 0, 1, 1], [], []>} : vector<8x16xbf16>, vector<16x16xbf16>, vector<8x16xf32> -> vector<8x16xf32>
    %43 = arith.addf %36, %42 : vector<8x16xf32>
    %44 = vector.extract_strided_slice %38 {offsets = [1, 0], sizes = [8, 16], strides = [1, 1]} : vector<9x16xbf16> to vector<8x16xbf16>
    %c3 = arith.constant 3 : index
    %c0_24 = arith.constant 0 : index
    %c0_25 = arith.constant 0 : index
    %45 = vector.load %arg5[%c3, %c0_24, %c0_25] : memref<8x16x16xbf16, #tpu.memory_space<vmem>>, vector<1x16x16xbf16>
    %46 = vector.shape_cast %45 : vector<1x16x16xbf16> to vector<16x16xbf16>
    %cst_26 = arith.constant dense<0.000000e+00> : vector<8x16xf32>
    %47 = tpu.matmul %44, %46, %cst_26 {dimension_numbers = #tpu.dot_dimension_numbers<[1], [0], [0], [1], [0, 0, 1, 1], [], []>} : vector<8x16xbf16>, vector<16x16xbf16>, vector<8x16xf32> -> vector<8x16xf32>
    %48 = arith.addf %43, %47 : vector<8x16xf32>
    %49 = vector.extract_strided_slice %25 {offsets = [0, 0, 0], sizes = [1, 9, 16], strides = [1, 1, 1]} : vector<2x9x16xbf16> to vector<1x9x16xbf16>
    %50 = vector.shape_cast %49 : vector<1x9x16xbf16> to vector<9x16xbf16>
    %51 = vector.extract_strided_slice %50 {offsets = [0, 0], sizes = [8, 16], strides = [1, 1]} : vector<9x16xbf16> to vector<8x16xbf16>
    %c4 = arith.constant 4 : index
    %c0_27 = arith.constant 0 : index
    %c0_28 = arith.constant 0 : index
    %52 = vector.load %arg5[%c4, %c0_27, %c0_28] : memref<8x16x16xbf16, #tpu.memory_space<vmem>>, vector<1x16x16xbf16>
    %53 = vector.shape_cast %52 : vector<1x16x16xbf16> to vector<16x16xbf16>
    %cst_29 = arith.constant dense<0.000000e+00> : vector<8x16xf32>
    %54 = tpu.matmul %51, %53, %cst_29 {dimension_numbers = #tpu.dot_dimension_numbers<[1], [0], [0], [1], [0, 0, 1, 1], [], []>} : vector<8x16xbf16>, vector<16x16xbf16>, vector<8x16xf32> -> vector<8x16xf32>
    %55 = arith.addf %48, %54 : vector<8x16xf32>
    %56 = vector.extract_strided_slice %50 {offsets = [1, 0], sizes = [8, 16], strides = [1, 1]} : vector<9x16xbf16> to vector<8x16xbf16>
    %c5 = arith.constant 5 : index
    %c0_30 = arith.constant 0 : index
    %c0_31 = arith.constant 0 : index
    %57 = vector.load %arg5[%c5, %c0_30, %c0_31] : memref<8x16x16xbf16, #tpu.memory_space<vmem>>, vector<1x16x16xbf16>
    %58 = vector.shape_cast %57 : vector<1x16x16xbf16> to vector<16x16xbf16>
    %cst_32 = arith.constant dense<0.000000e+00> : vector<8x16xf32>
    %59 = tpu.matmul %56, %58, %cst_32 {dimension_numbers = #tpu.dot_dimension_numbers<[1], [0], [0], [1], [0, 0, 1, 1], [], []>} : vector<8x16xbf16>, vector<16x16xbf16>, vector<8x16xf32> -> vector<8x16xf32>
    %60 = arith.addf %55, %59 : vector<8x16xf32>
    %61 = vector.extract_strided_slice %25 {offsets = [1, 0, 0], sizes = [1, 9, 16], strides = [1, 1, 1]} : vector<2x9x16xbf16> to vector<1x9x16xbf16>
    %62 = vector.shape_cast %61 : vector<1x9x16xbf16> to vector<9x16xbf16>
    %63 = vector.extract_strided_slice %62 {offsets = [0, 0], sizes = [8, 16], strides = [1, 1]} : vector<9x16xbf16> to vector<8x16xbf16>
    %c6 = arith.constant 6 : index
    %c0_33 = arith.constant 0 : index
    %c0_34 = arith.constant 0 : index
    %64 = vector.load %arg5[%c6, %c0_33, %c0_34] : memref<8x16x16xbf16, #tpu.memory_space<vmem>>, vector<1x16x16xbf16>
    %65 = vector.shape_cast %64 : vector<1x16x16xbf16> to vector<16x16xbf16>
    %cst_35 = arith.constant dense<0.000000e+00> : vector<8x16xf32>
    %66 = tpu.matmul %63, %65, %cst_35 {dimension_numbers = #tpu.dot_dimension_numbers<[1], [0], [0], [1], [0, 0, 1, 1], [], []>} : vector<8x16xbf16>, vector<16x16xbf16>, vector<8x16xf32> -> vector<8x16xf32>
    %67 = arith.addf %60, %66 : vector<8x16xf32>
    %68 = vector.extract_strided_slice %62 {offsets = [1, 0], sizes = [8, 16], strides = [1, 1]} : vector<9x16xbf16> to vector<8x16xbf16>
    %c7 = arith.constant 7 : index
    %c0_36 = arith.constant 0 : index
    %c0_37 = arith.constant 0 : index
    %69 = vector.load %arg5[%c7, %c0_36, %c0_37] : memref<8x16x16xbf16, #tpu.memory_space<vmem>>, vector<1x16x16xbf16>
    %70 = vector.shape_cast %69 : vector<1x16x16xbf16> to vector<16x16xbf16>
    %cst_38 = arith.constant dense<0.000000e+00> : vector<8x16xf32>
    %71 = tpu.matmul %68, %70, %cst_38 {dimension_numbers = #tpu.dot_dimension_numbers<[1], [0], [0], [1], [0, 0, 1, 1], [], []>} : vector<8x16xbf16>, vector<16x16xbf16>, vector<8x16xf32> -> vector<8x16xf32>
    %72 = arith.addf %67, %71 : vector<8x16xf32>
    %73 = arith.truncf %72 : vector<8x16xf32> to vector<8x16xbf16>
    %c0_39 = arith.constant 0 : index
    %c0_40 = arith.constant 0 : index
    %c0_41 = arith.constant 0 : index
    %c0_42 = arith.constant 0 : index
    %74 = vector.load %arg6[%c0_39, %c0_40, %c0_41, %c0_42] : memref<1x1x8x16xbf16, #tpu.memory_space<vmem>>, vector<1x1x8x16xbf16>
    %75 = vector.shape_cast %74 : vector<1x1x8x16xbf16> to vector<8x16xbf16>
    %76 = vector.shape_cast %73 : vector<8x16xbf16> to vector<1x1x8x16xbf16>
    tpu.vector_store %arg6[%c0_39, %c0_40, %c0_41, %c0_42], %76 {strides = array<i32>} : memref<1x1x8x16xbf16, #tpu.memory_space<vmem>>, vector<1x1x8x16xbf16>,
    %c0_43 = arith.constant 0 : index
    %c0_44 = arith.constant 0 : index
    %77 = vector.load %arg7[%c0_43, %c0_44] : memref<1x16xf32, #tpu.memory_space<vmem>>, vector<1x16xf32>
    %cst_45 = arith.constant dense<0.000000e+00> : vector<16xf32>
    %78 = vector.multi_reduction <add>, %72, %cst_45 [0] : vector<8x16xf32> to vector<16xf32>
    %79 = vector.shape_cast %78 : vector<16xf32> to vector<1x16xf32>
    %80 = arith.addf %77, %79 : vector<1x16xf32>
    %c0_46 = arith.constant 0 : index
    %c0_47 = arith.constant 0 : index
    %81 = vector.load %arg7[%c0_46, %c0_47] : memref<1x16xf32, #tpu.memory_space<vmem>>, vector<1x16xf32>
    tpu.vector_store %arg7[%c0_46, %c0_47], %80 {strides = array<i32>} : memref<1x16xf32, #tpu.memory_space<vmem>>, vector<1x16xf32>,
    %c0_48 = arith.constant 0 : index
    %c0_49 = arith.constant 0 : index
    %82 = vector.load %arg8[%c0_48, %c0_49] : memref<1x16xf32, #tpu.memory_space<vmem>>, vector<1x16xf32>
    %83 = arith.mulf %72, %72 : vector<8x16xf32>
    %cst_50 = arith.constant dense<0.000000e+00> : vector<16xf32>
    %84 = vector.multi_reduction <add>, %83, %cst_50 [0] : vector<8x16xf32> to vector<16xf32>
    %85 = vector.shape_cast %84 : vector<16xf32> to vector<1x16xf32>
    %86 = arith.addf %82, %85 : vector<1x16xf32>
    %c0_51 = arith.constant 0 : index
    %c0_52 = arith.constant 0 : index
    %87 = vector.load %arg8[%c0_51, %c0_52] : memref<1x16xf32, #tpu.memory_space<vmem>>, vector<1x16xf32>
    tpu.vector_store %arg8[%c0_51, %c0_52], %86 {strides = array<i32>} : memref<1x16xf32, #tpu.memory_space<vmem>>, vector<1x16xf32>,
    return
  }
  func.func @transform_0(%arg0: i32, %arg1: i32) -> (i32, i32, i32, i32) {
    %c0_i32 = arith.constant 0 : i32
    %0 = arith.addi %arg1, %c0_i32 : i32
    %c0_i32_0 = arith.constant 0 : i32
    %c0_i32_1 = arith.constant 0 : i32
    %c0_i32_2 = arith.constant 0 : i32
    return %arg0, %0, %c0_i32_0, %c0_i32_1 : i32, i32, i32, i32
  }
  func.func @transform_1(%arg0: i32, %arg1: i32) -> (i32, i32, i32, i32) {
    %c1_i32 = arith.constant 1 : i32
    %0 = arith.addi %arg1, %c1_i32 : i32
    %c0_i32 = arith.constant 0 : i32
    %c0_i32_0 = arith.constant 0 : i32
    %c0_i32_1 = arith.constant 0 : i32
    return %arg0, %0, %c0_i32, %c0_i32_0 : i32, i32, i32, i32
  }
  func.func @transform_2(%arg0: i32, %arg1: i32) -> (i32, i32) {
    %c0_i32 = arith.constant 0 : i32
    %c0_i32_0 = arith.constant 0 : i32
    %c0_i32_1 = arith.constant 0 : i32
    return %c0_i32, %c0_i32_0 : i32, i32
  }
  func.func @transform_3(%arg0: i32, %arg1: i32) -> (i32, i32, i32) {
    %c0_i32 = arith.constant 0 : i32
    %c0_i32_0 = arith.constant 0 : i32
    %c0_i32_1 = arith.constant 0 : i32
    %c0_i32_2 = arith.constant 0 : i32
    return %c0_i32, %c0_i32_0, %c0_i32_1 : i32, i32, i32
  }
  func.func @transform_4(%arg0: i32, %arg1: i32) -> (i32, i32, i32, i32) {
    %c0_i32 = arith.constant 0 : i32
    %c0_i32_0 = arith.constant 0 : i32
    %c0_i32_1 = arith.constant 0 : i32
    return %arg0, %arg1, %c0_i32, %c0_i32_0 : i32, i32, i32, i32
  }
  func.func @transform_5(%arg0: i32, %arg1: i32) -> (i32, i32) {
    %c0_i32 = arith.constant 0 : i32
    %c0_i32_0 = arith.constant 0 : i32
    %c0_i32_1 = arith.constant 0 : i32
    return %c0_i32, %c0_i32_0 : i32, i32
  }
  func.func @transform_6(%arg0: i32, %arg1: i32) -> (i32, i32) {
    %c0_i32 = arith.constant 0 : i32
    %c0_i32_0 = arith.constant 0 : i32
    %c0_i32_1 = arith.constant 0 : i32
    return %c0_i32, %c0_i32_0 : i32, i32
  }
}

module attributes {stable_mosaic.version = 11 : i64} {
  func.func @_down_kernel(%arg0: i32, %arg1: i32, %arg2: memref<1x2x5x32xbf16, #tpu.memory_space<vmem>>, %arg3: memref<1x2x5x32xbf16, #tpu.memory_space<vmem>>, %arg4: memref<1x32xbf16, #tpu.memory_space<vmem>>, %arg5: memref<8x32x32xbf16, #tpu.memory_space<vmem>>, %arg6: memref<1x1x4x32xbf16, #tpu.memory_space<vmem>>, %arg7: memref<1x32xf32, #tpu.memory_space<vmem>>, %arg8: memref<1x32xf32, #tpu.memory_space<vmem>>) attributes {dimension_semantics = [#tpu.dimension_semantics<arbitrary>, #tpu.dimension_semantics<arbitrary>], iteration_bounds = array<i64: 2, 4>, scalar_prefetch = 0 : i64, scratch_operands = 0 : i64, tpu.core_type = #tpu.core_type<tc>, window_params = [{transform_indices = @transform_0, window_bounds = array<i64: 1, 2, 5, 32>}, {transform_indices = @transform_1, window_bounds = array<i64: 1, 2, 5, 32>}, {pipeline_mode = #tpu.pipeline_mode<synchronous>, transform_indices = @transform_2, window_bounds = array<i64: 1, 32>}, {pipeline_mode = #tpu.pipeline_mode<synchronous>, transform_indices = @transform_3, window_bounds = array<i64: 8, 32, 32>}, {transform_indices = @transform_4, window_bounds = array<i64: 1, 1, 4, 32>}, {pipeline_mode = #tpu.pipeline_mode<synchronous>, transform_indices = @transform_5, window_bounds = array<i64: 1, 32>}, {pipeline_mode = #tpu.pipeline_mode<synchronous>, transform_indices = @transform_6, window_bounds = array<i64: 1, 32>}]} {
    %c0_i32 = arith.constant 0 : i32
    %0 = arith.cmpi eq, %arg0, %c0_i32 : i32
    %c0_i32_0 = arith.constant 0 : i32
    %1 = arith.cmpi eq, %arg1, %c0_i32_0 : i32
    %2 = arith.andi %0, %1 : i1
    %3 = arith.extui %2 : i1 to i32
    %c0_i32_1 = arith.constant 0 : i32
    %4 = arith.cmpi ne, %3, %c0_i32_1 : i32
    scf.if %4 {
      %cst_53 = arith.constant 0.000000e+00 : f32
      %88 = vector.broadcast %cst_53 : f32 to vector<1x32xf32>
      %c0_54 = arith.constant 0 : index
      %c0_55 = arith.constant 0 : index
      %89 = vector.load %arg7[%c0_54, %c0_55] : memref<1x32xf32, #tpu.memory_space<vmem>>, vector<1x32xf32>
      tpu.vector_store %arg7[%c0_54, %c0_55], %88 {strides = array<i32>} : memref<1x32xf32, #tpu.memory_space<vmem>>, vector<1x32xf32>,
      %cst_56 = arith.constant 0.000000e+00 : f32
      %90 = vector.broadcast %cst_56 : f32 to vector<1x32xf32>
      %c0_57 = arith.constant 0 : index
      %c0_58 = arith.constant 0 : index
      %91 = vector.load %arg8[%c0_57, %c0_58] : memref<1x32xf32, #tpu.memory_space<vmem>>, vector<1x32xf32>
      tpu.vector_store %arg8[%c0_57, %c0_58], %90 {strides = array<i32>} : memref<1x32xf32, #tpu.memory_space<vmem>>, vector<1x32xf32>,
    } else {
    }
    %c0 = arith.constant 0 : index
    %c0_2 = arith.constant 0 : index
    %5 = vector.load %arg4[%c0, %c0_2] : memref<1x32xbf16, #tpu.memory_space<vmem>>, vector<1x32xbf16>
    %c0_3 = arith.constant 0 : index
    %c0_4 = arith.constant 0 : index
    %c0_5 = arith.constant 0 : index
    %c0_6 = arith.constant 0 : index
    %6 = vector.load %arg2[%c0_3, %c0_4, %c0_5, %c0_6] : memref<1x2x5x32xbf16, #tpu.memory_space<vmem>>, vector<1x2x5x32xbf16>
    %7 = vector.shape_cast %5 : vector<1x32xbf16> to vector<1x1x1x32xbf16>
    %8 = vector.broadcast %7 : vector<1x1x1x32xbf16> to vector<1x2x5x32xbf16>
    %9 = arith.addf %6, %8 : vector<1x2x5x32xbf16>
    %cst = arith.constant 0.000000e+00 : bf16
    %10 = vector.broadcast %cst : bf16 to vector<1x2x5x32xbf16>
    %11 = arith.cmpf oge, %9, %10 : vector<1x2x5x32xbf16>
    %cst_7 = arith.constant 2.001950e-01 : bf16
    %12 = vector.broadcast %cst_7 : bf16 to vector<1x2x5x32xbf16>
    %13 = arith.mulf %9, %12 : vector<1x2x5x32xbf16>
    %14 = arith.select %11, %9, %13 : vector<1x2x5x32xi1>, vector<1x2x5x32xbf16>
    %15 = vector.shape_cast %14 : vector<1x2x5x32xbf16> to vector<2x5x32xbf16>
    %c0_8 = arith.constant 0 : index
    %c0_9 = arith.constant 0 : index
    %c0_10 = arith.constant 0 : index
    %c0_11 = arith.constant 0 : index
    %16 = vector.load %arg3[%c0_8, %c0_9, %c0_10, %c0_11] : memref<1x2x5x32xbf16, #tpu.memory_space<vmem>>, vector<1x2x5x32xbf16>
    %17 = vector.shape_cast %5 : vector<1x32xbf16> to vector<1x1x1x32xbf16>
    %18 = vector.broadcast %17 : vector<1x1x1x32xbf16> to vector<1x2x5x32xbf16>
    %19 = arith.addf %16, %18 : vector<1x2x5x32xbf16>
    %cst_12 = arith.constant 0.000000e+00 : bf16
    %20 = vector.broadcast %cst_12 : bf16 to vector<1x2x5x32xbf16>
    %21 = arith.cmpf oge, %19, %20 : vector<1x2x5x32xbf16>
    %cst_13 = arith.constant 2.001950e-01 : bf16
    %22 = vector.broadcast %cst_13 : bf16 to vector<1x2x5x32xbf16>
    %23 = arith.mulf %19, %22 : vector<1x2x5x32xbf16>
    %24 = arith.select %21, %19, %23 : vector<1x2x5x32xi1>, vector<1x2x5x32xbf16>
    %25 = vector.shape_cast %24 : vector<1x2x5x32xbf16> to vector<2x5x32xbf16>
    %26 = vector.extract_strided_slice %15 {offsets = [0, 0, 0], sizes = [1, 5, 32], strides = [1, 1, 1]} : vector<2x5x32xbf16> to vector<1x5x32xbf16>
    %27 = vector.shape_cast %26 : vector<1x5x32xbf16> to vector<5x32xbf16>
    %28 = vector.extract_strided_slice %27 {offsets = [0, 0], sizes = [4, 32], strides = [1, 1]} : vector<5x32xbf16> to vector<4x32xbf16>
    %c0_14 = arith.constant 0 : index
    %c0_15 = arith.constant 0 : index
    %c0_16 = arith.constant 0 : index
    %29 = vector.load %arg5[%c0_14, %c0_15, %c0_16] : memref<8x32x32xbf16, #tpu.memory_space<vmem>>, vector<1x32x32xbf16>
    %30 = vector.shape_cast %29 : vector<1x32x32xbf16> to vector<32x32xbf16>
    %cst_17 = arith.constant dense<0.000000e+00> : vector<4x32xf32>
    %31 = tpu.matmul %28, %30, %cst_17 {dimension_numbers = #tpu.dot_dimension_numbers<[1], [0], [0], [1], [0, 0, 1, 1], [], []>} : vector<4x32xbf16>, vector<32x32xbf16>, vector<4x32xf32> -> vector<4x32xf32>
    %32 = vector.extract_strided_slice %27 {offsets = [1, 0], sizes = [4, 32], strides = [1, 1]} : vector<5x32xbf16> to vector<4x32xbf16>
    %c1 = arith.constant 1 : index
    %c0_18 = arith.constant 0 : index
    %c0_19 = arith.constant 0 : index
    %33 = vector.load %arg5[%c1, %c0_18, %c0_19] : memref<8x32x32xbf16, #tpu.memory_space<vmem>>, vector<1x32x32xbf16>
    %34 = vector.shape_cast %33 : vector<1x32x32xbf16> to vector<32x32xbf16>
    %cst_20 = arith.constant dense<0.000000e+00> : vector<4x32xf32>
    %35 = tpu.matmul %32, %34, %cst_20 {dimension_numbers = #tpu.dot_dimension_numbers<[1], [0], [0], [1], [0, 0, 1, 1], [], []>} : vector<4x32xbf16>, vector<32x32xbf16>, vector<4x32xf32> -> vector<4x32xf32>
    %36 = arith.addf %31, %35 : vector<4x32xf32>
    %37 = vector.extract_strided_slice %15 {offsets = [1, 0, 0], sizes = [1, 5, 32], strides = [1, 1, 1]} : vector<2x5x32xbf16> to vector<1x5x32xbf16>
    %38 = vector.shape_cast %37 : vector<1x5x32xbf16> to vector<5x32xbf16>
    %39 = vector.extract_strided_slice %38 {offsets = [0, 0], sizes = [4, 32], strides = [1, 1]} : vector<5x32xbf16> to vector<4x32xbf16>
    %c2 = arith.constant 2 : index
    %c0_21 = arith.constant 0 : index
    %c0_22 = arith.constant 0 : index
    %40 = vector.load %arg5[%c2, %c0_21, %c0_22] : memref<8x32x32xbf16, #tpu.memory_space<vmem>>, vector<1x32x32xbf16>
    %41 = vector.shape_cast %40 : vector<1x32x32xbf16> to vector<32x32xbf16>
    %cst_23 = arith.constant dense<0.000000e+00> : vector<4x32xf32>
    %42 = tpu.matmul %39, %41, %cst_23 {dimension_numbers = #tpu.dot_dimension_numbers<[1], [0], [0], [1], [0, 0, 1, 1], [], []>} : vector<4x32xbf16>, vector<32x32xbf16>, vector<4x32xf32> -> vector<4x32xf32>
    %43 = arith.addf %36, %42 : vector<4x32xf32>
    %44 = vector.extract_strided_slice %38 {offsets = [1, 0], sizes = [4, 32], strides = [1, 1]} : vector<5x32xbf16> to vector<4x32xbf16>
    %c3 = arith.constant 3 : index
    %c0_24 = arith.constant 0 : index
    %c0_25 = arith.constant 0 : index
    %45 = vector.load %arg5[%c3, %c0_24, %c0_25] : memref<8x32x32xbf16, #tpu.memory_space<vmem>>, vector<1x32x32xbf16>
    %46 = vector.shape_cast %45 : vector<1x32x32xbf16> to vector<32x32xbf16>
    %cst_26 = arith.constant dense<0.000000e+00> : vector<4x32xf32>
    %47 = tpu.matmul %44, %46, %cst_26 {dimension_numbers = #tpu.dot_dimension_numbers<[1], [0], [0], [1], [0, 0, 1, 1], [], []>} : vector<4x32xbf16>, vector<32x32xbf16>, vector<4x32xf32> -> vector<4x32xf32>
    %48 = arith.addf %43, %47 : vector<4x32xf32>
    %49 = vector.extract_strided_slice %25 {offsets = [0, 0, 0], sizes = [1, 5, 32], strides = [1, 1, 1]} : vector<2x5x32xbf16> to vector<1x5x32xbf16>
    %50 = vector.shape_cast %49 : vector<1x5x32xbf16> to vector<5x32xbf16>
    %51 = vector.extract_strided_slice %50 {offsets = [0, 0], sizes = [4, 32], strides = [1, 1]} : vector<5x32xbf16> to vector<4x32xbf16>
    %c4 = arith.constant 4 : index
    %c0_27 = arith.constant 0 : index
    %c0_28 = arith.constant 0 : index
    %52 = vector.load %arg5[%c4, %c0_27, %c0_28] : memref<8x32x32xbf16, #tpu.memory_space<vmem>>, vector<1x32x32xbf16>
    %53 = vector.shape_cast %52 : vector<1x32x32xbf16> to vector<32x32xbf16>
    %cst_29 = arith.constant dense<0.000000e+00> : vector<4x32xf32>
    %54 = tpu.matmul %51, %53, %cst_29 {dimension_numbers = #tpu.dot_dimension_numbers<[1], [0], [0], [1], [0, 0, 1, 1], [], []>} : vector<4x32xbf16>, vector<32x32xbf16>, vector<4x32xf32> -> vector<4x32xf32>
    %55 = arith.addf %48, %54 : vector<4x32xf32>
    %56 = vector.extract_strided_slice %50 {offsets = [1, 0], sizes = [4, 32], strides = [1, 1]} : vector<5x32xbf16> to vector<4x32xbf16>
    %c5 = arith.constant 5 : index
    %c0_30 = arith.constant 0 : index
    %c0_31 = arith.constant 0 : index
    %57 = vector.load %arg5[%c5, %c0_30, %c0_31] : memref<8x32x32xbf16, #tpu.memory_space<vmem>>, vector<1x32x32xbf16>
    %58 = vector.shape_cast %57 : vector<1x32x32xbf16> to vector<32x32xbf16>
    %cst_32 = arith.constant dense<0.000000e+00> : vector<4x32xf32>
    %59 = tpu.matmul %56, %58, %cst_32 {dimension_numbers = #tpu.dot_dimension_numbers<[1], [0], [0], [1], [0, 0, 1, 1], [], []>} : vector<4x32xbf16>, vector<32x32xbf16>, vector<4x32xf32> -> vector<4x32xf32>
    %60 = arith.addf %55, %59 : vector<4x32xf32>
    %61 = vector.extract_strided_slice %25 {offsets = [1, 0, 0], sizes = [1, 5, 32], strides = [1, 1, 1]} : vector<2x5x32xbf16> to vector<1x5x32xbf16>
    %62 = vector.shape_cast %61 : vector<1x5x32xbf16> to vector<5x32xbf16>
    %63 = vector.extract_strided_slice %62 {offsets = [0, 0], sizes = [4, 32], strides = [1, 1]} : vector<5x32xbf16> to vector<4x32xbf16>
    %c6 = arith.constant 6 : index
    %c0_33 = arith.constant 0 : index
    %c0_34 = arith.constant 0 : index
    %64 = vector.load %arg5[%c6, %c0_33, %c0_34] : memref<8x32x32xbf16, #tpu.memory_space<vmem>>, vector<1x32x32xbf16>
    %65 = vector.shape_cast %64 : vector<1x32x32xbf16> to vector<32x32xbf16>
    %cst_35 = arith.constant dense<0.000000e+00> : vector<4x32xf32>
    %66 = tpu.matmul %63, %65, %cst_35 {dimension_numbers = #tpu.dot_dimension_numbers<[1], [0], [0], [1], [0, 0, 1, 1], [], []>} : vector<4x32xbf16>, vector<32x32xbf16>, vector<4x32xf32> -> vector<4x32xf32>
    %67 = arith.addf %60, %66 : vector<4x32xf32>
    %68 = vector.extract_strided_slice %62 {offsets = [1, 0], sizes = [4, 32], strides = [1, 1]} : vector<5x32xbf16> to vector<4x32xbf16>
    %c7 = arith.constant 7 : index
    %c0_36 = arith.constant 0 : index
    %c0_37 = arith.constant 0 : index
    %69 = vector.load %arg5[%c7, %c0_36, %c0_37] : memref<8x32x32xbf16, #tpu.memory_space<vmem>>, vector<1x32x32xbf16>
    %70 = vector.shape_cast %69 : vector<1x32x32xbf16> to vector<32x32xbf16>
    %cst_38 = arith.constant dense<0.000000e+00> : vector<4x32xf32>
    %71 = tpu.matmul %68, %70, %cst_38 {dimension_numbers = #tpu.dot_dimension_numbers<[1], [0], [0], [1], [0, 0, 1, 1], [], []>} : vector<4x32xbf16>, vector<32x32xbf16>, vector<4x32xf32> -> vector<4x32xf32>
    %72 = arith.addf %67, %71 : vector<4x32xf32>
    %73 = arith.truncf %72 : vector<4x32xf32> to vector<4x32xbf16>
    %c0_39 = arith.constant 0 : index
    %c0_40 = arith.constant 0 : index
    %c0_41 = arith.constant 0 : index
    %c0_42 = arith.constant 0 : index
    %74 = vector.load %arg6[%c0_39, %c0_40, %c0_41, %c0_42] : memref<1x1x4x32xbf16, #tpu.memory_space<vmem>>, vector<1x1x4x32xbf16>
    %75 = vector.shape_cast %74 : vector<1x1x4x32xbf16> to vector<4x32xbf16>
    %76 = vector.shape_cast %73 : vector<4x32xbf16> to vector<1x1x4x32xbf16>
    tpu.vector_store %arg6[%c0_39, %c0_40, %c0_41, %c0_42], %76 {strides = array<i32>} : memref<1x1x4x32xbf16, #tpu.memory_space<vmem>>, vector<1x1x4x32xbf16>,
    %c0_43 = arith.constant 0 : index
    %c0_44 = arith.constant 0 : index
    %77 = vector.load %arg7[%c0_43, %c0_44] : memref<1x32xf32, #tpu.memory_space<vmem>>, vector<1x32xf32>
    %cst_45 = arith.constant dense<0.000000e+00> : vector<32xf32>
    %78 = vector.multi_reduction <add>, %72, %cst_45 [0] : vector<4x32xf32> to vector<32xf32>
    %79 = vector.shape_cast %78 : vector<32xf32> to vector<1x32xf32>
    %80 = arith.addf %77, %79 : vector<1x32xf32>
    %c0_46 = arith.constant 0 : index
    %c0_47 = arith.constant 0 : index
    %81 = vector.load %arg7[%c0_46, %c0_47] : memref<1x32xf32, #tpu.memory_space<vmem>>, vector<1x32xf32>
    tpu.vector_store %arg7[%c0_46, %c0_47], %80 {strides = array<i32>} : memref<1x32xf32, #tpu.memory_space<vmem>>, vector<1x32xf32>,
    %c0_48 = arith.constant 0 : index
    %c0_49 = arith.constant 0 : index
    %82 = vector.load %arg8[%c0_48, %c0_49] : memref<1x32xf32, #tpu.memory_space<vmem>>, vector<1x32xf32>
    %83 = arith.mulf %72, %72 : vector<4x32xf32>
    %cst_50 = arith.constant dense<0.000000e+00> : vector<32xf32>
    %84 = vector.multi_reduction <add>, %83, %cst_50 [0] : vector<4x32xf32> to vector<32xf32>
    %85 = vector.shape_cast %84 : vector<32xf32> to vector<1x32xf32>
    %86 = arith.addf %82, %85 : vector<1x32xf32>
    %c0_51 = arith.constant 0 : index
    %c0_52 = arith.constant 0 : index
    %87 = vector.load %arg8[%c0_51, %c0_52] : memref<1x32xf32, #tpu.memory_space<vmem>>, vector<1x32xf32>
    tpu.vector_store %arg8[%c0_51, %c0_52], %86 {strides = array<i32>} : memref<1x32xf32, #tpu.memory_space<vmem>>, vector<1x32xf32>,
    return
  }
  func.func @transform_0(%arg0: i32, %arg1: i32) -> (i32, i32, i32, i32) {
    %c0_i32 = arith.constant 0 : i32
    %0 = arith.addi %arg1, %c0_i32 : i32
    %c0_i32_0 = arith.constant 0 : i32
    %c0_i32_1 = arith.constant 0 : i32
    %c0_i32_2 = arith.constant 0 : i32
    return %arg0, %0, %c0_i32_0, %c0_i32_1 : i32, i32, i32, i32
  }
  func.func @transform_1(%arg0: i32, %arg1: i32) -> (i32, i32, i32, i32) {
    %c1_i32 = arith.constant 1 : i32
    %0 = arith.addi %arg1, %c1_i32 : i32
    %c0_i32 = arith.constant 0 : i32
    %c0_i32_0 = arith.constant 0 : i32
    %c0_i32_1 = arith.constant 0 : i32
    return %arg0, %0, %c0_i32, %c0_i32_0 : i32, i32, i32, i32
  }
  func.func @transform_2(%arg0: i32, %arg1: i32) -> (i32, i32) {
    %c0_i32 = arith.constant 0 : i32
    %c0_i32_0 = arith.constant 0 : i32
    %c0_i32_1 = arith.constant 0 : i32
    return %c0_i32, %c0_i32_0 : i32, i32
  }
  func.func @transform_3(%arg0: i32, %arg1: i32) -> (i32, i32, i32) {
    %c0_i32 = arith.constant 0 : i32
    %c0_i32_0 = arith.constant 0 : i32
    %c0_i32_1 = arith.constant 0 : i32
    %c0_i32_2 = arith.constant 0 : i32
    return %c0_i32, %c0_i32_0, %c0_i32_1 : i32, i32, i32
  }
  func.func @transform_4(%arg0: i32, %arg1: i32) -> (i32, i32, i32, i32) {
    %c0_i32 = arith.constant 0 : i32
    %c0_i32_0 = arith.constant 0 : i32
    %c0_i32_1 = arith.constant 0 : i32
    return %arg0, %arg1, %c0_i32, %c0_i32_0 : i32, i32, i32, i32
  }
  func.func @transform_5(%arg0: i32, %arg1: i32) -> (i32, i32) {
    %c0_i32 = arith.constant 0 : i32
    %c0_i32_0 = arith.constant 0 : i32
    %c0_i32_1 = arith.constant 0 : i32
    return %c0_i32, %c0_i32_0 : i32, i32
  }
  func.func @transform_6(%arg0: i32, %arg1: i32) -> (i32, i32) {
    %c0_i32 = arith.constant 0 : i32
    %c0_i32_0 = arith.constant 0 : i32
    %c0_i32_1 = arith.constant 0 : i32
    return %c0_i32, %c0_i32_0 : i32, i32
  }
}

module attributes {stable_mosaic.version = 11 : i64} {
  func.func @_mm_kernel(%arg0: i32, %arg1: memref<16x32xbf16, #tpu.memory_space<vmem>>, %arg2: memref<1x32xbf16, #tpu.memory_space<vmem>>, %arg3: memref<32x32xbf16, #tpu.memory_space<vmem>>, %arg4: memref<1x32xf32, #tpu.memory_space<vmem>>, %arg5: memref<16x32xbf16, #tpu.memory_space<vmem>>) attributes {dimension_semantics = [#tpu.dimension_semantics<parallel>], iteration_bounds = array<i64: 2>, scalar_prefetch = 0 : i64, scratch_operands = 0 : i64, tpu.core_type = #tpu.core_type<tc>, window_params = [{transform_indices = @transform_0, window_bounds = array<i64: 16, 32>}, {pipeline_mode = #tpu.pipeline_mode<synchronous>, transform_indices = @transform_1, window_bounds = array<i64: 1, 32>}, {pipeline_mode = #tpu.pipeline_mode<synchronous>, transform_indices = @transform_2, window_bounds = array<i64: 32, 32>}, {pipeline_mode = #tpu.pipeline_mode<synchronous>, transform_indices = @transform_3, window_bounds = array<i64: 1, 32>}, {transform_indices = @transform_4, window_bounds = array<i64: 16, 32>}]} {
    %c0 = arith.constant 0 : index
    %c0_0 = arith.constant 0 : index
    %0 = vector.load %arg1[%c0, %c0_0] : memref<16x32xbf16, #tpu.memory_space<vmem>>, vector<16x32xbf16>
    %c0_1 = arith.constant 0 : index
    %c0_2 = arith.constant 0 : index
    %1 = vector.load %arg2[%c0_1, %c0_2] : memref<1x32xbf16, #tpu.memory_space<vmem>>, vector<1x32xbf16>
    %2 = vector.broadcast %1 : vector<1x32xbf16> to vector<16x32xbf16>
    %3 = arith.addf %0, %2 : vector<16x32xbf16>
    %cst = arith.constant 0.000000e+00 : bf16
    %4 = vector.broadcast %cst : bf16 to vector<16x32xbf16>
    %5 = arith.cmpf oge, %3, %4 : vector<16x32xbf16>
    %cst_3 = arith.constant 2.001950e-01 : bf16
    %6 = vector.broadcast %cst_3 : bf16 to vector<16x32xbf16>
    %7 = arith.mulf %3, %6 : vector<16x32xbf16>
    %8 = arith.select %5, %3, %7 : vector<16x32xi1>, vector<16x32xbf16>
    %c0_4 = arith.constant 0 : index
    %c0_5 = arith.constant 0 : index
    %9 = vector.load %arg3[%c0_4, %c0_5] : memref<32x32xbf16, #tpu.memory_space<vmem>>, vector<32x32xbf16>
    %cst_6 = arith.constant dense<0.000000e+00> : vector<16x32xf32>
    %10 = tpu.matmul %8, %9, %cst_6 {dimension_numbers = #tpu.dot_dimension_numbers<[1], [0], [0], [1], [0, 0, 1, 1], [], []>} : vector<16x32xbf16>, vector<32x32xbf16>, vector<16x32xf32> -> vector<16x32xf32>
    %c0_7 = arith.constant 0 : index
    %c0_8 = arith.constant 0 : index
    %11 = vector.load %arg4[%c0_7, %c0_8] : memref<1x32xf32, #tpu.memory_space<vmem>>, vector<1x32xf32>
    %12 = vector.broadcast %11 : vector<1x32xf32> to vector<16x32xf32>
    %13 = arith.addf %10, %12 : vector<16x32xf32>
    %14 = arith.truncf %13 : vector<16x32xf32> to vector<16x32xbf16>
    %c0_9 = arith.constant 0 : index
    %c0_10 = arith.constant 0 : index
    %15 = vector.load %arg5[%c0_9, %c0_10] : memref<16x32xbf16, #tpu.memory_space<vmem>>, vector<16x32xbf16>
    tpu.vector_store %arg5[%c0_9, %c0_10], %14 {strides = array<i32>} : memref<16x32xbf16, #tpu.memory_space<vmem>>, vector<16x32xbf16>,
    return
  }
  func.func @transform_0(%arg0: i32) -> (i32, i32) {
    %c0_i32 = arith.constant 0 : i32
    %c0_i32_0 = arith.constant 0 : i32
    return %arg0, %c0_i32 : i32, i32
  }
  func.func @transform_1(%arg0: i32) -> (i32, i32) {
    %c0_i32 = arith.constant 0 : i32
    %c0_i32_0 = arith.constant 0 : i32
    %c0_i32_1 = arith.constant 0 : i32
    return %c0_i32, %c0_i32_0 : i32, i32
  }
  func.func @transform_2(%arg0: i32) -> (i32, i32) {
    %c0_i32 = arith.constant 0 : i32
    %c0_i32_0 = arith.constant 0 : i32
    %c0_i32_1 = arith.constant 0 : i32
    return %c0_i32, %c0_i32_0 : i32, i32
  }
  func.func @transform_3(%arg0: i32) -> (i32, i32) {
    %c0_i32 = arith.constant 0 : i32
    %c0_i32_0 = arith.constant 0 : i32
    %c0_i32_1 = arith.constant 0 : i32
    return %c0_i32, %c0_i32_0 : i32, i32
  }
  func.func @transform_4(%arg0: i32) -> (i32, i32) {
    %c0_i32 = arith.constant 0 : i32
    %c0_i32_0 = arith.constant 0 : i32
    return %arg0, %c0_i32 : i32, i32
  }
}

module attributes {stable_mosaic.version = 11 : i64} {
  func.func @_mm_kernel(%arg0: i32, %arg1: memref<16x32xbf16, #tpu.memory_space<vmem>>, %arg2: memref<1x32xbf16, #tpu.memory_space<vmem>>, %arg3: memref<32x32xbf16, #tpu.memory_space<vmem>>, %arg4: memref<1x32xf32, #tpu.memory_space<vmem>>, %arg5: memref<16x32xbf16, #tpu.memory_space<vmem>>, %arg6: memref<1x32xf32, #tpu.memory_space<vmem>>, %arg7: memref<1x32xf32, #tpu.memory_space<vmem>>) attributes {dimension_semantics = [#tpu.dimension_semantics<arbitrary>], iteration_bounds = array<i64: 2>, scalar_prefetch = 0 : i64, scratch_operands = 0 : i64, tpu.core_type = #tpu.core_type<tc>, window_params = [{transform_indices = @transform_0, window_bounds = array<i64: 16, 32>}, {pipeline_mode = #tpu.pipeline_mode<synchronous>, transform_indices = @transform_1, window_bounds = array<i64: 1, 32>}, {pipeline_mode = #tpu.pipeline_mode<synchronous>, transform_indices = @transform_2, window_bounds = array<i64: 32, 32>}, {pipeline_mode = #tpu.pipeline_mode<synchronous>, transform_indices = @transform_3, window_bounds = array<i64: 1, 32>}, {transform_indices = @transform_4, window_bounds = array<i64: 16, 32>}, {pipeline_mode = #tpu.pipeline_mode<synchronous>, transform_indices = @transform_5, window_bounds = array<i64: 1, 32>}, {pipeline_mode = #tpu.pipeline_mode<synchronous>, transform_indices = @transform_6, window_bounds = array<i64: 1, 32>}]} {
    %c0 = arith.constant 0 : index
    %c0_0 = arith.constant 0 : index
    %0 = vector.load %arg1[%c0, %c0_0] : memref<16x32xbf16, #tpu.memory_space<vmem>>, vector<16x32xbf16>
    %c0_1 = arith.constant 0 : index
    %c0_2 = arith.constant 0 : index
    %1 = vector.load %arg2[%c0_1, %c0_2] : memref<1x32xbf16, #tpu.memory_space<vmem>>, vector<1x32xbf16>
    %2 = vector.broadcast %1 : vector<1x32xbf16> to vector<16x32xbf16>
    %3 = arith.addf %0, %2 : vector<16x32xbf16>
    %cst = arith.constant 0.000000e+00 : bf16
    %4 = vector.broadcast %cst : bf16 to vector<16x32xbf16>
    %5 = arith.maximumf %3, %4 : vector<16x32xbf16>
    %c0_3 = arith.constant 0 : index
    %c0_4 = arith.constant 0 : index
    %6 = vector.load %arg3[%c0_3, %c0_4] : memref<32x32xbf16, #tpu.memory_space<vmem>>, vector<32x32xbf16>
    %cst_5 = arith.constant dense<0.000000e+00> : vector<16x32xf32>
    %7 = tpu.matmul %5, %6, %cst_5 {dimension_numbers = #tpu.dot_dimension_numbers<[1], [0], [0], [1], [0, 0, 1, 1], [], []>} : vector<16x32xbf16>, vector<32x32xbf16>, vector<16x32xf32> -> vector<16x32xf32>
    %c0_6 = arith.constant 0 : index
    %c0_7 = arith.constant 0 : index
    %8 = vector.load %arg4[%c0_6, %c0_7] : memref<1x32xf32, #tpu.memory_space<vmem>>, vector<1x32xf32>
    %9 = vector.broadcast %8 : vector<1x32xf32> to vector<16x32xf32>
    %10 = arith.addf %7, %9 : vector<16x32xf32>
    %11 = arith.truncf %10 : vector<16x32xf32> to vector<16x32xbf16>
    %c0_8 = arith.constant 0 : index
    %c0_9 = arith.constant 0 : index
    %12 = vector.load %arg5[%c0_8, %c0_9] : memref<16x32xbf16, #tpu.memory_space<vmem>>, vector<16x32xbf16>
    tpu.vector_store %arg5[%c0_8, %c0_9], %11 {strides = array<i32>} : memref<16x32xbf16, #tpu.memory_space<vmem>>, vector<16x32xbf16>,
    %c0_i32 = arith.constant 0 : i32
    %13 = arith.cmpi eq, %arg0, %c0_i32 : i32
    %14 = arith.extui %13 : i1 to i32
    %c0_i32_10 = arith.constant 0 : i32
    %15 = arith.cmpi ne, %14, %c0_i32_10 : i32
    scf.if %15 {
      %cst_21 = arith.constant 0.000000e+00 : f32
      %27 = vector.broadcast %cst_21 : f32 to vector<1x32xf32>
      %c0_22 = arith.constant 0 : index
      %c0_23 = arith.constant 0 : index
      %28 = vector.load %arg6[%c0_22, %c0_23] : memref<1x32xf32, #tpu.memory_space<vmem>>, vector<1x32xf32>
      tpu.vector_store %arg6[%c0_22, %c0_23], %27 {strides = array<i32>} : memref<1x32xf32, #tpu.memory_space<vmem>>, vector<1x32xf32>,
      %cst_24 = arith.constant 0.000000e+00 : f32
      %29 = vector.broadcast %cst_24 : f32 to vector<1x32xf32>
      %c0_25 = arith.constant 0 : index
      %c0_26 = arith.constant 0 : index
      %30 = vector.load %arg7[%c0_25, %c0_26] : memref<1x32xf32, #tpu.memory_space<vmem>>, vector<1x32xf32>
      tpu.vector_store %arg7[%c0_25, %c0_26], %29 {strides = array<i32>} : memref<1x32xf32, #tpu.memory_space<vmem>>, vector<1x32xf32>,
    } else {
    }
    %c0_11 = arith.constant 0 : index
    %c0_12 = arith.constant 0 : index
    %16 = vector.load %arg6[%c0_11, %c0_12] : memref<1x32xf32, #tpu.memory_space<vmem>>, vector<1x32xf32>
    %cst_13 = arith.constant dense<0.000000e+00> : vector<32xf32>
    %17 = vector.multi_reduction <add>, %10, %cst_13 [0] : vector<16x32xf32> to vector<32xf32>
    %18 = vector.shape_cast %17 : vector<32xf32> to vector<1x32xf32>
    %19 = arith.addf %16, %18 : vector<1x32xf32>
    %c0_14 = arith.constant 0 : index
    %c0_15 = arith.constant 0 : index
    %20 = vector.load %arg6[%c0_14, %c0_15] : memref<1x32xf32, #tpu.memory_space<vmem>>, vector<1x32xf32>
    tpu.vector_store %arg6[%c0_14, %c0_15], %19 {strides = array<i32>} : memref<1x32xf32, #tpu.memory_space<vmem>>, vector<1x32xf32>,
    %c0_16 = arith.constant 0 : index
    %c0_17 = arith.constant 0 : index
    %21 = vector.load %arg7[%c0_16, %c0_17] : memref<1x32xf32, #tpu.memory_space<vmem>>, vector<1x32xf32>
    %22 = arith.mulf %10, %10 : vector<16x32xf32>
    %cst_18 = arith.constant dense<0.000000e+00> : vector<32xf32>
    %23 = vector.multi_reduction <add>, %22, %cst_18 [0] : vector<16x32xf32> to vector<32xf32>
    %24 = vector.shape_cast %23 : vector<32xf32> to vector<1x32xf32>
    %25 = arith.addf %21, %24 : vector<1x32xf32>
    %c0_19 = arith.constant 0 : index
    %c0_20 = arith.constant 0 : index
    %26 = vector.load %arg7[%c0_19, %c0_20] : memref<1x32xf32, #tpu.memory_space<vmem>>, vector<1x32xf32>
    tpu.vector_store %arg7[%c0_19, %c0_20], %25 {strides = array<i32>} : memref<1x32xf32, #tpu.memory_space<vmem>>, vector<1x32xf32>,
    return
  }
  func.func @transform_0(%arg0: i32) -> (i32, i32) {
    %c0_i32 = arith.constant 0 : i32
    %c0_i32_0 = arith.constant 0 : i32
    return %arg0, %c0_i32 : i32, i32
  }
  func.func @transform_1(%arg0: i32) -> (i32, i32) {
    %c0_i32 = arith.constant 0 : i32
    %c0_i32_0 = arith.constant 0 : i32
    %c0_i32_1 = arith.constant 0 : i32
    return %c0_i32, %c0_i32_0 : i32, i32
  }
  func.func @transform_2(%arg0: i32) -> (i32, i32) {
    %c0_i32 = arith.constant 0 : i32
    %c0_i32_0 = arith.constant 0 : i32
    %c0_i32_1 = arith.constant 0 : i32
    return %c0_i32, %c0_i32_0 : i32, i32
  }
  func.func @transform_3(%arg0: i32) -> (i32, i32) {
    %c0_i32 = arith.constant 0 : i32
    %c0_i32_0 = arith.constant 0 : i32
    %c0_i32_1 = arith.constant 0 : i32
    return %c0_i32, %c0_i32_0 : i32, i32
  }
  func.func @transform_4(%arg0: i32) -> (i32, i32) {
    %c0_i32 = arith.constant 0 : i32
    %c0_i32_0 = arith.constant 0 : i32
    return %arg0, %c0_i32 : i32, i32
  }
  func.func @transform_5(%arg0: i32) -> (i32, i32) {
    %c0_i32 = arith.constant 0 : i32
    %c0_i32_0 = arith.constant 0 : i32
    %c0_i32_1 = arith.constant 0 : i32
    return %c0_i32, %c0_i32_0 : i32, i32
  }
  func.func @transform_6(%arg0: i32) -> (i32, i32) {
    %c0_i32 = arith.constant 0 : i32
    %c0_i32_0 = arith.constant 0 : i32
    %c0_i32_1 = arith.constant 0 : i32
    return %c0_i32, %c0_i32_0 : i32, i32
  }
}

module attributes {stable_mosaic.version = 11 : i64} {
  func.func @_up_kernel(%arg0: i32, %arg1: i32, %arg2: memref<1x1x6x32xbf16, #tpu.memory_space<vmem>>, %arg3: memref<1x1x6x32xbf16, #tpu.memory_space<vmem>>, %arg4: memref<1x1x6x32xbf16, #tpu.memory_space<vmem>>, %arg5: memref<1x32xbf16, #tpu.memory_space<vmem>>, %arg6: memref<9x32x64xbf16, #tpu.memory_space<vmem>>, %arg7: memref<1x1x6x32xbf16, #tpu.memory_space<vmem>>, %arg8: memref<1x1x6x32xbf16, #tpu.memory_space<vmem>>, %arg9: memref<1x1x6x32xbf16, #tpu.memory_space<vmem>>, %arg10: memref<1x32xbf16, #tpu.memory_space<vmem>>, %arg11: memref<9x32x64xbf16, #tpu.memory_space<vmem>>, %arg12: memref<1x2x4x32xbf16, #tpu.memory_space<vmem>>, %arg13: memref<1x64xf32, #tpu.memory_space<vmem>>, %arg14: memref<1x64xf32, #tpu.memory_space<vmem>>) attributes {dimension_semantics = [#tpu.dimension_semantics<arbitrary>, #tpu.dimension_semantics<arbitrary>], iteration_bounds = array<i64: 2, 4>, scalar_prefetch = 0 : i64, scratch_operands = 0 : i64, tpu.core_type = #tpu.core_type<tc>, window_params = [{transform_indices = @transform_0, window_bounds = array<i64: 1, 1, 6, 32>}, {transform_indices = @transform_1, window_bounds = array<i64: 1, 1, 6, 32>}, {transform_indices = @transform_2, window_bounds = array<i64: 1, 1, 6, 32>}, {pipeline_mode = #tpu.pipeline_mode<synchronous>, transform_indices = @transform_3, window_bounds = array<i64: 1, 32>}, {pipeline_mode = #tpu.pipeline_mode<synchronous>, transform_indices = @transform_4, window_bounds = array<i64: 9, 32, 64>}, {transform_indices = @transform_5, window_bounds = array<i64: 1, 1, 6, 32>}, {transform_indices = @transform_6, window_bounds = array<i64: 1, 1, 6, 32>}, {transform_indices = @transform_7, window_bounds = array<i64: 1, 1, 6, 32>}, {pipeline_mode = #tpu.pipeline_mode<synchronous>, transform_indices = @transform_8, window_bounds = array<i64: 1, 32>}, {pipeline_mode = #tpu.pipeline_mode<synchronous>, transform_indices = @transform_9, window_bounds = array<i64: 9, 32, 64>}, {transform_indices = @transform_10, window_bounds = array<i64: 1, 2, 4, 32>}, {pipeline_mode = #tpu.pipeline_mode<synchronous>, transform_indices = @transform_11, window_bounds = array<i64: 1, 64>}, {pipeline_mode = #tpu.pipeline_mode<synchronous>, transform_indices = @transform_12, window_bounds = array<i64: 1, 64>}]} {
    %c0_i32 = arith.constant 0 : i32
    %0 = arith.cmpi eq, %arg0, %c0_i32 : i32
    %c0_i32_0 = arith.constant 0 : i32
    %1 = arith.cmpi eq, %arg1, %c0_i32_0 : i32
    %2 = arith.andi %0, %1 : i1
    %3 = arith.extui %2 : i1 to i32
    %c0_i32_1 = arith.constant 0 : i32
    %4 = arith.cmpi ne, %3, %c0_i32_1 : i32
    scf.if %4 {
      %cst_116 = arith.constant 0.000000e+00 : f32
      %159 = vector.broadcast %cst_116 : f32 to vector<1x64xf32>
      %c0_117 = arith.constant 0 : index
      %c0_118 = arith.constant 0 : index
      %160 = vector.load %arg13[%c0_117, %c0_118] : memref<1x64xf32, #tpu.memory_space<vmem>>, vector<1x64xf32>
      tpu.vector_store %arg13[%c0_117, %c0_118], %159 {strides = array<i32>} : memref<1x64xf32, #tpu.memory_space<vmem>>, vector<1x64xf32>,
      %cst_119 = arith.constant 0.000000e+00 : f32
      %161 = vector.broadcast %cst_119 : f32 to vector<1x64xf32>
      %c0_120 = arith.constant 0 : index
      %c0_121 = arith.constant 0 : index
      %162 = vector.load %arg14[%c0_120, %c0_121] : memref<1x64xf32, #tpu.memory_space<vmem>>, vector<1x64xf32>
      tpu.vector_store %arg14[%c0_120, %c0_121], %161 {strides = array<i32>} : memref<1x64xf32, #tpu.memory_space<vmem>>, vector<1x64xf32>,
    } else {
    }
    %c0 = arith.constant 0 : index
    %c0_2 = arith.constant 0 : index
    %5 = vector.load %arg5[%c0, %c0_2] : memref<1x32xbf16, #tpu.memory_space<vmem>>, vector<1x32xbf16>
    %c0_3 = arith.constant 0 : index
    %c0_4 = arith.constant 0 : index
    %c0_5 = arith.constant 0 : index
    %c0_6 = arith.constant 0 : index
    %6 = vector.load %arg2[%c0_3, %c0_4, %c0_5, %c0_6] : memref<1x1x6x32xbf16, #tpu.memory_space<vmem>>, vector<1x1x6x32xbf16>
    %7 = vector.shape_cast %5 : vector<1x32xbf16> to vector<1x1x1x32xbf16>
    %8 = vector.broadcast %7 : vector<1x1x1x32xbf16> to vector<1x1x6x32xbf16>
    %9 = arith.addf %6, %8 : vector<1x1x6x32xbf16>
    %cst = arith.constant 0.000000e+00 : bf16
    %10 = vector.broadcast %cst : bf16 to vector<1x1x6x32xbf16>
    %11 = arith.maximumf %9, %10 : vector<1x1x6x32xbf16>
    %12 = vector.shape_cast %11 : vector<1x1x6x32xbf16> to vector<6x32xbf16>
    %c0_7 = arith.constant 0 : index
    %c0_8 = arith.constant 0 : index
    %c0_9 = arith.constant 0 : index
    %c0_10 = arith.constant 0 : index
    %13 = vector.load %arg3[%c0_7, %c0_8, %c0_9, %c0_10] : memref<1x1x6x32xbf16, #tpu.memory_space<vmem>>, vector<1x1x6x32xbf16>
    %14 = vector.shape_cast %5 : vector<1x32xbf16> to vector<1x1x1x32xbf16>
    %15 = vector.broadcast %14 : vector<1x1x1x32xbf16> to vector<1x1x6x32xbf16>
    %16 = arith.addf %13, %15 : vector<1x1x6x32xbf16>
    %cst_11 = arith.constant 0.000000e+00 : bf16
    %17 = vector.broadcast %cst_11 : bf16 to vector<1x1x6x32xbf16>
    %18 = arith.maximumf %16, %17 : vector<1x1x6x32xbf16>
    %19 = vector.shape_cast %18 : vector<1x1x6x32xbf16> to vector<6x32xbf16>
    %c0_12 = arith.constant 0 : index
    %c0_13 = arith.constant 0 : index
    %c0_14 = arith.constant 0 : index
    %c0_15 = arith.constant 0 : index
    %20 = vector.load %arg4[%c0_12, %c0_13, %c0_14, %c0_15] : memref<1x1x6x32xbf16, #tpu.memory_space<vmem>>, vector<1x1x6x32xbf16>
    %21 = vector.shape_cast %5 : vector<1x32xbf16> to vector<1x1x1x32xbf16>
    %22 = vector.broadcast %21 : vector<1x1x1x32xbf16> to vector<1x1x6x32xbf16>
    %23 = arith.addf %20, %22 : vector<1x1x6x32xbf16>
    %cst_16 = arith.constant 0.000000e+00 : bf16
    %24 = vector.broadcast %cst_16 : bf16 to vector<1x1x6x32xbf16>
    %25 = arith.maximumf %23, %24 : vector<1x1x6x32xbf16>
    %26 = vector.shape_cast %25 : vector<1x1x6x32xbf16> to vector<6x32xbf16>
    %27 = vector.extract_strided_slice %12 {offsets = [0, 0], sizes = [4, 32], strides = [1, 1]} : vector<6x32xbf16> to vector<4x32xbf16>
    %c0_17 = arith.constant 0 : index
    %c0_18 = arith.constant 0 : index
    %c0_19 = arith.constant 0 : index
    %28 = vector.load %arg6[%c0_17, %c0_18, %c0_19] : memref<9x32x64xbf16, #tpu.memory_space<vmem>>, vector<1x32x64xbf16>
    %29 = vector.shape_cast %28 : vector<1x32x64xbf16> to vector<32x64xbf16>
    %cst_20 = arith.constant dense<0.000000e+00> : vector<4x64xf32>
    %30 = tpu.matmul %27, %29, %cst_20 {dimension_numbers = #tpu.dot_dimension_numbers<[1], [0], [0], [1], [0, 0, 1, 1], [], []>} : vector<4x32xbf16>, vector<32x64xbf16>, vector<4x64xf32> -> vector<4x64xf32>
    %31 = vector.extract_strided_slice %12 {offsets = [1, 0], sizes = [4, 32], strides = [1, 1]} : vector<6x32xbf16> to vector<4x32xbf16>
    %c1 = arith.constant 1 : index
    %c0_21 = arith.constant 0 : index
    %c0_22 = arith.constant 0 : index
    %32 = vector.load %arg6[%c1, %c0_21, %c0_22] : memref<9x32x64xbf16, #tpu.memory_space<vmem>>, vector<1x32x64xbf16>
    %33 = vector.shape_cast %32 : vector<1x32x64xbf16> to vector<32x64xbf16>
    %cst_23 = arith.constant dense<0.000000e+00> : vector<4x64xf32>
    %34 = tpu.matmul %31, %33, %cst_23 {dimension_numbers = #tpu.dot_dimension_numbers<[1], [0], [0], [1], [0, 0, 1, 1], [], []>} : vector<4x32xbf16>, vector<32x64xbf16>, vector<4x64xf32> -> vector<4x64xf32>
    %35 = arith.addf %30, %34 : vector<4x64xf32>
    %36 = vector.extract_strided_slice %12 {offsets = [2, 0], sizes = [4, 32], strides = [1, 1]} : vector<6x32xbf16> to vector<4x32xbf16>
    %c2 = arith.constant 2 : index
    %c0_24 = arith.constant 0 : index
    %c0_25 = arith.constant 0 : index
    %37 = vector.load %arg6[%c2, %c0_24, %c0_25] : memref<9x32x64xbf16, #tpu.memory_space<vmem>>, vector<1x32x64xbf16>
    %38 = vector.shape_cast %37 : vector<1x32x64xbf16> to vector<32x64xbf16>
    %cst_26 = arith.constant dense<0.000000e+00> : vector<4x64xf32>
    %39 = tpu.matmul %36, %38, %cst_26 {dimension_numbers = #tpu.dot_dimension_numbers<[1], [0], [0], [1], [0, 0, 1, 1], [], []>} : vector<4x32xbf16>, vector<32x64xbf16>, vector<4x64xf32> -> vector<4x64xf32>
    %40 = arith.addf %35, %39 : vector<4x64xf32>
    %41 = vector.extract_strided_slice %19 {offsets = [0, 0], sizes = [4, 32], strides = [1, 1]} : vector<6x32xbf16> to vector<4x32xbf16>
    %c3 = arith.constant 3 : index
    %c0_27 = arith.constant 0 : index
    %c0_28 = arith.constant 0 : index
    %42 = vector.load %arg6[%c3, %c0_27, %c0_28] : memref<9x32x64xbf16, #tpu.memory_space<vmem>>, vector<1x32x64xbf16>
    %43 = vector.shape_cast %42 : vector<1x32x64xbf16> to vector<32x64xbf16>
    %cst_29 = arith.constant dense<0.000000e+00> : vector<4x64xf32>
    %44 = tpu.matmul %41, %43, %cst_29 {dimension_numbers = #tpu.dot_dimension_numbers<[1], [0], [0], [1], [0, 0, 1, 1], [], []>} : vector<4x32xbf16>, vector<32x64xbf16>, vector<4x64xf32> -> vector<4x64xf32>
    %45 = arith.addf %40, %44 : vector<4x64xf32>
    %46 = vector.extract_strided_slice %19 {offsets = [1, 0], sizes = [4, 32], strides = [1, 1]} : vector<6x32xbf16> to vector<4x32xbf16>
    %c4 = arith.constant 4 : index
    %c0_30 = arith.constant 0 : index
    %c0_31 = arith.constant 0 : index
    %47 = vector.load %arg6[%c4, %c0_30, %c0_31] : memref<9x32x64xbf16, #tpu.memory_space<vmem>>, vector<1x32x64xbf16>
    %48 = vector.shape_cast %47 : vector<1x32x64xbf16> to vector<32x64xbf16>
    %cst_32 = arith.constant dense<0.000000e+00> : vector<4x64xf32>
    %49 = tpu.matmul %46, %48, %cst_32 {dimension_numbers = #tpu.dot_dimension_numbers<[1], [0], [0], [1], [0, 0, 1, 1], [], []>} : vector<4x32xbf16>, vector<32x64xbf16>, vector<4x64xf32> -> vector<4x64xf32>
    %50 = arith.addf %45, %49 : vector<4x64xf32>
    %51 = vector.extract_strided_slice %19 {offsets = [2, 0], sizes = [4, 32], strides = [1, 1]} : vector<6x32xbf16> to vector<4x32xbf16>
    %c5 = arith.constant 5 : index
    %c0_33 = arith.constant 0 : index
    %c0_34 = arith.constant 0 : index
    %52 = vector.load %arg6[%c5, %c0_33, %c0_34] : memref<9x32x64xbf16, #tpu.memory_space<vmem>>, vector<1x32x64xbf16>
    %53 = vector.shape_cast %52 : vector<1x32x64xbf16> to vector<32x64xbf16>
    %cst_35 = arith.constant dense<0.000000e+00> : vector<4x64xf32>
    %54 = tpu.matmul %51, %53, %cst_35 {dimension_numbers = #tpu.dot_dimension_numbers<[1], [0], [0], [1], [0, 0, 1, 1], [], []>} : vector<4x32xbf16>, vector<32x64xbf16>, vector<4x64xf32> -> vector<4x64xf32>
    %55 = arith.addf %50, %54 : vector<4x64xf32>
    %56 = vector.extract_strided_slice %26 {offsets = [0, 0], sizes = [4, 32], strides = [1, 1]} : vector<6x32xbf16> to vector<4x32xbf16>
    %c6 = arith.constant 6 : index
    %c0_36 = arith.constant 0 : index
    %c0_37 = arith.constant 0 : index
    %57 = vector.load %arg6[%c6, %c0_36, %c0_37] : memref<9x32x64xbf16, #tpu.memory_space<vmem>>, vector<1x32x64xbf16>
    %58 = vector.shape_cast %57 : vector<1x32x64xbf16> to vector<32x64xbf16>
    %cst_38 = arith.constant dense<0.000000e+00> : vector<4x64xf32>
    %59 = tpu.matmul %56, %58, %cst_38 {dimension_numbers = #tpu.dot_dimension_numbers<[1], [0], [0], [1], [0, 0, 1, 1], [], []>} : vector<4x32xbf16>, vector<32x64xbf16>, vector<4x64xf32> -> vector<4x64xf32>
    %60 = arith.addf %55, %59 : vector<4x64xf32>
    %61 = vector.extract_strided_slice %26 {offsets = [1, 0], sizes = [4, 32], strides = [1, 1]} : vector<6x32xbf16> to vector<4x32xbf16>
    %c7 = arith.constant 7 : index
    %c0_39 = arith.constant 0 : index
    %c0_40 = arith.constant 0 : index
    %62 = vector.load %arg6[%c7, %c0_39, %c0_40] : memref<9x32x64xbf16, #tpu.memory_space<vmem>>, vector<1x32x64xbf16>
    %63 = vector.shape_cast %62 : vector<1x32x64xbf16> to vector<32x64xbf16>
    %cst_41 = arith.constant dense<0.000000e+00> : vector<4x64xf32>
    %64 = tpu.matmul %61, %63, %cst_41 {dimension_numbers = #tpu.dot_dimension_numbers<[1], [0], [0], [1], [0, 0, 1, 1], [], []>} : vector<4x32xbf16>, vector<32x64xbf16>, vector<4x64xf32> -> vector<4x64xf32>
    %65 = arith.addf %60, %64 : vector<4x64xf32>
    %66 = vector.extract_strided_slice %26 {offsets = [2, 0], sizes = [4, 32], strides = [1, 1]} : vector<6x32xbf16> to vector<4x32xbf16>
    %c8 = arith.constant 8 : index
    %c0_42 = arith.constant 0 : index
    %c0_43 = arith.constant 0 : index
    %67 = vector.load %arg6[%c8, %c0_42, %c0_43] : memref<9x32x64xbf16, #tpu.memory_space<vmem>>, vector<1x32x64xbf16>
    %68 = vector.shape_cast %67 : vector<1x32x64xbf16> to vector<32x64xbf16>
    %cst_44 = arith.constant dense<0.000000e+00> : vector<4x64xf32>
    %69 = tpu.matmul %66, %68, %cst_44 {dimension_numbers = #tpu.dot_dimension_numbers<[1], [0], [0], [1], [0, 0, 1, 1], [], []>} : vector<4x32xbf16>, vector<32x64xbf16>, vector<4x64xf32> -> vector<4x64xf32>
    %70 = arith.addf %65, %69 : vector<4x64xf32>
    %c0_45 = arith.constant 0 : index
    %c0_46 = arith.constant 0 : index
    %71 = vector.load %arg10[%c0_45, %c0_46] : memref<1x32xbf16, #tpu.memory_space<vmem>>, vector<1x32xbf16>
    %c0_47 = arith.constant 0 : index
    %c0_48 = arith.constant 0 : index
    %c0_49 = arith.constant 0 : index
    %c0_50 = arith.constant 0 : index
    %72 = vector.load %arg7[%c0_47, %c0_48, %c0_49, %c0_50] : memref<1x1x6x32xbf16, #tpu.memory_space<vmem>>, vector<1x1x6x32xbf16>
    %73 = vector.shape_cast %71 : vector<1x32xbf16> to vector<1x1x1x32xbf16>
    %74 = vector.broadcast %73 : vector<1x1x1x32xbf16> to vector<1x1x6x32xbf16>
    %75 = arith.addf %72, %74 : vector<1x1x6x32xbf16>
    %cst_51 = arith.constant 0.000000e+00 : bf16
    %76 = vector.broadcast %cst_51 : bf16 to vector<1x1x6x32xbf16>
    %77 = arith.maximumf %75, %76 : vector<1x1x6x32xbf16>
    %78 = vector.shape_cast %77 : vector<1x1x6x32xbf16> to vector<6x32xbf16>
    %c0_52 = arith.constant 0 : index
    %c0_53 = arith.constant 0 : index
    %c0_54 = arith.constant 0 : index
    %c0_55 = arith.constant 0 : index
    %79 = vector.load %arg8[%c0_52, %c0_53, %c0_54, %c0_55] : memref<1x1x6x32xbf16, #tpu.memory_space<vmem>>, vector<1x1x6x32xbf16>
    %80 = vector.shape_cast %71 : vector<1x32xbf16> to vector<1x1x1x32xbf16>
    %81 = vector.broadcast %80 : vector<1x1x1x32xbf16> to vector<1x1x6x32xbf16>
    %82 = arith.addf %79, %81 : vector<1x1x6x32xbf16>
    %cst_56 = arith.constant 0.000000e+00 : bf16
    %83 = vector.broadcast %cst_56 : bf16 to vector<1x1x6x32xbf16>
    %84 = arith.maximumf %82, %83 : vector<1x1x6x32xbf16>
    %85 = vector.shape_cast %84 : vector<1x1x6x32xbf16> to vector<6x32xbf16>
    %c0_57 = arith.constant 0 : index
    %c0_58 = arith.constant 0 : index
    %c0_59 = arith.constant 0 : index
    %c0_60 = arith.constant 0 : index
    %86 = vector.load %arg9[%c0_57, %c0_58, %c0_59, %c0_60] : memref<1x1x6x32xbf16, #tpu.memory_space<vmem>>, vector<1x1x6x32xbf16>
    %87 = vector.shape_cast %71 : vector<1x32xbf16> to vector<1x1x1x32xbf16>
    %88 = vector.broadcast %87 : vector<1x1x1x32xbf16> to vector<1x1x6x32xbf16>
    %89 = arith.addf %86, %88 : vector<1x1x6x32xbf16>
    %cst_61 = arith.constant 0.000000e+00 : bf16
    %90 = vector.broadcast %cst_61 : bf16 to vector<1x1x6x32xbf16>
    %91 = arith.maximumf %89, %90 : vector<1x1x6x32xbf16>
    %92 = vector.shape_cast %91 : vector<1x1x6x32xbf16> to vector<6x32xbf16>
    %93 = vector.extract_strided_slice %78 {offsets = [0, 0], sizes = [4, 32], strides = [1, 1]} : vector<6x32xbf16> to vector<4x32xbf16>
    %c0_62 = arith.constant 0 : index
    %c0_63 = arith.constant 0 : index
    %c0_64 = arith.constant 0 : index
    %94 = vector.load %arg11[%c0_62, %c0_63, %c0_64] : memref<9x32x64xbf16, #tpu.memory_space<vmem>>, vector<1x32x64xbf16>
    %95 = vector.shape_cast %94 : vector<1x32x64xbf16> to vector<32x64xbf16>
    %cst_65 = arith.constant dense<0.000000e+00> : vector<4x64xf32>
    %96 = tpu.matmul %93, %95, %cst_65 {dimension_numbers = #tpu.dot_dimension_numbers<[1], [0], [0], [1], [0, 0, 1, 1], [], []>} : vector<4x32xbf16>, vector<32x64xbf16>, vector<4x64xf32> -> vector<4x64xf32>
    %97 = arith.addf %70, %96 : vector<4x64xf32>
    %98 = vector.extract_strided_slice %78 {offsets = [1, 0], sizes = [4, 32], strides = [1, 1]} : vector<6x32xbf16> to vector<4x32xbf16>
    %c1_66 = arith.constant 1 : index
    %c0_67 = arith.constant 0 : index
    %c0_68 = arith.constant 0 : index
    %99 = vector.load %arg11[%c1_66, %c0_67, %c0_68] : memref<9x32x64xbf16, #tpu.memory_space<vmem>>, vector<1x32x64xbf16>
    %100 = vector.shape_cast %99 : vector<1x32x64xbf16> to vector<32x64xbf16>
    %cst_69 = arith.constant dense<0.000000e+00> : vector<4x64xf32>
    %101 = tpu.matmul %98, %100, %cst_69 {dimension_numbers = #tpu.dot_dimension_numbers<[1], [0], [0], [1], [0, 0, 1, 1], [], []>} : vector<4x32xbf16>, vector<32x64xbf16>, vector<4x64xf32> -> vector<4x64xf32>
    %102 = arith.addf %97, %101 : vector<4x64xf32>
    %103 = vector.extract_strided_slice %78 {offsets = [2, 0], sizes = [4, 32], strides = [1, 1]} : vector<6x32xbf16> to vector<4x32xbf16>
    %c2_70 = arith.constant 2 : index
    %c0_71 = arith.constant 0 : index
    %c0_72 = arith.constant 0 : index
    %104 = vector.load %arg11[%c2_70, %c0_71, %c0_72] : memref<9x32x64xbf16, #tpu.memory_space<vmem>>, vector<1x32x64xbf16>
    %105 = vector.shape_cast %104 : vector<1x32x64xbf16> to vector<32x64xbf16>
    %cst_73 = arith.constant dense<0.000000e+00> : vector<4x64xf32>
    %106 = tpu.matmul %103, %105, %cst_73 {dimension_numbers = #tpu.dot_dimension_numbers<[1], [0], [0], [1], [0, 0, 1, 1], [], []>} : vector<4x32xbf16>, vector<32x64xbf16>, vector<4x64xf32> -> vector<4x64xf32>
    %107 = arith.addf %102, %106 : vector<4x64xf32>
    %108 = vector.extract_strided_slice %85 {offsets = [0, 0], sizes = [4, 32], strides = [1, 1]} : vector<6x32xbf16> to vector<4x32xbf16>
    %c3_74 = arith.constant 3 : index
    %c0_75 = arith.constant 0 : index
    %c0_76 = arith.constant 0 : index
    %109 = vector.load %arg11[%c3_74, %c0_75, %c0_76] : memref<9x32x64xbf16, #tpu.memory_space<vmem>>, vector<1x32x64xbf16>
    %110 = vector.shape_cast %109 : vector<1x32x64xbf16> to vector<32x64xbf16>
    %cst_77 = arith.constant dense<0.000000e+00> : vector<4x64xf32>
    %111 = tpu.matmul %108, %110, %cst_77 {dimension_numbers = #tpu.dot_dimension_numbers<[1], [0], [0], [1], [0, 0, 1, 1], [], []>} : vector<4x32xbf16>, vector<32x64xbf16>, vector<4x64xf32> -> vector<4x64xf32>
    %112 = arith.addf %107, %111 : vector<4x64xf32>
    %113 = vector.extract_strided_slice %85 {offsets = [1, 0], sizes = [4, 32], strides = [1, 1]} : vector<6x32xbf16> to vector<4x32xbf16>
    %c4_78 = arith.constant 4 : index
    %c0_79 = arith.constant 0 : index
    %c0_80 = arith.constant 0 : index
    %114 = vector.load %arg11[%c4_78, %c0_79, %c0_80] : memref<9x32x64xbf16, #tpu.memory_space<vmem>>, vector<1x32x64xbf16>
    %115 = vector.shape_cast %114 : vector<1x32x64xbf16> to vector<32x64xbf16>
    %cst_81 = arith.constant dense<0.000000e+00> : vector<4x64xf32>
    %116 = tpu.matmul %113, %115, %cst_81 {dimension_numbers = #tpu.dot_dimension_numbers<[1], [0], [0], [1], [0, 0, 1, 1], [], []>} : vector<4x32xbf16>, vector<32x64xbf16>, vector<4x64xf32> -> vector<4x64xf32>
    %117 = arith.addf %112, %116 : vector<4x64xf32>
    %118 = vector.extract_strided_slice %85 {offsets = [2, 0], sizes = [4, 32], strides = [1, 1]} : vector<6x32xbf16> to vector<4x32xbf16>
    %c5_82 = arith.constant 5 : index
    %c0_83 = arith.constant 0 : index
    %c0_84 = arith.constant 0 : index
    %119 = vector.load %arg11[%c5_82, %c0_83, %c0_84] : memref<9x32x64xbf16, #tpu.memory_space<vmem>>, vector<1x32x64xbf16>
    %120 = vector.shape_cast %119 : vector<1x32x64xbf16> to vector<32x64xbf16>
    %cst_85 = arith.constant dense<0.000000e+00> : vector<4x64xf32>
    %121 = tpu.matmul %118, %120, %cst_85 {dimension_numbers = #tpu.dot_dimension_numbers<[1], [0], [0], [1], [0, 0, 1, 1], [], []>} : vector<4x32xbf16>, vector<32x64xbf16>, vector<4x64xf32> -> vector<4x64xf32>
    %122 = arith.addf %117, %121 : vector<4x64xf32>
    %123 = vector.extract_strided_slice %92 {offsets = [0, 0], sizes = [4, 32], strides = [1, 1]} : vector<6x32xbf16> to vector<4x32xbf16>
    %c6_86 = arith.constant 6 : index
    %c0_87 = arith.constant 0 : index
    %c0_88 = arith.constant 0 : index
    %124 = vector.load %arg11[%c6_86, %c0_87, %c0_88] : memref<9x32x64xbf16, #tpu.memory_space<vmem>>, vector<1x32x64xbf16>
    %125 = vector.shape_cast %124 : vector<1x32x64xbf16> to vector<32x64xbf16>
    %cst_89 = arith.constant dense<0.000000e+00> : vector<4x64xf32>
    %126 = tpu.matmul %123, %125, %cst_89 {dimension_numbers = #tpu.dot_dimension_numbers<[1], [0], [0], [1], [0, 0, 1, 1], [], []>} : vector<4x32xbf16>, vector<32x64xbf16>, vector<4x64xf32> -> vector<4x64xf32>
    %127 = arith.addf %122, %126 : vector<4x64xf32>
    %128 = vector.extract_strided_slice %92 {offsets = [1, 0], sizes = [4, 32], strides = [1, 1]} : vector<6x32xbf16> to vector<4x32xbf16>
    %c7_90 = arith.constant 7 : index
    %c0_91 = arith.constant 0 : index
    %c0_92 = arith.constant 0 : index
    %129 = vector.load %arg11[%c7_90, %c0_91, %c0_92] : memref<9x32x64xbf16, #tpu.memory_space<vmem>>, vector<1x32x64xbf16>
    %130 = vector.shape_cast %129 : vector<1x32x64xbf16> to vector<32x64xbf16>
    %cst_93 = arith.constant dense<0.000000e+00> : vector<4x64xf32>
    %131 = tpu.matmul %128, %130, %cst_93 {dimension_numbers = #tpu.dot_dimension_numbers<[1], [0], [0], [1], [0, 0, 1, 1], [], []>} : vector<4x32xbf16>, vector<32x64xbf16>, vector<4x64xf32> -> vector<4x64xf32>
    %132 = arith.addf %127, %131 : vector<4x64xf32>
    %133 = vector.extract_strided_slice %92 {offsets = [2, 0], sizes = [4, 32], strides = [1, 1]} : vector<6x32xbf16> to vector<4x32xbf16>
    %c8_94 = arith.constant 8 : index
    %c0_95 = arith.constant 0 : index
    %c0_96 = arith.constant 0 : index
    %134 = vector.load %arg11[%c8_94, %c0_95, %c0_96] : memref<9x32x64xbf16, #tpu.memory_space<vmem>>, vector<1x32x64xbf16>
    %135 = vector.shape_cast %134 : vector<1x32x64xbf16> to vector<32x64xbf16>
    %cst_97 = arith.constant dense<0.000000e+00> : vector<4x64xf32>
    %136 = tpu.matmul %133, %135, %cst_97 {dimension_numbers = #tpu.dot_dimension_numbers<[1], [0], [0], [1], [0, 0, 1, 1], [], []>} : vector<4x32xbf16>, vector<32x64xbf16>, vector<4x64xf32> -> vector<4x64xf32>
    %137 = arith.addf %132, %136 : vector<4x64xf32>
    %138 = vector.extract_strided_slice %137 {offsets = [0, 0], sizes = [4, 32], strides = [1, 1]} : vector<4x64xf32> to vector<4x32xf32>
    %139 = arith.truncf %138 : vector<4x32xf32> to vector<4x32xbf16>
    %c0_98 = arith.constant 0 : index
    %c0_99 = arith.constant 0 : index
    %c0_100 = arith.constant 0 : index
    %c0_101 = arith.constant 0 : index
    %140 = vector.load %arg12[%c0_98, %c0_99, %c0_100, %c0_101] : memref<1x2x4x32xbf16, #tpu.memory_space<vmem>>, vector<1x1x4x32xbf16>
    %141 = vector.shape_cast %140 : vector<1x1x4x32xbf16> to vector<4x32xbf16>
    %142 = vector.shape_cast %139 : vector<4x32xbf16> to vector<1x1x4x32xbf16>
    tpu.vector_store %arg12[%c0_98, %c0_99, %c0_100, %c0_101], %142 {strides = array<i32>} : memref<1x2x4x32xbf16, #tpu.memory_space<vmem>>, vector<1x1x4x32xbf16>,
    %143 = vector.extract_strided_slice %137 {offsets = [0, 32], sizes = [4, 32], strides = [1, 1]} : vector<4x64xf32> to vector<4x32xf32>
    %144 = arith.truncf %143 : vector<4x32xf32> to vector<4x32xbf16>
    %c0_102 = arith.constant 0 : index
    %c1_103 = arith.constant 1 : index
    %c0_104 = arith.constant 0 : index
    %c0_105 = arith.constant 0 : index
    %145 = vector.load %arg12[%c0_102, %c1_103, %c0_104, %c0_105] : memref<1x2x4x32xbf16, #tpu.memory_space<vmem>>, vector<1x1x4x32xbf16>
    %146 = vector.shape_cast %145 : vector<1x1x4x32xbf16> to vector<4x32xbf16>
    %147 = vector.shape_cast %144 : vector<4x32xbf16> to vector<1x1x4x32xbf16>
    tpu.vector_store %arg12[%c0_102, %c1_103, %c0_104, %c0_105], %147 {strides = array<i32>} : memref<1x2x4x32xbf16, #tpu.memory_space<vmem>>, vector<1x1x4x32xbf16>,
    %c0_106 = arith.constant 0 : index
    %c0_107 = arith.constant 0 : index
    %148 = vector.load %arg13[%c0_106, %c0_107] : memref<1x64xf32, #tpu.memory_space<vmem>>, vector<1x64xf32>
    %cst_108 = arith.constant dense<0.000000e+00> : vector<64xf32>
    %149 = vector.multi_reduction <add>, %137, %cst_108 [0] : vector<4x64xf32> to vector<64xf32>
    %150 = vector.shape_cast %149 : vector<64xf32> to vector<1x64xf32>
    %151 = arith.addf %148, %150 : vector<1x64xf32>
    %c0_109 = arith.constant 0 : index
    %c0_110 = arith.constant 0 : index
    %152 = vector.load %arg13[%c0_109, %c0_110] : memref<1x64xf32, #tpu.memory_space<vmem>>, vector<1x64xf32>
    tpu.vector_store %arg13[%c0_109, %c0_110], %151 {strides = array<i32>} : memref<1x64xf32, #tpu.memory_space<vmem>>, vector<1x64xf32>,
    %c0_111 = arith.constant 0 : index
    %c0_112 = arith.constant 0 : index
    %153 = vector.load %arg14[%c0_111, %c0_112] : memref<1x64xf32, #tpu.memory_space<vmem>>, vector<1x64xf32>
    %154 = arith.mulf %137, %137 : vector<4x64xf32>
    %cst_113 = arith.constant dense<0.000000e+00> : vector<64xf32>
    %155 = vector.multi_reduction <add>, %154, %cst_113 [0] : vector<4x64xf32> to vector<64xf32>
    %156 = vector.shape_cast %155 : vector<64xf32> to vector<1x64xf32>
    %157 = arith.addf %153, %156 : vector<1x64xf32>
    %c0_114 = arith.constant 0 : index
    %c0_115 = arith.constant 0 : index
    %158 = vector.load %arg14[%c0_114, %c0_115] : memref<1x64xf32, #tpu.memory_space<vmem>>, vector<1x64xf32>
    tpu.vector_store %arg14[%c0_114, %c0_115], %157 {strides = array<i32>} : memref<1x64xf32, #tpu.memory_space<vmem>>, vector<1x64xf32>,
    return
  }
  func.func @transform_0(%arg0: i32, %arg1: i32) -> (i32, i32, i32, i32) {
    %c0_i32 = arith.constant 0 : i32
    %0 = arith.addi %arg1, %c0_i32 : i32
    %c0_i32_0 = arith.constant 0 : i32
    %c0_i32_1 = arith.constant 0 : i32
    %c0_i32_2 = arith.constant 0 : i32
    return %arg0, %0, %c0_i32_0, %c0_i32_1 : i32, i32, i32, i32
  }
  func.func @transform_1(%arg0: i32, %arg1: i32) -> (i32, i32, i32, i32) {
    %c1_i32 = arith.constant 1 : i32
    %0 = arith.addi %arg1, %c1_i32 : i32
    %c0_i32 = arith.constant 0 : i32
    %c0_i32_0 = arith.constant 0 : i32
    %c0_i32_1 = arith.constant 0 : i32
    return %arg0, %0, %c0_i32, %c0_i32_0 : i32, i32, i32, i32
  }
  func.func @transform_2(%arg0: i32, %arg1: i32) -> (i32, i32, i32, i32) {
    %c2_i32 = arith.constant 2 : i32
    %0 = arith.addi %arg1, %c2_i32 : i32
    %c0_i32 = arith.constant 0 : i32
    %c0_i32_0 = arith.constant 0 : i32
    %c0_i32_1 = arith.constant 0 : i32
    return %arg0, %0, %c0_i32, %c0_i32_0 : i32, i32, i32, i32
  }
  func.func @transform_3(%arg0: i32, %arg1: i32) -> (i32, i32) {
    %c0_i32 = arith.constant 0 : i32
    %c0_i32_0 = arith.constant 0 : i32
    %c0_i32_1 = arith.constant 0 : i32
    return %c0_i32, %c0_i32_0 : i32, i32
  }
  func.func @transform_4(%arg0: i32, %arg1: i32) -> (i32, i32, i32) {
    %c0_i32 = arith.constant 0 : i32
    %c0_i32_0 = arith.constant 0 : i32
    %c0_i32_1 = arith.constant 0 : i32
    %c0_i32_2 = arith.constant 0 : i32
    return %c0_i32, %c0_i32_0, %c0_i32_1 : i32, i32, i32
  }
  func.func @transform_5(%arg0: i32, %arg1: i32) -> (i32, i32, i32, i32) {
    %c0_i32 = arith.constant 0 : i32
    %0 = arith.addi %arg1, %c0_i32 : i32
    %c0_i32_0 = arith.constant 0 : i32
    %c0_i32_1 = arith.constant 0 : i32
    %c0_i32_2 = arith.constant 0 : i32
    return %arg0, %0, %c0_i32_0, %c0_i32_1 : i32, i32, i32, i32
  }
  func.func @transform_6(%arg0: i32, %arg1: i32) -> (i32, i32, i32, i32) {
    %c1_i32 = arith.constant 1 : i32
    %0 = arith.addi %arg1, %c1_i32 : i32
    %c0_i32 = arith.constant 0 : i32
    %c0_i32_0 = arith.constant 0 : i32
    %c0_i32_1 = arith.constant 0 : i32
    return %arg0, %0, %c0_i32, %c0_i32_0 : i32, i32, i32, i32
  }
  func.func @transform_7(%arg0: i32, %arg1: i32) -> (i32, i32, i32, i32) {
    %c2_i32 = arith.constant 2 : i32
    %0 = arith.addi %arg1, %c2_i32 : i32
    %c0_i32 = arith.constant 0 : i32
    %c0_i32_0 = arith.constant 0 : i32
    %c0_i32_1 = arith.constant 0 : i32
    return %arg0, %0, %c0_i32, %c0_i32_0 : i32, i32, i32, i32
  }
  func.func @transform_8(%arg0: i32, %arg1: i32) -> (i32, i32) {
    %c0_i32 = arith.constant 0 : i32
    %c0_i32_0 = arith.constant 0 : i32
    %c0_i32_1 = arith.constant 0 : i32
    return %c0_i32, %c0_i32_0 : i32, i32
  }
  func.func @transform_9(%arg0: i32, %arg1: i32) -> (i32, i32, i32) {
    %c0_i32 = arith.constant 0 : i32
    %c0_i32_0 = arith.constant 0 : i32
    %c0_i32_1 = arith.constant 0 : i32
    %c0_i32_2 = arith.constant 0 : i32
    return %c0_i32, %c0_i32_0, %c0_i32_1 : i32, i32, i32
  }
  func.func @transform_10(%arg0: i32, %arg1: i32) -> (i32, i32, i32, i32) {
    %c0_i32 = arith.constant 0 : i32
    %c0_i32_0 = arith.constant 0 : i32
    %c0_i32_1 = arith.constant 0 : i32
    return %arg0, %arg1, %c0_i32, %c0_i32_0 : i32, i32, i32, i32
  }
  func.func @transform_11(%arg0: i32, %arg1: i32) -> (i32, i32) {
    %c0_i32 = arith.constant 0 : i32
    %c0_i32_0 = arith.constant 0 : i32
    %c0_i32_1 = arith.constant 0 : i32
    return %c0_i32, %c0_i32_0 : i32, i32
  }
  func.func @transform_12(%arg0: i32, %arg1: i32) -> (i32, i32) {
    %c0_i32 = arith.constant 0 : i32
    %c0_i32_0 = arith.constant 0 : i32
    %c0_i32_1 = arith.constant 0 : i32
    return %c0_i32, %c0_i32_0 : i32, i32
  }
}

module attributes {stable_mosaic.version = 11 : i64} {
  func.func @_up_kernel(%arg0: i32, %arg1: i32, %arg2: memref<1x1x10x16xbf16, #tpu.memory_space<vmem>>, %arg3: memref<1x1x10x16xbf16, #tpu.memory_space<vmem>>, %arg4: memref<1x1x10x16xbf16, #tpu.memory_space<vmem>>, %arg5: memref<1x16xbf16, #tpu.memory_space<vmem>>, %arg6: memref<9x16x32xbf16, #tpu.memory_space<vmem>>, %arg7: memref<1x1x10x16xbf16, #tpu.memory_space<vmem>>, %arg8: memref<1x1x10x16xbf16, #tpu.memory_space<vmem>>, %arg9: memref<1x1x10x16xbf16, #tpu.memory_space<vmem>>, %arg10: memref<1x16xbf16, #tpu.memory_space<vmem>>, %arg11: memref<9x16x32xbf16, #tpu.memory_space<vmem>>, %arg12: memref<1x2x8x16xbf16, #tpu.memory_space<vmem>>, %arg13: memref<1x32xf32, #tpu.memory_space<vmem>>, %arg14: memref<1x32xf32, #tpu.memory_space<vmem>>) attributes {dimension_semantics = [#tpu.dimension_semantics<arbitrary>, #tpu.dimension_semantics<arbitrary>], iteration_bounds = array<i64: 2, 8>, scalar_prefetch = 0 : i64, scratch_operands = 0 : i64, tpu.core_type = #tpu.core_type<tc>, window_params = [{transform_indices = @transform_0, window_bounds = array<i64: 1, 1, 10, 16>}, {transform_indices = @transform_1, window_bounds = array<i64: 1, 1, 10, 16>}, {transform_indices = @transform_2, window_bounds = array<i64: 1, 1, 10, 16>}, {pipeline_mode = #tpu.pipeline_mode<synchronous>, transform_indices = @transform_3, window_bounds = array<i64: 1, 16>}, {pipeline_mode = #tpu.pipeline_mode<synchronous>, transform_indices = @transform_4, window_bounds = array<i64: 9, 16, 32>}, {transform_indices = @transform_5, window_bounds = array<i64: 1, 1, 10, 16>}, {transform_indices = @transform_6, window_bounds = array<i64: 1, 1, 10, 16>}, {transform_indices = @transform_7, window_bounds = array<i64: 1, 1, 10, 16>}, {pipeline_mode = #tpu.pipeline_mode<synchronous>, transform_indices = @transform_8, window_bounds = array<i64: 1, 16>}, {pipeline_mode = #tpu.pipeline_mode<synchronous>, transform_indices = @transform_9, window_bounds = array<i64: 9, 16, 32>}, {transform_indices = @transform_10, window_bounds = array<i64: 1, 2, 8, 16>}, {pipeline_mode = #tpu.pipeline_mode<synchronous>, transform_indices = @transform_11, window_bounds = array<i64: 1, 32>}, {pipeline_mode = #tpu.pipeline_mode<synchronous>, transform_indices = @transform_12, window_bounds = array<i64: 1, 32>}]} {
    %c0_i32 = arith.constant 0 : i32
    %0 = arith.cmpi eq, %arg0, %c0_i32 : i32
    %c0_i32_0 = arith.constant 0 : i32
    %1 = arith.cmpi eq, %arg1, %c0_i32_0 : i32
    %2 = arith.andi %0, %1 : i1
    %3 = arith.extui %2 : i1 to i32
    %c0_i32_1 = arith.constant 0 : i32
    %4 = arith.cmpi ne, %3, %c0_i32_1 : i32
    scf.if %4 {
      %cst_116 = arith.constant 0.000000e+00 : f32
      %159 = vector.broadcast %cst_116 : f32 to vector<1x32xf32>
      %c0_117 = arith.constant 0 : index
      %c0_118 = arith.constant 0 : index
      %160 = vector.load %arg13[%c0_117, %c0_118] : memref<1x32xf32, #tpu.memory_space<vmem>>, vector<1x32xf32>
      tpu.vector_store %arg13[%c0_117, %c0_118], %159 {strides = array<i32>} : memref<1x32xf32, #tpu.memory_space<vmem>>, vector<1x32xf32>,
      %cst_119 = arith.constant 0.000000e+00 : f32
      %161 = vector.broadcast %cst_119 : f32 to vector<1x32xf32>
      %c0_120 = arith.constant 0 : index
      %c0_121 = arith.constant 0 : index
      %162 = vector.load %arg14[%c0_120, %c0_121] : memref<1x32xf32, #tpu.memory_space<vmem>>, vector<1x32xf32>
      tpu.vector_store %arg14[%c0_120, %c0_121], %161 {strides = array<i32>} : memref<1x32xf32, #tpu.memory_space<vmem>>, vector<1x32xf32>,
    } else {
    }
    %c0 = arith.constant 0 : index
    %c0_2 = arith.constant 0 : index
    %5 = vector.load %arg5[%c0, %c0_2] : memref<1x16xbf16, #tpu.memory_space<vmem>>, vector<1x16xbf16>
    %c0_3 = arith.constant 0 : index
    %c0_4 = arith.constant 0 : index
    %c0_5 = arith.constant 0 : index
    %c0_6 = arith.constant 0 : index
    %6 = vector.load %arg2[%c0_3, %c0_4, %c0_5, %c0_6] : memref<1x1x10x16xbf16, #tpu.memory_space<vmem>>, vector<1x1x10x16xbf16>
    %7 = vector.shape_cast %5 : vector<1x16xbf16> to vector<1x1x1x16xbf16>
    %8 = vector.broadcast %7 : vector<1x1x1x16xbf16> to vector<1x1x10x16xbf16>
    %9 = arith.addf %6, %8 : vector<1x1x10x16xbf16>
    %cst = arith.constant 0.000000e+00 : bf16
    %10 = vector.broadcast %cst : bf16 to vector<1x1x10x16xbf16>
    %11 = arith.maximumf %9, %10 : vector<1x1x10x16xbf16>
    %12 = vector.shape_cast %11 : vector<1x1x10x16xbf16> to vector<10x16xbf16>
    %c0_7 = arith.constant 0 : index
    %c0_8 = arith.constant 0 : index
    %c0_9 = arith.constant 0 : index
    %c0_10 = arith.constant 0 : index
    %13 = vector.load %arg3[%c0_7, %c0_8, %c0_9, %c0_10] : memref<1x1x10x16xbf16, #tpu.memory_space<vmem>>, vector<1x1x10x16xbf16>
    %14 = vector.shape_cast %5 : vector<1x16xbf16> to vector<1x1x1x16xbf16>
    %15 = vector.broadcast %14 : vector<1x1x1x16xbf16> to vector<1x1x10x16xbf16>
    %16 = arith.addf %13, %15 : vector<1x1x10x16xbf16>
    %cst_11 = arith.constant 0.000000e+00 : bf16
    %17 = vector.broadcast %cst_11 : bf16 to vector<1x1x10x16xbf16>
    %18 = arith.maximumf %16, %17 : vector<1x1x10x16xbf16>
    %19 = vector.shape_cast %18 : vector<1x1x10x16xbf16> to vector<10x16xbf16>
    %c0_12 = arith.constant 0 : index
    %c0_13 = arith.constant 0 : index
    %c0_14 = arith.constant 0 : index
    %c0_15 = arith.constant 0 : index
    %20 = vector.load %arg4[%c0_12, %c0_13, %c0_14, %c0_15] : memref<1x1x10x16xbf16, #tpu.memory_space<vmem>>, vector<1x1x10x16xbf16>
    %21 = vector.shape_cast %5 : vector<1x16xbf16> to vector<1x1x1x16xbf16>
    %22 = vector.broadcast %21 : vector<1x1x1x16xbf16> to vector<1x1x10x16xbf16>
    %23 = arith.addf %20, %22 : vector<1x1x10x16xbf16>
    %cst_16 = arith.constant 0.000000e+00 : bf16
    %24 = vector.broadcast %cst_16 : bf16 to vector<1x1x10x16xbf16>
    %25 = arith.maximumf %23, %24 : vector<1x1x10x16xbf16>
    %26 = vector.shape_cast %25 : vector<1x1x10x16xbf16> to vector<10x16xbf16>
    %27 = vector.extract_strided_slice %12 {offsets = [0, 0], sizes = [8, 16], strides = [1, 1]} : vector<10x16xbf16> to vector<8x16xbf16>
    %c0_17 = arith.constant 0 : index
    %c0_18 = arith.constant 0 : index
    %c0_19 = arith.constant 0 : index
    %28 = vector.load %arg6[%c0_17, %c0_18, %c0_19] : memref<9x16x32xbf16, #tpu.memory_space<vmem>>, vector<1x16x32xbf16>
    %29 = vector.shape_cast %28 : vector<1x16x32xbf16> to vector<16x32xbf16>
    %cst_20 = arith.constant dense<0.000000e+00> : vector<8x32xf32>
    %30 = tpu.matmul %27, %29, %cst_20 {dimension_numbers = #tpu.dot_dimension_numbers<[1], [0], [0], [1], [0, 0, 1, 1], [], []>} : vector<8x16xbf16>, vector<16x32xbf16>, vector<8x32xf32> -> vector<8x32xf32>
    %31 = vector.extract_strided_slice %12 {offsets = [1, 0], sizes = [8, 16], strides = [1, 1]} : vector<10x16xbf16> to vector<8x16xbf16>
    %c1 = arith.constant 1 : index
    %c0_21 = arith.constant 0 : index
    %c0_22 = arith.constant 0 : index
    %32 = vector.load %arg6[%c1, %c0_21, %c0_22] : memref<9x16x32xbf16, #tpu.memory_space<vmem>>, vector<1x16x32xbf16>
    %33 = vector.shape_cast %32 : vector<1x16x32xbf16> to vector<16x32xbf16>
    %cst_23 = arith.constant dense<0.000000e+00> : vector<8x32xf32>
    %34 = tpu.matmul %31, %33, %cst_23 {dimension_numbers = #tpu.dot_dimension_numbers<[1], [0], [0], [1], [0, 0, 1, 1], [], []>} : vector<8x16xbf16>, vector<16x32xbf16>, vector<8x32xf32> -> vector<8x32xf32>
    %35 = arith.addf %30, %34 : vector<8x32xf32>
    %36 = vector.extract_strided_slice %12 {offsets = [2, 0], sizes = [8, 16], strides = [1, 1]} : vector<10x16xbf16> to vector<8x16xbf16>
    %c2 = arith.constant 2 : index
    %c0_24 = arith.constant 0 : index
    %c0_25 = arith.constant 0 : index
    %37 = vector.load %arg6[%c2, %c0_24, %c0_25] : memref<9x16x32xbf16, #tpu.memory_space<vmem>>, vector<1x16x32xbf16>
    %38 = vector.shape_cast %37 : vector<1x16x32xbf16> to vector<16x32xbf16>
    %cst_26 = arith.constant dense<0.000000e+00> : vector<8x32xf32>
    %39 = tpu.matmul %36, %38, %cst_26 {dimension_numbers = #tpu.dot_dimension_numbers<[1], [0], [0], [1], [0, 0, 1, 1], [], []>} : vector<8x16xbf16>, vector<16x32xbf16>, vector<8x32xf32> -> vector<8x32xf32>
    %40 = arith.addf %35, %39 : vector<8x32xf32>
    %41 = vector.extract_strided_slice %19 {offsets = [0, 0], sizes = [8, 16], strides = [1, 1]} : vector<10x16xbf16> to vector<8x16xbf16>
    %c3 = arith.constant 3 : index
    %c0_27 = arith.constant 0 : index
    %c0_28 = arith.constant 0 : index
    %42 = vector.load %arg6[%c3, %c0_27, %c0_28] : memref<9x16x32xbf16, #tpu.memory_space<vmem>>, vector<1x16x32xbf16>
    %43 = vector.shape_cast %42 : vector<1x16x32xbf16> to vector<16x32xbf16>
    %cst_29 = arith.constant dense<0.000000e+00> : vector<8x32xf32>
    %44 = tpu.matmul %41, %43, %cst_29 {dimension_numbers = #tpu.dot_dimension_numbers<[1], [0], [0], [1], [0, 0, 1, 1], [], []>} : vector<8x16xbf16>, vector<16x32xbf16>, vector<8x32xf32> -> vector<8x32xf32>
    %45 = arith.addf %40, %44 : vector<8x32xf32>
    %46 = vector.extract_strided_slice %19 {offsets = [1, 0], sizes = [8, 16], strides = [1, 1]} : vector<10x16xbf16> to vector<8x16xbf16>
    %c4 = arith.constant 4 : index
    %c0_30 = arith.constant 0 : index
    %c0_31 = arith.constant 0 : index
    %47 = vector.load %arg6[%c4, %c0_30, %c0_31] : memref<9x16x32xbf16, #tpu.memory_space<vmem>>, vector<1x16x32xbf16>
    %48 = vector.shape_cast %47 : vector<1x16x32xbf16> to vector<16x32xbf16>
    %cst_32 = arith.constant dense<0.000000e+00> : vector<8x32xf32>
    %49 = tpu.matmul %46, %48, %cst_32 {dimension_numbers = #tpu.dot_dimension_numbers<[1], [0], [0], [1], [0, 0, 1, 1], [], []>} : vector<8x16xbf16>, vector<16x32xbf16>, vector<8x32xf32> -> vector<8x32xf32>
    %50 = arith.addf %45, %49 : vector<8x32xf32>
    %51 = vector.extract_strided_slice %19 {offsets = [2, 0], sizes = [8, 16], strides = [1, 1]} : vector<10x16xbf16> to vector<8x16xbf16>
    %c5 = arith.constant 5 : index
    %c0_33 = arith.constant 0 : index
    %c0_34 = arith.constant 0 : index
    %52 = vector.load %arg6[%c5, %c0_33, %c0_34] : memref<9x16x32xbf16, #tpu.memory_space<vmem>>, vector<1x16x32xbf16>
    %53 = vector.shape_cast %52 : vector<1x16x32xbf16> to vector<16x32xbf16>
    %cst_35 = arith.constant dense<0.000000e+00> : vector<8x32xf32>
    %54 = tpu.matmul %51, %53, %cst_35 {dimension_numbers = #tpu.dot_dimension_numbers<[1], [0], [0], [1], [0, 0, 1, 1], [], []>} : vector<8x16xbf16>, vector<16x32xbf16>, vector<8x32xf32> -> vector<8x32xf32>
    %55 = arith.addf %50, %54 : vector<8x32xf32>
    %56 = vector.extract_strided_slice %26 {offsets = [0, 0], sizes = [8, 16], strides = [1, 1]} : vector<10x16xbf16> to vector<8x16xbf16>
    %c6 = arith.constant 6 : index
    %c0_36 = arith.constant 0 : index
    %c0_37 = arith.constant 0 : index
    %57 = vector.load %arg6[%c6, %c0_36, %c0_37] : memref<9x16x32xbf16, #tpu.memory_space<vmem>>, vector<1x16x32xbf16>
    %58 = vector.shape_cast %57 : vector<1x16x32xbf16> to vector<16x32xbf16>
    %cst_38 = arith.constant dense<0.000000e+00> : vector<8x32xf32>
    %59 = tpu.matmul %56, %58, %cst_38 {dimension_numbers = #tpu.dot_dimension_numbers<[1], [0], [0], [1], [0, 0, 1, 1], [], []>} : vector<8x16xbf16>, vector<16x32xbf16>, vector<8x32xf32> -> vector<8x32xf32>
    %60 = arith.addf %55, %59 : vector<8x32xf32>
    %61 = vector.extract_strided_slice %26 {offsets = [1, 0], sizes = [8, 16], strides = [1, 1]} : vector<10x16xbf16> to vector<8x16xbf16>
    %c7 = arith.constant 7 : index
    %c0_39 = arith.constant 0 : index
    %c0_40 = arith.constant 0 : index
    %62 = vector.load %arg6[%c7, %c0_39, %c0_40] : memref<9x16x32xbf16, #tpu.memory_space<vmem>>, vector<1x16x32xbf16>
    %63 = vector.shape_cast %62 : vector<1x16x32xbf16> to vector<16x32xbf16>
    %cst_41 = arith.constant dense<0.000000e+00> : vector<8x32xf32>
    %64 = tpu.matmul %61, %63, %cst_41 {dimension_numbers = #tpu.dot_dimension_numbers<[1], [0], [0], [1], [0, 0, 1, 1], [], []>} : vector<8x16xbf16>, vector<16x32xbf16>, vector<8x32xf32> -> vector<8x32xf32>
    %65 = arith.addf %60, %64 : vector<8x32xf32>
    %66 = vector.extract_strided_slice %26 {offsets = [2, 0], sizes = [8, 16], strides = [1, 1]} : vector<10x16xbf16> to vector<8x16xbf16>
    %c8 = arith.constant 8 : index
    %c0_42 = arith.constant 0 : index
    %c0_43 = arith.constant 0 : index
    %67 = vector.load %arg6[%c8, %c0_42, %c0_43] : memref<9x16x32xbf16, #tpu.memory_space<vmem>>, vector<1x16x32xbf16>
    %68 = vector.shape_cast %67 : vector<1x16x32xbf16> to vector<16x32xbf16>
    %cst_44 = arith.constant dense<0.000000e+00> : vector<8x32xf32>
    %69 = tpu.matmul %66, %68, %cst_44 {dimension_numbers = #tpu.dot_dimension_numbers<[1], [0], [0], [1], [0, 0, 1, 1], [], []>} : vector<8x16xbf16>, vector<16x32xbf16>, vector<8x32xf32> -> vector<8x32xf32>
    %70 = arith.addf %65, %69 : vector<8x32xf32>
    %c0_45 = arith.constant 0 : index
    %c0_46 = arith.constant 0 : index
    %71 = vector.load %arg10[%c0_45, %c0_46] : memref<1x16xbf16, #tpu.memory_space<vmem>>, vector<1x16xbf16>
    %c0_47 = arith.constant 0 : index
    %c0_48 = arith.constant 0 : index
    %c0_49 = arith.constant 0 : index
    %c0_50 = arith.constant 0 : index
    %72 = vector.load %arg7[%c0_47, %c0_48, %c0_49, %c0_50] : memref<1x1x10x16xbf16, #tpu.memory_space<vmem>>, vector<1x1x10x16xbf16>
    %73 = vector.shape_cast %71 : vector<1x16xbf16> to vector<1x1x1x16xbf16>
    %74 = vector.broadcast %73 : vector<1x1x1x16xbf16> to vector<1x1x10x16xbf16>
    %75 = arith.addf %72, %74 : vector<1x1x10x16xbf16>
    %cst_51 = arith.constant 0.000000e+00 : bf16
    %76 = vector.broadcast %cst_51 : bf16 to vector<1x1x10x16xbf16>
    %77 = arith.maximumf %75, %76 : vector<1x1x10x16xbf16>
    %78 = vector.shape_cast %77 : vector<1x1x10x16xbf16> to vector<10x16xbf16>
    %c0_52 = arith.constant 0 : index
    %c0_53 = arith.constant 0 : index
    %c0_54 = arith.constant 0 : index
    %c0_55 = arith.constant 0 : index
    %79 = vector.load %arg8[%c0_52, %c0_53, %c0_54, %c0_55] : memref<1x1x10x16xbf16, #tpu.memory_space<vmem>>, vector<1x1x10x16xbf16>
    %80 = vector.shape_cast %71 : vector<1x16xbf16> to vector<1x1x1x16xbf16>
    %81 = vector.broadcast %80 : vector<1x1x1x16xbf16> to vector<1x1x10x16xbf16>
    %82 = arith.addf %79, %81 : vector<1x1x10x16xbf16>
    %cst_56 = arith.constant 0.000000e+00 : bf16
    %83 = vector.broadcast %cst_56 : bf16 to vector<1x1x10x16xbf16>
    %84 = arith.maximumf %82, %83 : vector<1x1x10x16xbf16>
    %85 = vector.shape_cast %84 : vector<1x1x10x16xbf16> to vector<10x16xbf16>
    %c0_57 = arith.constant 0 : index
    %c0_58 = arith.constant 0 : index
    %c0_59 = arith.constant 0 : index
    %c0_60 = arith.constant 0 : index
    %86 = vector.load %arg9[%c0_57, %c0_58, %c0_59, %c0_60] : memref<1x1x10x16xbf16, #tpu.memory_space<vmem>>, vector<1x1x10x16xbf16>
    %87 = vector.shape_cast %71 : vector<1x16xbf16> to vector<1x1x1x16xbf16>
    %88 = vector.broadcast %87 : vector<1x1x1x16xbf16> to vector<1x1x10x16xbf16>
    %89 = arith.addf %86, %88 : vector<1x1x10x16xbf16>
    %cst_61 = arith.constant 0.000000e+00 : bf16
    %90 = vector.broadcast %cst_61 : bf16 to vector<1x1x10x16xbf16>
    %91 = arith.maximumf %89, %90 : vector<1x1x10x16xbf16>
    %92 = vector.shape_cast %91 : vector<1x1x10x16xbf16> to vector<10x16xbf16>
    %93 = vector.extract_strided_slice %78 {offsets = [0, 0], sizes = [8, 16], strides = [1, 1]} : vector<10x16xbf16> to vector<8x16xbf16>
    %c0_62 = arith.constant 0 : index
    %c0_63 = arith.constant 0 : index
    %c0_64 = arith.constant 0 : index
    %94 = vector.load %arg11[%c0_62, %c0_63, %c0_64] : memref<9x16x32xbf16, #tpu.memory_space<vmem>>, vector<1x16x32xbf16>
    %95 = vector.shape_cast %94 : vector<1x16x32xbf16> to vector<16x32xbf16>
    %cst_65 = arith.constant dense<0.000000e+00> : vector<8x32xf32>
    %96 = tpu.matmul %93, %95, %cst_65 {dimension_numbers = #tpu.dot_dimension_numbers<[1], [0], [0], [1], [0, 0, 1, 1], [], []>} : vector<8x16xbf16>, vector<16x32xbf16>, vector<8x32xf32> -> vector<8x32xf32>
    %97 = arith.addf %70, %96 : vector<8x32xf32>
    %98 = vector.extract_strided_slice %78 {offsets = [1, 0], sizes = [8, 16], strides = [1, 1]} : vector<10x16xbf16> to vector<8x16xbf16>
    %c1_66 = arith.constant 1 : index
    %c0_67 = arith.constant 0 : index
    %c0_68 = arith.constant 0 : index
    %99 = vector.load %arg11[%c1_66, %c0_67, %c0_68] : memref<9x16x32xbf16, #tpu.memory_space<vmem>>, vector<1x16x32xbf16>
    %100 = vector.shape_cast %99 : vector<1x16x32xbf16> to vector<16x32xbf16>
    %cst_69 = arith.constant dense<0.000000e+00> : vector<8x32xf32>
    %101 = tpu.matmul %98, %100, %cst_69 {dimension_numbers = #tpu.dot_dimension_numbers<[1], [0], [0], [1], [0, 0, 1, 1], [], []>} : vector<8x16xbf16>, vector<16x32xbf16>, vector<8x32xf32> -> vector<8x32xf32>
    %102 = arith.addf %97, %101 : vector<8x32xf32>
    %103 = vector.extract_strided_slice %78 {offsets = [2, 0], sizes = [8, 16], strides = [1, 1]} : vector<10x16xbf16> to vector<8x16xbf16>
    %c2_70 = arith.constant 2 : index
    %c0_71 = arith.constant 0 : index
    %c0_72 = arith.constant 0 : index
    %104 = vector.load %arg11[%c2_70, %c0_71, %c0_72] : memref<9x16x32xbf16, #tpu.memory_space<vmem>>, vector<1x16x32xbf16>
    %105 = vector.shape_cast %104 : vector<1x16x32xbf16> to vector<16x32xbf16>
    %cst_73 = arith.constant dense<0.000000e+00> : vector<8x32xf32>
    %106 = tpu.matmul %103, %105, %cst_73 {dimension_numbers = #tpu.dot_dimension_numbers<[1], [0], [0], [1], [0, 0, 1, 1], [], []>} : vector<8x16xbf16>, vector<16x32xbf16>, vector<8x32xf32> -> vector<8x32xf32>
    %107 = arith.addf %102, %106 : vector<8x32xf32>
    %108 = vector.extract_strided_slice %85 {offsets = [0, 0], sizes = [8, 16], strides = [1, 1]} : vector<10x16xbf16> to vector<8x16xbf16>
    %c3_74 = arith.constant 3 : index
    %c0_75 = arith.constant 0 : index
    %c0_76 = arith.constant 0 : index
    %109 = vector.load %arg11[%c3_74, %c0_75, %c0_76] : memref<9x16x32xbf16, #tpu.memory_space<vmem>>, vector<1x16x32xbf16>
    %110 = vector.shape_cast %109 : vector<1x16x32xbf16> to vector<16x32xbf16>
    %cst_77 = arith.constant dense<0.000000e+00> : vector<8x32xf32>
    %111 = tpu.matmul %108, %110, %cst_77 {dimension_numbers = #tpu.dot_dimension_numbers<[1], [0], [0], [1], [0, 0, 1, 1], [], []>} : vector<8x16xbf16>, vector<16x32xbf16>, vector<8x32xf32> -> vector<8x32xf32>
    %112 = arith.addf %107, %111 : vector<8x32xf32>
    %113 = vector.extract_strided_slice %85 {offsets = [1, 0], sizes = [8, 16], strides = [1, 1]} : vector<10x16xbf16> to vector<8x16xbf16>
    %c4_78 = arith.constant 4 : index
    %c0_79 = arith.constant 0 : index
    %c0_80 = arith.constant 0 : index
    %114 = vector.load %arg11[%c4_78, %c0_79, %c0_80] : memref<9x16x32xbf16, #tpu.memory_space<vmem>>, vector<1x16x32xbf16>
    %115 = vector.shape_cast %114 : vector<1x16x32xbf16> to vector<16x32xbf16>
    %cst_81 = arith.constant dense<0.000000e+00> : vector<8x32xf32>
    %116 = tpu.matmul %113, %115, %cst_81 {dimension_numbers = #tpu.dot_dimension_numbers<[1], [0], [0], [1], [0, 0, 1, 1], [], []>} : vector<8x16xbf16>, vector<16x32xbf16>, vector<8x32xf32> -> vector<8x32xf32>
    %117 = arith.addf %112, %116 : vector<8x32xf32>
    %118 = vector.extract_strided_slice %85 {offsets = [2, 0], sizes = [8, 16], strides = [1, 1]} : vector<10x16xbf16> to vector<8x16xbf16>
    %c5_82 = arith.constant 5 : index
    %c0_83 = arith.constant 0 : index
    %c0_84 = arith.constant 0 : index
    %119 = vector.load %arg11[%c5_82, %c0_83, %c0_84] : memref<9x16x32xbf16, #tpu.memory_space<vmem>>, vector<1x16x32xbf16>
    %120 = vector.shape_cast %119 : vector<1x16x32xbf16> to vector<16x32xbf16>
    %cst_85 = arith.constant dense<0.000000e+00> : vector<8x32xf32>
    %121 = tpu.matmul %118, %120, %cst_85 {dimension_numbers = #tpu.dot_dimension_numbers<[1], [0], [0], [1], [0, 0, 1, 1], [], []>} : vector<8x16xbf16>, vector<16x32xbf16>, vector<8x32xf32> -> vector<8x32xf32>
    %122 = arith.addf %117, %121 : vector<8x32xf32>
    %123 = vector.extract_strided_slice %92 {offsets = [0, 0], sizes = [8, 16], strides = [1, 1]} : vector<10x16xbf16> to vector<8x16xbf16>
    %c6_86 = arith.constant 6 : index
    %c0_87 = arith.constant 0 : index
    %c0_88 = arith.constant 0 : index
    %124 = vector.load %arg11[%c6_86, %c0_87, %c0_88] : memref<9x16x32xbf16, #tpu.memory_space<vmem>>, vector<1x16x32xbf16>
    %125 = vector.shape_cast %124 : vector<1x16x32xbf16> to vector<16x32xbf16>
    %cst_89 = arith.constant dense<0.000000e+00> : vector<8x32xf32>
    %126 = tpu.matmul %123, %125, %cst_89 {dimension_numbers = #tpu.dot_dimension_numbers<[1], [0], [0], [1], [0, 0, 1, 1], [], []>} : vector<8x16xbf16>, vector<16x32xbf16>, vector<8x32xf32> -> vector<8x32xf32>
    %127 = arith.addf %122, %126 : vector<8x32xf32>
    %128 = vector.extract_strided_slice %92 {offsets = [1, 0], sizes = [8, 16], strides = [1, 1]} : vector<10x16xbf16> to vector<8x16xbf16>
    %c7_90 = arith.constant 7 : index
    %c0_91 = arith.constant 0 : index
    %c0_92 = arith.constant 0 : index
    %129 = vector.load %arg11[%c7_90, %c0_91, %c0_92] : memref<9x16x32xbf16, #tpu.memory_space<vmem>>, vector<1x16x32xbf16>
    %130 = vector.shape_cast %129 : vector<1x16x32xbf16> to vector<16x32xbf16>
    %cst_93 = arith.constant dense<0.000000e+00> : vector<8x32xf32>
    %131 = tpu.matmul %128, %130, %cst_93 {dimension_numbers = #tpu.dot_dimension_numbers<[1], [0], [0], [1], [0, 0, 1, 1], [], []>} : vector<8x16xbf16>, vector<16x32xbf16>, vector<8x32xf32> -> vector<8x32xf32>
    %132 = arith.addf %127, %131 : vector<8x32xf32>
    %133 = vector.extract_strided_slice %92 {offsets = [2, 0], sizes = [8, 16], strides = [1, 1]} : vector<10x16xbf16> to vector<8x16xbf16>
    %c8_94 = arith.constant 8 : index
    %c0_95 = arith.constant 0 : index
    %c0_96 = arith.constant 0 : index
    %134 = vector.load %arg11[%c8_94, %c0_95, %c0_96] : memref<9x16x32xbf16, #tpu.memory_space<vmem>>, vector<1x16x32xbf16>
    %135 = vector.shape_cast %134 : vector<1x16x32xbf16> to vector<16x32xbf16>
    %cst_97 = arith.constant dense<0.000000e+00> : vector<8x32xf32>
    %136 = tpu.matmul %133, %135, %cst_97 {dimension_numbers = #tpu.dot_dimension_numbers<[1], [0], [0], [1], [0, 0, 1, 1], [], []>} : vector<8x16xbf16>, vector<16x32xbf16>, vector<8x32xf32> -> vector<8x32xf32>
    %137 = arith.addf %132, %136 : vector<8x32xf32>
    %138 = vector.extract_strided_slice %137 {offsets = [0, 0], sizes = [8, 16], strides = [1, 1]} : vector<8x32xf32> to vector<8x16xf32>
    %139 = arith.truncf %138 : vector<8x16xf32> to vector<8x16xbf16>
    %c0_98 = arith.constant 0 : index
    %c0_99 = arith.constant 0 : index
    %c0_100 = arith.constant 0 : index
    %c0_101 = arith.constant 0 : index
    %140 = vector.load %arg12[%c0_98, %c0_99, %c0_100, %c0_101] : memref<1x2x8x16xbf16, #tpu.memory_space<vmem>>, vector<1x1x8x16xbf16>
    %141 = vector.shape_cast %140 : vector<1x1x8x16xbf16> to vector<8x16xbf16>
    %142 = vector.shape_cast %139 : vector<8x16xbf16> to vector<1x1x8x16xbf16>
    tpu.vector_store %arg12[%c0_98, %c0_99, %c0_100, %c0_101], %142 {strides = array<i32>} : memref<1x2x8x16xbf16, #tpu.memory_space<vmem>>, vector<1x1x8x16xbf16>,
    %143 = vector.extract_strided_slice %137 {offsets = [0, 16], sizes = [8, 16], strides = [1, 1]} : vector<8x32xf32> to vector<8x16xf32>
    %144 = arith.truncf %143 : vector<8x16xf32> to vector<8x16xbf16>
    %c0_102 = arith.constant 0 : index
    %c1_103 = arith.constant 1 : index
    %c0_104 = arith.constant 0 : index
    %c0_105 = arith.constant 0 : index
    %145 = vector.load %arg12[%c0_102, %c1_103, %c0_104, %c0_105] : memref<1x2x8x16xbf16, #tpu.memory_space<vmem>>, vector<1x1x8x16xbf16>
    %146 = vector.shape_cast %145 : vector<1x1x8x16xbf16> to vector<8x16xbf16>
    %147 = vector.shape_cast %144 : vector<8x16xbf16> to vector<1x1x8x16xbf16>
    tpu.vector_store %arg12[%c0_102, %c1_103, %c0_104, %c0_105], %147 {strides = array<i32>} : memref<1x2x8x16xbf16, #tpu.memory_space<vmem>>, vector<1x1x8x16xbf16>,
    %c0_106 = arith.constant 0 : index
    %c0_107 = arith.constant 0 : index
    %148 = vector.load %arg13[%c0_106, %c0_107] : memref<1x32xf32, #tpu.memory_space<vmem>>, vector<1x32xf32>
    %cst_108 = arith.constant dense<0.000000e+00> : vector<32xf32>
    %149 = vector.multi_reduction <add>, %137, %cst_108 [0] : vector<8x32xf32> to vector<32xf32>
    %150 = vector.shape_cast %149 : vector<32xf32> to vector<1x32xf32>
    %151 = arith.addf %148, %150 : vector<1x32xf32>
    %c0_109 = arith.constant 0 : index
    %c0_110 = arith.constant 0 : index
    %152 = vector.load %arg13[%c0_109, %c0_110] : memref<1x32xf32, #tpu.memory_space<vmem>>, vector<1x32xf32>
    tpu.vector_store %arg13[%c0_109, %c0_110], %151 {strides = array<i32>} : memref<1x32xf32, #tpu.memory_space<vmem>>, vector<1x32xf32>,
    %c0_111 = arith.constant 0 : index
    %c0_112 = arith.constant 0 : index
    %153 = vector.load %arg14[%c0_111, %c0_112] : memref<1x32xf32, #tpu.memory_space<vmem>>, vector<1x32xf32>
    %154 = arith.mulf %137, %137 : vector<8x32xf32>
    %cst_113 = arith.constant dense<0.000000e+00> : vector<32xf32>
    %155 = vector.multi_reduction <add>, %154, %cst_113 [0] : vector<8x32xf32> to vector<32xf32>
    %156 = vector.shape_cast %155 : vector<32xf32> to vector<1x32xf32>
    %157 = arith.addf %153, %156 : vector<1x32xf32>
    %c0_114 = arith.constant 0 : index
    %c0_115 = arith.constant 0 : index
    %158 = vector.load %arg14[%c0_114, %c0_115] : memref<1x32xf32, #tpu.memory_space<vmem>>, vector<1x32xf32>
    tpu.vector_store %arg14[%c0_114, %c0_115], %157 {strides = array<i32>} : memref<1x32xf32, #tpu.memory_space<vmem>>, vector<1x32xf32>,
    return
  }
  func.func @transform_0(%arg0: i32, %arg1: i32) -> (i32, i32, i32, i32) {
    %c0_i32 = arith.constant 0 : i32
    %0 = arith.addi %arg1, %c0_i32 : i32
    %c0_i32_0 = arith.constant 0 : i32
    %c0_i32_1 = arith.constant 0 : i32
    %c0_i32_2 = arith.constant 0 : i32
    return %arg0, %0, %c0_i32_0, %c0_i32_1 : i32, i32, i32, i32
  }
  func.func @transform_1(%arg0: i32, %arg1: i32) -> (i32, i32, i32, i32) {
    %c1_i32 = arith.constant 1 : i32
    %0 = arith.addi %arg1, %c1_i32 : i32
    %c0_i32 = arith.constant 0 : i32
    %c0_i32_0 = arith.constant 0 : i32
    %c0_i32_1 = arith.constant 0 : i32
    return %arg0, %0, %c0_i32, %c0_i32_0 : i32, i32, i32, i32
  }
  func.func @transform_2(%arg0: i32, %arg1: i32) -> (i32, i32, i32, i32) {
    %c2_i32 = arith.constant 2 : i32
    %0 = arith.addi %arg1, %c2_i32 : i32
    %c0_i32 = arith.constant 0 : i32
    %c0_i32_0 = arith.constant 0 : i32
    %c0_i32_1 = arith.constant 0 : i32
    return %arg0, %0, %c0_i32, %c0_i32_0 : i32, i32, i32, i32
  }
  func.func @transform_3(%arg0: i32, %arg1: i32) -> (i32, i32) {
    %c0_i32 = arith.constant 0 : i32
    %c0_i32_0 = arith.constant 0 : i32
    %c0_i32_1 = arith.constant 0 : i32
    return %c0_i32, %c0_i32_0 : i32, i32
  }
  func.func @transform_4(%arg0: i32, %arg1: i32) -> (i32, i32, i32) {
    %c0_i32 = arith.constant 0 : i32
    %c0_i32_0 = arith.constant 0 : i32
    %c0_i32_1 = arith.constant 0 : i32
    %c0_i32_2 = arith.constant 0 : i32
    return %c0_i32, %c0_i32_0, %c0_i32_1 : i32, i32, i32
  }
  func.func @transform_5(%arg0: i32, %arg1: i32) -> (i32, i32, i32, i32) {
    %c0_i32 = arith.constant 0 : i32
    %0 = arith.addi %arg1, %c0_i32 : i32
    %c0_i32_0 = arith.constant 0 : i32
    %c0_i32_1 = arith.constant 0 : i32
    %c0_i32_2 = arith.constant 0 : i32
    return %arg0, %0, %c0_i32_0, %c0_i32_1 : i32, i32, i32, i32
  }
  func.func @transform_6(%arg0: i32, %arg1: i32) -> (i32, i32, i32, i32) {
    %c1_i32 = arith.constant 1 : i32
    %0 = arith.addi %arg1, %c1_i32 : i32
    %c0_i32 = arith.constant 0 : i32
    %c0_i32_0 = arith.constant 0 : i32
    %c0_i32_1 = arith.constant 0 : i32
    return %arg0, %0, %c0_i32, %c0_i32_0 : i32, i32, i32, i32
  }
  func.func @transform_7(%arg0: i32, %arg1: i32) -> (i32, i32, i32, i32) {
    %c2_i32 = arith.constant 2 : i32
    %0 = arith.addi %arg1, %c2_i32 : i32
    %c0_i32 = arith.constant 0 : i32
    %c0_i32_0 = arith.constant 0 : i32
    %c0_i32_1 = arith.constant 0 : i32
    return %arg0, %0, %c0_i32, %c0_i32_0 : i32, i32, i32, i32
  }
  func.func @transform_8(%arg0: i32, %arg1: i32) -> (i32, i32) {
    %c0_i32 = arith.constant 0 : i32
    %c0_i32_0 = arith.constant 0 : i32
    %c0_i32_1 = arith.constant 0 : i32
    return %c0_i32, %c0_i32_0 : i32, i32
  }
  func.func @transform_9(%arg0: i32, %arg1: i32) -> (i32, i32, i32) {
    %c0_i32 = arith.constant 0 : i32
    %c0_i32_0 = arith.constant 0 : i32
    %c0_i32_1 = arith.constant 0 : i32
    %c0_i32_2 = arith.constant 0 : i32
    return %c0_i32, %c0_i32_0, %c0_i32_1 : i32, i32, i32
  }
  func.func @transform_10(%arg0: i32, %arg1: i32) -> (i32, i32, i32, i32) {
    %c0_i32 = arith.constant 0 : i32
    %c0_i32_0 = arith.constant 0 : i32
    %c0_i32_1 = arith.constant 0 : i32
    return %arg0, %arg1, %c0_i32, %c0_i32_0 : i32, i32, i32, i32
  }
  func.func @transform_11(%arg0: i32, %arg1: i32) -> (i32, i32) {
    %c0_i32 = arith.constant 0 : i32
    %c0_i32_0 = arith.constant 0 : i32
    %c0_i32_1 = arith.constant 0 : i32
    return %c0_i32, %c0_i32_0 : i32, i32
  }
  func.func @transform_12(%arg0: i32, %arg1: i32) -> (i32, i32) {
    %c0_i32 = arith.constant 0 : i32
    %c0_i32_0 = arith.constant 0 : i32
    %c0_i32_1 = arith.constant 0 : i32
    return %c0_i32, %c0_i32_0 : i32, i32
  }
}

module attributes {stable_mosaic.version = 11 : i64} {
  func.func @_mm_kernel(%arg0: i32, %arg1: memref<256x8xbf16, #tpu.memory_space<vmem>>, %arg2: memref<1x8xbf16, #tpu.memory_space<vmem>>, %arg3: memref<8x2xbf16, #tpu.memory_space<vmem>>, %arg4: memref<256x8xbf16, #tpu.memory_space<vmem>>, %arg5: memref<1x8xbf16, #tpu.memory_space<vmem>>, %arg6: memref<8x2xbf16, #tpu.memory_space<vmem>>, %arg7: memref<1x2xf32, #tpu.memory_space<vmem>>, %arg8: memref<256x2xf32, #tpu.memory_space<vmem>>) attributes {dimension_semantics = [#tpu.dimension_semantics<parallel>], iteration_bounds = array<i64: 2>, scalar_prefetch = 0 : i64, scratch_operands = 0 : i64, tpu.core_type = #tpu.core_type<tc>, window_params = [{transform_indices = @transform_0, window_bounds = array<i64: 256, 8>}, {pipeline_mode = #tpu.pipeline_mode<synchronous>, transform_indices = @transform_1, window_bounds = array<i64: 1, 8>}, {pipeline_mode = #tpu.pipeline_mode<synchronous>, transform_indices = @transform_2, window_bounds = array<i64: 8, 2>}, {transform_indices = @transform_3, window_bounds = array<i64: 256, 8>}, {pipeline_mode = #tpu.pipeline_mode<synchronous>, transform_indices = @transform_4, window_bounds = array<i64: 1, 8>}, {pipeline_mode = #tpu.pipeline_mode<synchronous>, transform_indices = @transform_5, window_bounds = array<i64: 8, 2>}, {pipeline_mode = #tpu.pipeline_mode<synchronous>, transform_indices = @transform_6, window_bounds = array<i64: 1, 2>}, {transform_indices = @transform_7, window_bounds = array<i64: 256, 2>}]} {
    %c0 = arith.constant 0 : index
    %c0_0 = arith.constant 0 : index
    %0 = vector.load %arg1[%c0, %c0_0] : memref<256x8xbf16, #tpu.memory_space<vmem>>, vector<256x8xbf16>
    %c0_1 = arith.constant 0 : index
    %c0_2 = arith.constant 0 : index
    %1 = vector.load %arg2[%c0_1, %c0_2] : memref<1x8xbf16, #tpu.memory_space<vmem>>, vector<1x8xbf16>
    %2 = vector.broadcast %1 : vector<1x8xbf16> to vector<256x8xbf16>
    %3 = arith.addf %0, %2 : vector<256x8xbf16>
    %cst = arith.constant 0.000000e+00 : bf16
    %4 = vector.broadcast %cst : bf16 to vector<256x8xbf16>
    %5 = arith.maximumf %3, %4 : vector<256x8xbf16>
    %c0_3 = arith.constant 0 : index
    %c0_4 = arith.constant 0 : index
    %6 = vector.load %arg3[%c0_3, %c0_4] : memref<8x2xbf16, #tpu.memory_space<vmem>>, vector<8x2xbf16>
    %cst_5 = arith.constant dense<0.000000e+00> : vector<256x2xf32>
    %7 = tpu.matmul %5, %6, %cst_5 {dimension_numbers = #tpu.dot_dimension_numbers<[1], [0], [0], [1], [0, 0, 1, 1], [], []>} : vector<256x8xbf16>, vector<8x2xbf16>, vector<256x2xf32> -> vector<256x2xf32>
    %c0_6 = arith.constant 0 : index
    %c0_7 = arith.constant 0 : index
    %8 = vector.load %arg4[%c0_6, %c0_7] : memref<256x8xbf16, #tpu.memory_space<vmem>>, vector<256x8xbf16>
    %c0_8 = arith.constant 0 : index
    %c0_9 = arith.constant 0 : index
    %9 = vector.load %arg5[%c0_8, %c0_9] : memref<1x8xbf16, #tpu.memory_space<vmem>>, vector<1x8xbf16>
    %10 = vector.broadcast %9 : vector<1x8xbf16> to vector<256x8xbf16>
    %11 = arith.addf %8, %10 : vector<256x8xbf16>
    %cst_10 = arith.constant 0.000000e+00 : bf16
    %12 = vector.broadcast %cst_10 : bf16 to vector<256x8xbf16>
    %13 = arith.maximumf %11, %12 : vector<256x8xbf16>
    %c0_11 = arith.constant 0 : index
    %c0_12 = arith.constant 0 : index
    %14 = vector.load %arg6[%c0_11, %c0_12] : memref<8x2xbf16, #tpu.memory_space<vmem>>, vector<8x2xbf16>
    %cst_13 = arith.constant dense<0.000000e+00> : vector<256x2xf32>
    %15 = tpu.matmul %13, %14, %cst_13 {dimension_numbers = #tpu.dot_dimension_numbers<[1], [0], [0], [1], [0, 0, 1, 1], [], []>} : vector<256x8xbf16>, vector<8x2xbf16>, vector<256x2xf32> -> vector<256x2xf32>
    %16 = arith.addf %7, %15 : vector<256x2xf32>
    %c0_14 = arith.constant 0 : index
    %c0_15 = arith.constant 0 : index
    %17 = vector.load %arg7[%c0_14, %c0_15] : memref<1x2xf32, #tpu.memory_space<vmem>>, vector<1x2xf32>
    %18 = vector.broadcast %17 : vector<1x2xf32> to vector<256x2xf32>
    %19 = arith.addf %16, %18 : vector<256x2xf32>
    %20 = arith.negf %19 : vector<256x2xf32>
    %21 = math.exp %20 : vector<256x2xf32>
    %cst_16 = arith.constant 1.000000e+00 : f32
    %22 = vector.broadcast %cst_16 : f32 to vector<256x2xf32>
    %23 = arith.addf %22, %21 : vector<256x2xf32>
    %24 = arith.divf %22, %23 : vector<256x2xf32>
    %c0_17 = arith.constant 0 : index
    %c0_18 = arith.constant 0 : index
    %25 = vector.load %arg8[%c0_17, %c0_18] : memref<256x2xf32, #tpu.memory_space<vmem>>, vector<256x2xf32>
    tpu.vector_store %arg8[%c0_17, %c0_18], %24 {strides = array<i32>} : memref<256x2xf32, #tpu.memory_space<vmem>>, vector<256x2xf32>,
    return
  }
  func.func @transform_0(%arg0: i32) -> (i32, i32) {
    %c0_i32 = arith.constant 0 : i32
    %c0_i32_0 = arith.constant 0 : i32
    return %arg0, %c0_i32 : i32, i32
  }
  func.func @transform_1(%arg0: i32) -> (i32, i32) {
    %c0_i32 = arith.constant 0 : i32
    %c0_i32_0 = arith.constant 0 : i32
    %c0_i32_1 = arith.constant 0 : i32
    return %c0_i32, %c0_i32_0 : i32, i32
  }
  func.func @transform_2(%arg0: i32) -> (i32, i32) {
    %c0_i32 = arith.constant 0 : i32
    %c0_i32_0 = arith.constant 0 : i32
    %c0_i32_1 = arith.constant 0 : i32
    return %c0_i32, %c0_i32_0 : i32, i32
  }
  func.func @transform_3(%arg0: i32) -> (i32, i32) {
    %c0_i32 = arith.constant 0 : i32
    %c0_i32_0 = arith.constant 0 : i32
    return %arg0, %c0_i32 : i32, i32
  }
  func.func @transform_4(%arg0: i32) -> (i32, i32) {
    %c0_i32 = arith.constant 0 : i32
    %c0_i32_0 = arith.constant 0 : i32
    %c0_i32_1 = arith.constant 0 : i32
    return %c0_i32, %c0_i32_0 : i32, i32
  }
  func.func @transform_5(%arg0: i32) -> (i32, i32) {
    %c0_i32 = arith.constant 0 : i32
    %c0_i32_0 = arith.constant 0 : i32
    %c0_i32_1 = arith.constant 0 : i32
    return %c0_i32, %c0_i32_0 : i32, i32
  }
  func.func @transform_6(%arg0: i32) -> (i32, i32) {
    %c0_i32 = arith.constant 0 : i32
    %c0_i32_0 = arith.constant 0 : i32
    %c0_i32_1 = arith.constant 0 : i32
    return %c0_i32, %c0_i32_0 : i32, i32
  }
  func.func @transform_7(%arg0: i32) -> (i32, i32) {
    %c0_i32 = arith.constant 0 : i32
    %c0_i32_0 = arith.constant 0 : i32
    return %arg0, %c0_i32 : i32, i32
  }
}

</mosaic_0001>

<bundles_post_ra>
// kernel: custom_unet_forward.8
= control target key start
LH: loop header
LB: loop body
LE: loop exit
PB: predicated region body
PF: predicated region fallthrough
CT: control target
= control target key end

     0   :  { %s1002_s15 = smov 0   ;;  %s1219_s0 = inlined_call_operand.vmem [shape: bf16[512,8], index: 0, kind: input, shape index: {}]   ;;  %s1220_s1 = inlined_call_operand.vmem [shape: bf16[1,8], index: 1, kind: input, shape index: {}]   ;;  %s1221_s2 = inlined_call_operand.vmem [shape: bf16[8,8], index: 2, kind: input, shape index: {}]   ;;  %s1222_s3 = inlined_call_operand.vmem [shape: f32[1,8], index: 3, kind: input, shape index: {}]   ;;  %s1223_s4 = inlined_call_operand.vmem [shape: bf16[512,8], index: 4, kind: output, shape index: {}]  }
   0x1 LB: > { %s797_s16 = sadd.s32 4294967295, %s975_s15   ;;  %p801_p0 = scmp.ge.s32.totalorder %s975_s15, 1  ;;  %s975_s15 = sphi %s1002_s15, %s14_s15  }
   0x2   : > { %p163_p1 = scmp.lt.s32.totalorder %s975_s15, 3 }
   0x4   : > { %p164_p2 = pnand %p801_p0, %p163_p1 }
   0x5   : > { %s802_s19 = sshll.u32 (!%p164_p2), %s797_s16, 5 }
   0x6   : > { %167 = sbr.rel (%p164_p2) target bundleno = 254 (0xfe), region = 36  ;;  %p190_p3 = scmp.lt.s32.totalorder (!%p164_p2), %s802_s19, 63 }
   0xb   : > { %v278_v0 = vld [vmem:[%s1221_s2] sm:$0xf]  ;;  %vm415_vm0 = vcmask 1043456   ;;  %v238_v2 = vlaneseq  ;;  %s1225_s19 = smov (!%p190_p3, %s802_s19), 63  ;;  %vm366_vm1 = vcmask 64512   ;;  %vm708_vm2 = vcmask 60416  }
   0xc   : > { %v234_v1 = vld [vmem:[%s1220_s1] sm:$0x1]  ;;  %959 = vmatprep.subr.msk.bf16.mxu0 %vm415_vm0, %v278_v0  ;;  %960 = vmatprep.subr.msk.bf16.mxu1 %vm415_vm0, %v278_v0  ;;  %v417_v3 = vsel %vm415_vm0, %v278_v0, 0  ;;  %s803_s22 = sshll.u32 %s1225_s19, 2 }
   0xd   : > { %924 = vmatpush3.bf16.msra.mxu0 %v417_v3  ;;  %958 = vmatpush3.bf16.msra.mxu1 %v417_v3  ;;  %v236_v4 = vpack.i.b16 %v234_v1, %v234_v1  ;;  %v239_v5 = vshrl.u32 %v238_v2, 7  ;;  %s1024_s25 = scalar_lea.vmem %s1219_s0, %s803_s22  ;;  %s1120_s30 = scalar_lea.vmem %s1223_s4, %s803_s22 }
   0xe   : > { %v202_v8 = vld [vmem:[%s1024_s25] sm:$0xf]  ;;  %v203_v9 = vld [vmem:[%s1024_s25 + $0x4] sm:$0xf]  ;;  %v204_v13 = vld [vmem:[%s1024_s25 + $0x8] sm:$0xf] }
   0xf   : > { %v240_v6 = vsub.s32 0, %v239_v5  ;;  %v218_v10 = vld [vmem:[%s1024_s25 + $0x40] sm:$0xf]  ;;  %v219_v12 = vld [vmem:[%s1024_s25 + $0x44] sm:$0xf] }
  0x10   : > { %v205_v14 = vld [vmem:[%s1024_s25 + $0xc] sm:$0xf]  ;;  %v220_v15 = vld [vmem:[%s1024_s25 + $0x48] sm:$0xf]  ;;  %v206_v17 = vld [vmem:[%s1024_s25 + $0x10] sm:$0xf] }
  0x11   : > { %v241_v7 = vrot.slane %v236_v4, %v240_v6  ;;  %v221_v16 = vld [vmem:[%s1024_s25 + $0x4c] sm:$0xf]  ;;  %v207_v22 = vld [vmem:[%s1024_s25 + $0x14] sm:$0xf]  ;;  %v222_v23 = vld [vmem:[%s1024_s25 + $0x50] sm:$0xf] }
  0x12   : > { %v223_v24 = vld [vmem:[%s1024_s25 + $0x54] sm:$0xf]  ;;  %v208_v29 = vld [vmem:[%s1024_s25 + $0x18] sm:$0xf]  ;;  %v209_v30 = vld [vmem:[%s1024_s25 + $0x1c] sm:$0xf] }
  0x13   : > { %v1029_v11 = vcombine.low %v241_v7, %v241_v7  ;;  %v224_v35 = vld [vmem:[%s1024_s25 + $0x58] sm:$0xf]  ;;  %v225_v36 = vld [vmem:[%s1024_s25 + $0x5c] sm:$0xf]  ;;  %v210_v41 = vld [vmem:[%s1024_s25 + $0x20] sm:$0xf] }
  0x14   : > { %v211_v42 = vld [vmem:[%s1024_s25 + $0x24] sm:$0xf]  ;;  %v226_v43 = vld [vmem:[%s1024_s25 + $0x60] sm:$0xf]  ;;  %v212_v57 = vld [vmem:[%s1024_s25 + $0x28] sm:$0xf] }
  0x15   : > { %v246_v18 = vadd.bf16 %v1029_v11, %v202_v8  ;;  %v247_v19 = vadd.bf16 %v1029_v11, %v203_v9  ;;  %v262_v20 = vadd.bf16 %v1029_v11, %v218_v10  ;;  %v263_v21 = vadd.bf16 %v1029_v11, %v219_v12  ;;  %v227_v47 = vld [vmem:[%s1024_s25 + $0x64] sm:$0xf]  ;;  %v213_v58 = vld [vmem:[%s1024_s25 + $0x2c] sm:$0xf]  ;;  %v228_v61 = vld [vmem:[%s1024_s25 + $0x68] sm:$0xf] }
  0x16   : > { %v248_v25 = vadd.bf16 %v1029_v11, %v204_v13  ;;  %v249_v26 = vadd.bf16 %v1029_v11, %v205_v14  ;;  %v264_v27 = vadd.bf16 %v1029_v11, %v220_v15  ;;  %v265_v28 = vadd.bf16 %v1029_v11, %v221_v16  ;;  %v229_v62 = vld [vmem:[%s1024_s25 + $0x6c] sm:$0xf]  ;;  %v214_v63 = vld [vmem:[%s1024_s25 + $0x30] sm:$0xf]  ;;  %v215_v0 = vld [vmem:[%s1024_s25 + $0x34] sm:$0xf] }
  0x17   : > { %v808_v31 = vcombine.low %v246_v18, %v247_v19  ;;  %v816_v32 = vcombine.low %v262_v20, %v263_v21  ;;  %v250_v33 = vadd.bf16 %v1029_v11, %v206_v17  ;;  %v251_v34 = vadd.bf16 %v1029_v11, %v207_v22  ;;  %v230_v1 = vld [vmem:[%s1024_s25 + $0x70] sm:$0xf]  ;;  %v231_v2 = vld [vmem:[%s1024_s25 + $0x74] sm:$0xf]  ;;  %v216_v14 = vld [vmem:[%s1024_s25 + $0x38] sm:$0xf] }
  0x18   : > { %v809_v37 = vcombine.low %v248_v25, %v249_v26  ;;  %v817_v38 = vcombine.low %v264_v27, %v265_v28  ;;  %v266_v39 = vadd.bf16 %v1029_v11, %v222_v23  ;;  %v267_v40 = vadd.bf16 %v1029_v11, %v223_v24  ;;  %v217_v17 = vld [vmem:[%s1024_s25 + $0x3c] sm:$0xf]  ;;  %v232_v18 = vld [vmem:[%s1024_s25 + $0x78] sm:$0xf]  ;;  %v1111_v26 = vld [vmem:[%s1222_s3] ss:$0 sm:$0xff] }
  0x19   : > { %925 = vmatprep.mubr.msk.bf16.mxu0 %vm366_vm1, %v808_v31  ;;  %941 = vmatprep.mubr.msk.bf16.mxu1 %vm366_vm1, %v816_v32  ;;  %v810_v44 = vcombine.low %v250_v33, %v251_v34  ;;  %v252_v45 = vadd.bf16 %v1029_v11, %v208_v29  ;;  %v253_v46 = vadd.bf16 %v1029_v11, %v209_v30  ;;  %v233_v19 = vld [vmem:[%s1024_s25 + $0x7c] sm:$0xf] }
  0x1a   : > { %926 = vmatmul.mubr.msk.bf16.vlgmr.msra.gmra.mxu0 %vm366_vm1, %v809_v37  ;;  %942 = vmatmul.mubr.msk.bf16.vlgmr.msra.gmra.mxu1 %vm366_vm1, %v817_v38  ;;  %v818_v48 = vcombine.low %v266_v39, %v267_v40  ;;  %v268_v49 = vadd.bf16 %v1029_v11, %v224_v35  ;;  %v269_v50 = vadd.bf16 %v1029_v11, %v225_v36 }
  0x1b   : > { %929 = vmatprep.mubr.msk.bf16.mxu0 %vm366_vm1, %v810_v44  ;;  %v254_v51 = vadd.bf16 %v1029_v11, %v210_v41  ;;  %v255_v52 = vadd.bf16 %v1029_v11, %v211_v42  ;;  %v270_v53 = vadd.bf16 %v1029_v11, %v226_v43  ;;  %v271_v54 = vadd.bf16 %v1029_v11, %v227_v47 }
  0x1c   : > { %945 = vmatprep.mubr.msk.bf16.mxu1 %vm366_vm1, %v818_v48  ;;  %v811_v55 = vcombine.low %v252_v45, %v253_v46  ;;  %v819_v56 = vcombine.low %v268_v49, %v269_v50  ;;  %v256_v3 = vadd.bf16 %v1029_v11, %v212_v57  ;;  %v257_v4 = vadd.bf16 %v1029_v11, %v213_v58 }
  0x1d   : > { %v812_v59 = vcombine.low %v254_v51, %v255_v52  ;;  %v820_v60 = vcombine.low %v270_v53, %v271_v54  ;;  %v272_v5 = vadd.bf16 %v1029_v11, %v228_v61  ;;  %v273_v6 = vadd.bf16 %v1029_v11, %v229_v62 }
  0x1e   : > { %v258_v7 = vadd.bf16 %v1029_v11, %v214_v63  ;;  %v259_v8 = vadd.bf16 %v1029_v11, %v215_v0  ;;  %v274_v9 = vadd.bf16 %v1029_v11, %v230_v1  ;;  %v275_v10 = vadd.bf16 %v1029_v11, %v231_v2 }
  0x1f   : > { %v813_v12 = vcombine.low %v256_v3, %v257_v4  ;;  %v821_v13 = vcombine.low %v272_v5, %v273_v6  ;;  %v260_v20 = vadd.bf16 %v1029_v11, %v216_v14  ;;  %v261_v21 = vadd.bf16 %v1029_v11, %v217_v17 }
  0x20   : > { %v814_v15 = vcombine.low %v258_v7, %v259_v8  ;;  %v822_v16 = vcombine.low %v274_v9, %v275_v10  ;;  %v276_v22 = vadd.bf16 %v1029_v11, %v232_v18  ;;  %v277_v23 = vadd.bf16 %v1029_v11, %v233_v19 }
  0x21   : > { %v815_v24 = vcombine.low %v260_v20, %v261_v21 }
  0x22   : > { %930 = vmatmul.mubr.msk.bf16.gmra.mxu0 %vm366_vm1, %v811_v55  ;;  %946 = vmatmul.mubr.msk.bf16.gmra.mxu1 %vm366_vm1, %v819_v56  ;;  %v823_v25 = vcombine.low %v276_v22, %v277_v23 }
  0x23   : > { %933 = vmatprep.mubr.msk.bf16.mxu0 %vm366_vm1, %v812_v59  ;;  %949 = vmatprep.mubr.msk.bf16.mxu1 %vm366_vm1, %v820_v60 }
  0x2a   : > { %934 = vmatmul.mubr.msk.bf16.gmra.mxu0 %vm366_vm1, %v813_v12  ;;  %950 = vmatmul.mubr.msk.bf16.gmra.mxu1 %vm366_vm1, %v821_v13 }
  0x2b   : > { %937 = vmatprep.mubr.msk.bf16.mxu0 %vm366_vm1, %v814_v15  ;;  %953 = vmatprep.mubr.msk.bf16.mxu1 %vm366_vm1, %v822_v16 }
  0x32   : > { %938 = vmatmul.mubr.msk.bf16.gmra.mxu0 %vm366_vm1, %v815_v24  ;;  %954 = vmatmul.mubr.msk.bf16.gmra.mxu1 %vm366_vm1, %v823_v25 }
  0xda   : > { %v927_v27 = vpop.f32.mrf.mxu0  ;;  %v943_v28 = vpop.f32.mrf.mxu1 }
  0xdb   : > { %v462_v29 = vadd.f32 %v927_v27, %v1111_v26  ;;  %v526_v11 = vadd.f32 %v943_v28, %v1111_v26 }
  0xdc   : > { %v453_v30 = vpop.f32.mrf.mxu0  ;;  %v517_v31 = vpop.f32.mrf.mxu1 }
  0xdd   : > { %v876_v32 = vpack.c.bf16 %v462_v29, %v462_v29  ;;  %v892_v33 = vpack.c.bf16 %v526_v11, %v526_v11  ;;  %v454_v34 = vadd.f32 %v1111_v26, %v453_v30  ;;  %v518_v35 = vadd.f32 %v1111_v26, %v517_v31 }
  0xde   : > { %v928_v36 = vpop.f32.mrf.mxu0  ;;  %v944_v37 = vpop.f32.mrf.mxu1 }
  0xdf   : > { %711 = vst.msk [vmem:[%s1120_s30 + $0x8] sm:$0xf] %vm708_vm2, %v876_v32  ;;  %727 = vst.msk [vmem:[%s1120_s30 + $0x48] sm:$0xf] %vm708_vm2, %v892_v33  ;;  %v874_v38 = vpack.c.bf16 %v454_v34, %v454_v34  ;;  %v890_v39 = vpack.c.bf16 %v518_v35, %v518_v35  ;;  %v465_v40 = vadd.f32 %v928_v36, %v1111_v26 }
  0xe0   : > { %v529_v41 = vadd.f32 %v944_v37, %v1111_v26  ;;  %v456_v42 = vpop.f32.mrf.mxu0  ;;  %v520_v43 = vpop.f32.mrf.mxu1 }
  0xe1   : > { %709 = vst.msk [vmem:[%s1120_s30] sm:$0xf] %vm708_vm2, %v874_v38  ;;  %725 = vst.msk [vmem:[%s1120_s30 + $0x40] sm:$0xf] %vm708_vm2, %v890_v39  ;;  %v877_v44 = vpack.c.bf16 %v465_v40, %v465_v40  ;;  %v457_v46 = vadd.f32 %v1111_v26, %v456_v42  ;;  %v521_v47 = vadd.f32 %v1111_v26, %v520_v43 }
  0xe2   : > { %v893_v45 = vpack.c.bf16 %v529_v41, %v529_v41  ;;  %v931_v48 = vpop.f32.mrf.mxu0  ;;  %v947_v49 = vpop.f32.mrf.mxu1 }
  0xe3   : > { %712 = vst.msk [vmem:[%s1120_s30 + $0xc] sm:$0xf] %vm708_vm2, %v877_v44  ;;  %v875_v50 = vpack.c.bf16 %v457_v46, %v457_v46  ;;  %v891_v51 = vpack.c.bf16 %v521_v47, %v521_v47  ;;  %v478_v52 = vadd.f32 %v931_v48, %v1111_v26  ;;  %v542_v53 = vadd.f32 %v947_v49, %v1111_v26 }
  0xe4   : > { %728 = vst.msk [vmem:[%s1120_s30 + $0x4c] sm:$0xf] %vm708_vm2, %v893_v45  ;;  %v469_v54 = vpop.f32.mrf.mxu0  ;;  %v533_v55 = vpop.f32.mrf.mxu1 }
  0xe5   : > { %710 = vst.msk [vmem:[%s1120_s30 + $0x4] sm:$0xf] %vm708_vm2, %v875_v50  ;;  %726 = vst.msk [vmem:[%s1120_s30 + $0x44] sm:$0xf] %vm708_vm2, %v891_v51  ;;  %v880_v56 = vpack.c.bf16 %v478_v52, %v478_v52  ;;  %v896_v57 = vpack.c.bf16 %v542_v53, %v542_v53  ;;  %v470_v58 = vadd.f32 %v1111_v26, %v469_v54 }
  0xe6   : > { %v534_v59 = vadd.f32 %v1111_v26, %v533_v55  ;;  %v932_v60 = vpop.f32.mrf.mxu0  ;;  %v948_v61 = vpop.f32.mrf.mxu1 }
  0xe7   : > { %715 = vst.msk [vmem:[%s1120_s30 + $0x18] sm:$0xf] %vm708_vm2, %v880_v56  ;;  %731 = vst.msk [vmem:[%s1120_s30 + $0x58] sm:$0xf] %vm708_vm2, %v896_v57  ;;  %v878_v62 = vpack.c.bf16 %v470_v58, %v470_v58  ;;  %v481_v0 = vadd.f32 %v932_v60, %v1111_v26  ;;  %v545_v1 = vadd.f32 %v948_v61, %v1111_v26 }
  0xe8   : > { %v894_v63 = vpack.c.bf16 %v534_v59, %v534_v59  ;;  %v472_v2 = vpop.f32.mrf.mxu0  ;;  %v536_v3 = vpop.f32.mrf.mxu1 }
  0xe9   : > { %713 = vst.msk [vmem:[%s1120_s30 + $0x10] sm:$0xf] %vm708_vm2, %v878_v62  ;;  %v881_v4 = vpack.c.bf16 %v481_v0, %v481_v0  ;;  %v897_v5 = vpack.c.bf16 %v545_v1, %v545_v1  ;;  %v473_v6 = vadd.f32 %v1111_v26, %v472_v2  ;;  %v537_v7 = vadd.f32 %v1111_v26, %v536_v3 }
  0xea   : > { %729 = vst.msk [vmem:[%s1120_s30 + $0x50] sm:$0xf] %vm708_vm2, %v894_v63  ;;  %v935_v8 = vpop.f32.mrf.mxu0  ;;  %v951_v9 = vpop.f32.mrf.mxu1 }
  0xeb   : > { %716 = vst.msk [vmem:[%s1120_s30 + $0x1c] sm:$0xf] %vm708_vm2, %v881_v4  ;;  %732 = vst.msk [vmem:[%s1120_s30 + $0x5c] sm:$0xf] %vm708_vm2, %v897_v5  ;;  %v879_v10 = vpack.c.bf16 %v473_v6, %v473_v6  ;;  %v895_v12 = vpack.c.bf16 %v537_v7, %v537_v7  ;;  %v494_v13 = vadd.f32 %v935_v8, %v1111_v26 }
  0xec   : > { %v558_v14 = vadd.f32 %v951_v9, %v1111_v26  ;;  %v485_v15 = vpop.f32.mrf.mxu0  ;;  %v549_v16 = vpop.f32.mrf.mxu1 }
  0xed   : > { %714 = vst.msk [vmem:[%s1120_s30 + $0x14] sm:$0xf] %vm708_vm2, %v879_v10  ;;  %730 = vst.msk [vmem:[%s1120_s30 + $0x54] sm:$0xf] %vm708_vm2, %v895_v12  ;;  %v884_v17 = vpack.c.bf16 %v494_v13, %v494_v13  ;;  %v486_v19 = vadd.f32 %v1111_v26, %v485_v15  ;;  %v550_v20 = vadd.f32 %v1111_v26, %v549_v16 }
  0xee   : > { %v900_v18 = vpack.c.bf16 %v558_v14, %v558_v14  ;;  %v936_v21 = vpop.f32.mrf.mxu0  ;;  %v952_v22 = vpop.f32.mrf.mxu1 }
  0xef   : > { %719 = vst.msk [vmem:[%s1120_s30 + $0x28] sm:$0xf] %vm708_vm2, %v884_v17  ;;  %v882_v23 = vpack.c.bf16 %v486_v19, %v486_v19  ;;  %v898_v24 = vpack.c.bf16 %v550_v20, %v550_v20  ;;  %v497_v25 = vadd.f32 %v936_v21, %v1111_v26  ;;  %v561_v27 = vadd.f32 %v952_v22, %v1111_v26 }
  0xf0   : > { %735 = vst.msk [vmem:[%s1120_s30 + $0x68] sm:$0xf] %vm708_vm2, %v900_v18  ;;  %v488_v28 = vpop.f32.mrf.mxu0  ;;  %v552_v29 = vpop.f32.mrf.mxu1 }
  0xf1   : > { %717 = vst.msk [vmem:[%s1120_s30 + $0x20] sm:$0xf] %vm708_vm2, %v882_v23  ;;  %733 = vst.msk [vmem:[%s1120_s30 + $0x60] sm:$0xf] %vm708_vm2, %v898_v24  ;;  %v885_v11 = vpack.c.bf16 %v497_v25, %v497_v25  ;;  %v901_v30 = vpack.c.bf16 %v561_v27, %v561_v27  ;;  %v489_v31 = vadd.f32 %v1111_v26, %v488_v28 }
  0xf2   : > { %v553_v32 = vadd.f32 %v1111_v26, %v552_v29  ;;  %v939_v33 = vpop.f32.mrf.mxu0  ;;  %v955_v34 = vpop.f32.mrf.mxu1 }
  0xf3   : > { %720 = vst.msk [vmem:[%s1120_s30 + $0x2c] sm:$0xf] %vm708_vm2, %v885_v11  ;;  %736 = vst.msk [vmem:[%s1120_s30 + $0x6c] sm:$0xf] %vm708_vm2, %v901_v30  ;;  %v883_v35 = vpack.c.bf16 %v489_v31, %v489_v31  ;;  %v510_v37 = vadd.f32 %v939_v33, %v1111_v26  ;;  %v574_v38 = vadd.f32 %v955_v34, %v1111_v26 }
  0xf4   : > { %v899_v36 = vpack.c.bf16 %v553_v32, %v553_v32  ;;  %v501_v39 = vpop.f32.mrf.mxu0  ;;  %v565_v40 = vpop.f32.mrf.mxu1 }
  0xf5   : > { %718 = vst.msk [vmem:[%s1120_s30 + $0x24] sm:$0xf] %vm708_vm2, %v883_v35  ;;  %v888_v41 = vpack.c.bf16 %v510_v37, %v510_v37  ;;  %v904_v42 = vpack.c.bf16 %v574_v38, %v574_v38  ;;  %v502_v43 = vadd.f32 %v1111_v26, %v501_v39  ;;  %v566_v44 = vadd.f32 %v1111_v26, %v565_v40 }
  0xf6   : > { %734 = vst.msk [vmem:[%s1120_s30 + $0x64] sm:$0xf] %vm708_vm2, %v899_v36  ;;  %v940_v45 = vpop.f32.mrf.mxu0  ;;  %v956_v46 = vpop.f32.mrf.mxu1 }
  0xf7   : > { %723 = vst.msk [vmem:[%s1120_s30 + $0x38] sm:$0xf] %vm708_vm2, %v888_v41  ;;  %739 = vst.msk [vmem:[%s1120_s30 + $0x78] sm:$0xf] %vm708_vm2, %v904_v42  ;;  %v886_v47 = vpack.c.bf16 %v502_v43, %v502_v43  ;;  %v902_v48 = vpack.c.bf16 %v566_v44, %v566_v44  ;;  %v513_v49 = vadd.f32 %v940_v45, %v1111_v26 }
  0xf8   : > { %v577_v50 = vadd.f32 %v956_v46, %v1111_v26  ;;  %v504_v51 = vpop.f32.mrf.mxu0  ;;  %v568_v52 = vpop.f32.mrf.mxu1 }
  0xf9   : > { %721 = vst.msk [vmem:[%s1120_s30 + $0x30] sm:$0xf] %vm708_vm2, %v886_v47  ;;  %737 = vst.msk [vmem:[%s1120_s30 + $0x70] sm:$0xf] %vm708_vm2, %v902_v48  ;;  %v889_v53 = vpack.c.bf16 %v513_v49, %v513_v49  ;;  %v505_v55 = vadd.f32 %v1111_v26, %v504_v51  ;;  %v569_v56 = vadd.f32 %v1111_v26, %v568_v52 }
  0xfa   : > { %v905_v54 = vpack.c.bf16 %v577_v50, %v577_v50 }
  0xfb   : > { %724 = vst.msk [vmem:[%s1120_s30 + $0x3c] sm:$0xf] %vm708_vm2, %v889_v53  ;;  %v887_v57 = vpack.c.bf16 %v505_v55, %v505_v55  ;;  %v903_v58 = vpack.c.bf16 %v569_v56, %v569_v56 }
  0xfc   : > { %740 = vst.msk [vmem:[%s1120_s30 + $0x7c] sm:$0xf] %vm708_vm2, %v905_v54 }
  0xfd   : > { %722 = vst.msk [vmem:[%s1120_s30 + $0x34] sm:$0xf] %vm708_vm2, %v887_v57  ;;  %738 = vst.msk [vmem:[%s1120_s30 + $0x74] sm:$0xf] %vm708_vm2, %v903_v58 }
  0xfe PF: > { %s14_s15 = sadd.s32 1, %s975_s15  }
  0xff   : > { %p11_p4 = scmp.ge.s32.totalorder %s14_s15, 4  }
 0x101   :  { %13 = sbr.rel (!%p11_p4) target bundleno = 1 (0x1), region = 66 }

// kernel: custom_unet_forward.9
= control target key start
LH: loop header
LB: loop body
LE: loop exit
PB: predicated region body
PF: predicated region fallthrough
CT: control target
= control target key end

     0   :  { %s1258_s21 = smov 0   ;;  %s1260_s22 = smov 0   ;;  %s1421_s0 = inlined_call_operand.vmem [shape: bf16[2,18,9,16], index: 0, kind: input, shape index: {}, may-alias: {0,1}]   ;;  %s1422_s1 = inlined_call_operand.vmem [shape: bf16[2,18,9,16], index: 1, kind: input, shape index: {}, may-alias: {0,1}]   ;;  %s1423_s2 = inlined_call_operand.vmem [shape: bf16[1,16], index: 2, kind: input, shape index: {}]   ;;  %s1424_s3 = inlined_call_operand.vmem [shape: bf16[8,16,16], index: 3, kind: input, shape index: {}]   ;;  %s1425_s4 = inlined_call_operand.vmem [shape: bf16[2,8,8,16], index: 4, kind: output, shape index: {0}]   ;;  %s1426_s5 = inlined_call_operand.vmem [shape: f32[1,16], index: 5, kind: output, shape index: {1}]   ;;  %s1427_s6 = inlined_call_operand.vmem [shape: f32[1,16], index: 6, kind: output, shape index: {2}]  }
   0x1   :  { %s1262_s23 = smov 0   ;;  %s1264_s24 = smov 0  }
   0x2   :  { %s1266_s25 = smov 0  }
   0x3 LB: > { %s26_s26 = sadd.s32 1, %s1210_s23  ;;  %s29_s27 = sadd.s32 1, %s1214_s24  ;;  %s1218_s25 = sphi %s1266_s25, %s17_s25   ;;  %s1214_s24 = sphi %s1264_s24, %s1431_s24   ;;  %s1210_s23 = sphi %s1262_s23, %s1430_s23   ;;  %s1206_s22 = sphi %s1260_s22, %s1429_s22   ;;  %s1202_s21 = sphi %s1258_s21, %s1428_s21  }
   0x4   : > { %p27_p0 = scmp.ge.s32.totalorder %s26_s26, 8  ;;  %p1016_p1 = scmp.ge.s32.totalorder %s1218_s25, 1 }
   0x5   : > { %p251_p2 = scmp.lt.s32.totalorder %s1218_s25, 17 }
   0x6   : > { %s1433_s26 = smov (%p27_p0, %s26_s26), 0  ;;  %s1435_s27 = smov (!%p27_p0, %s29_s27), %s1214_s24 }
   0x7   : > { %p252_p3 = pnand %p1016_p1, %p251_p2  ;;  %p31_p4 = scmp.ge.s32.totalorder %s1435_s27, 2 }
   0x8   : > { %s1017_s28 = sshll.u32 (!%p252_p3), %s1202_s21, 1  ;;  %p301_p5 = scmp.lt.s32.totalorder (!%p252_p3), %s1206_s22, 1 }
   0x9   : > { %s1437_s27 = smov (%p31_p4, %s1435_s27), 0  ;;  %255 = sbr.rel (%p252_p3) target bundleno = 292 (0x124), region = 36 }
   0xa   : > { %p303_p6 = scmp.lt.s32.totalorder (!%p252_p3), %s1017_s28, 17  ;;  %s1063_s29 = sadd.s32 (!%p252_p3), 2, %s1017_s28 }
   0xb   : > { %p315_p7 = scmp.lt.s32.totalorder (!%p252_p3), %s1063_s29, 17  ;;  %p326_p8 = scmp.lt.s32.totalorder (!%p252_p3), %s1202_s21, 7 }
   0xc   : > { %p334_p9 = scmp.eq.s32.totalorder (!%p252_p3), %s1206_s22, 0  ;;  %p335_p10 = scmp.eq.s32.totalorder (!%p252_p3), %s1202_s21, 0 }
   0xe   : > { %s302_s30 = scalar_select %p301_p5, %s1206_s22, 1 }
   0xf   : > { %s1439_s28 = smov (!%p303_p6, %s1017_s28), 17  ;;  %s1441_s29 = smov (!%p315_p7, %s1063_s29), 17 }
  0x10   : > { %s1128_s7 = smul.u32 36, %s302_s30  ;;  %s1018_s8 = sshll.u32 %s1439_s28, 1 }
  0x11   : > { %s1023_s10 = sshll.u32 %s302_s30, 3  ;;  %s1443_s21 = smov (!%p326_p8, %s1202_s21), 7 }
  0x12   : > { %s307_s9 = sadd.s32 %s1128_s7, %s1018_s8  ;;  %s1021_s15 = sshll.u32 %s1441_s29, 1 }
  0x13   : > { %s1019_s11 = sshll.u32 %s307_s9, 2  ;;  %p336_p11 = pnand %p335_p10, %p334_p9 }
  0x14   : > { %s1300_s14 = scalar_lea.vmem %s1421_s0, %s1019_s11  ;;  %s319_s16 = sadd.s32 %s1128_s7, %s1021_s15 }
  0x15   : > { %s329_s17 = sadd.s32 %s1023_s10, %s1443_s21  ;;  %s1022_s18 = sshll.u32 %s319_s16, 2 }
  0x16   : > { %s1024_s19 = sshll.u32 %s329_s17, 2  ;;  %s1307_s30 = scalar_lea.vmem %s1422_s1, %s1022_s18 }
  0x17   : > { %s1312_s9 = scalar_lea.vmem %s1425_s4, %s1024_s19  ;;  %339 = sbr.rel (%p336_p11) target bundleno = 30 (0x1e), region = 40 }
  0x1c   : > { %vm340_vm0 = vcmask 122880   ;;  %v1220_v0 = vmov 0.0  }
  0x1d   : > { %341 = vst.msk [vmem:[%s1426_s5] sm:$0x1] %vm340_vm0, %v1220_v0  ;;  %342 = vst.msk [vmem:[%s1427_s6] sm:$0x1] %vm340_vm0, %v1220_v0 }
  0x1e PF: > { %v1172_v1 = vld [vmem:[%s1424_s3] sm:$0xff]   ;;  %v351_v2 = vlaneseq  ;;  %v1221_v3 = vmov 0.0   ;;  %v1173_v4 = vld [vmem:[%s1424_s3 + $0x8] sm:$0xff]   ;;  %vm1222_vm1 = vmmov 0   ;;  %vm418_vm2 = vcmask 130048   ;;  %v1175_v23 = vld [vmem:[%s1424_s3 + $0x18] sm:$0xff]  }
  0x1f   : > { %1086 = vmatprep.subr.bf16.mxu1 %v1221_v3  ;;  %1080 = vmatprep.subr.bf16.mxu0 %v1221_v3  ;;  %v343_v5 = vld [vmem:[%s1423_s2] sm:$0x1]  ;;  %v345_v10 = vld [vmem:[%s1300_s14 + $0x4] sm:$0x1]  ;;  %v346_v12 = vld [vmem:[%s1300_s14 + $0x8] sm:$0xf] }
  0x20   : > { %1087 = vmatpush3.bf16.msra.mxu1 %v1172_v1  ;;  %1088 = vmatprep.mubr.msk.bf16.mxu1 %vm1222_vm1, %v1221_v3  ;;  %v349_v6 = vpack.i.b16 %v343_v5, %v343_v5  ;;  %v352_v7 = vshrl.u32 %v351_v2, 7  ;;  %v344_v9 = vld [vmem:[%s1300_s14] sm:$0xf]  ;;  %v347_v13 = vld [vmem:[%s1300_s14 + $0xc] sm:$0x1]  ;;  %v1174_v50 = vld [vmem:[%s1424_s3 + $0x10] sm:$0xff]  }
  0x21   : > { %1081 = vmatpush3.bf16.msra.mxu0 %v1173_v4  ;;  %1082 = vmatprep.mubr.msk.bf16.mxu0 %vm1222_vm1, %v1221_v3  ;;  %v375_v14 = vld [vmem:[%s1307_s30] sm:$0xf]  ;;  %v376_v16 = vld [vmem:[%s1307_s30 + $0x4] sm:$0x1]  ;;  %v377_v17 = vld [vmem:[%s1307_s30 + $0x8] sm:$0xf] }
  0x22   : > { %1092 = vmatprep.subr.bf16.mxu0 %v1221_v3  ;;  %1098 = vmatprep.subr.bf16.mxu1 %v1221_v3  ;;  %v353_v8 = vsub.s32 0, %v352_v7  ;;  %v378_v22 = vld [vmem:[%s1307_s30 + $0xc] sm:$0x1]  ;;  %v1176_v61 = vld [vmem:[%s1424_s3 + $0x20] sm:$0xff]   ;;  %v1179_v0 = vld [vmem:[%s1424_s3 + $0x38] sm:$0xff]   ;;  %vm866_vm11 = vcmask 125952  }
  0x23   : > { %v1177_v57 = vld [vmem:[%s1424_s3 + $0x28] sm:$0xff]   ;;  %v1178_v4 = vld [vmem:[%s1424_s3 + $0x30] sm:$0xff]   ;;  %vm877_vm12 = vcmask 122880  }
  0x24   : > { %v354_v11 = vrot.slane %v349_v6, %v353_v8 }
  0x26   : > { %v1025_v15 = vcombine.low %v354_v11, %v354_v11 }
  0x28   : > { %v359_v18 = vadd.bf16 %v1025_v15, %v344_v9  ;;  %v360_v19 = vadd.bf16 %v1025_v15, %v345_v10  ;;  %v361_v20 = vadd.bf16 %v1025_v15, %v346_v12  ;;  %v362_v21 = vadd.bf16 %v1025_v15, %v347_v13 }
  0x29   : > { %v379_v24 = vadd.bf16 %v1025_v15, %v375_v14  ;;  %v380_v25 = vadd.bf16 %v1025_v15, %v376_v16  ;;  %v381_v26 = vadd.bf16 %v1025_v15, %v377_v17  ;;  %v382_v27 = vadd.bf16 %v1025_v15, %v378_v22 }
  0x2a   : > { %vm363_vm3 = vcmp.ge.bf16.partialorder %v359_v18, 0  ;;  %vm364_vm4 = vcmp.ge.bf16.partialorder %v360_v19, 0  ;;  %v367_v28 = vmul.bf16 1045249613, %v359_v18  ;;  %v368_v29 = vmul.bf16 1045249613, %v360_v19 }
  0x2b   : > { %vm365_vm5 = vcmp.ge.bf16.partialorder %v361_v20, 0  ;;  %vm366_vm6 = vcmp.ge.bf16.partialorder %v362_v21, 0  ;;  %v369_v30 = vmul.bf16 1045249613, %v361_v20  ;;  %v370_v31 = vmul.bf16 1045249613, %v362_v21 }
  0x2c   : > { %v371_v32 = vsel %vm363_vm3, %v359_v18, %v367_v28  ;;  %v372_v33 = vsel %vm364_vm4, %v360_v19, %v368_v29  ;;  %vm383_vm7 = vcmp.ge.bf16.partialorder %v379_v24, 0  ;;  %vm384_vm8 = vcmp.ge.bf16.partialorder %v380_v25, 0 }
  0x2d   : > { %v1028_v34 = vcombine.low %v371_v32, %v372_v33  ;;  %1089 = vmatmul.mubr.msk.bf16.vlgmr.msra.gmra.mxu1 %vm418_vm2, %v371_v32  ;;  %v373_v35 = vsel %vm365_vm5, %v361_v20, %v369_v30  ;;  %v374_v36 = vsel %vm366_vm6, %v362_v21, %v370_v31  ;;  %v387_v37 = vmul.bf16 1045249613, %v379_v24 }
  0x2e   : > { %1099 = vmatpush3.bf16.msra.mxu1 %v1175_v23  ;;  %1100 = vmatprep.mubr.msk.bf16.mxu1 %vm1222_vm1, %v1221_v3  ;;  %v1039_v38 = vcombine.low %v373_v35, %v374_v36  ;;  %v388_v39 = vmul.bf16 1045249613, %v380_v25  ;;  %vm385_vm9 = vcmp.ge.bf16.partialorder %v381_v26, 0  ;;  %vm386_vm10 = vcmp.ge.bf16.partialorder %v382_v27, 0 }
  0x2f   : > { %v406_v40 = vshrl.u32 %v1028_v34, 16  ;;  %v408_v41 = vshll.u32 %v1028_v34, 16  ;;  %1110 = vmatprep.subr.bf16.mxu1 %v1221_v3  ;;  %v391_v42 = vsel %vm383_vm7, %v379_v24, %v387_v37  ;;  %v389_v43 = vmul.bf16 1045249613, %v381_v26 }
  0x30   : > { %v573_v44 = vshrl.u32 %v1039_v38, 16  ;;  %v575_v45 = vshll.u32 %v1039_v38, 16  ;;  %v392_v46 = vsel %vm384_vm8, %v380_v25, %v388_v39  ;;  %v390_v47 = vmul.bf16 1045249613, %v382_v27 }
  0x31   : > { %v410_v48 = vrot.slane %v408_v41, 1  ;;  %v1048_v49 = vcombine.low %v391_v42, %v392_v46  ;;  %v393_v54 = vsel %vm385_vm9, %v381_v26, %v389_v43 }
  0x32   : > { %v577_v51 = vrot.slane %v575_v45, 1  ;;  %v394_v55 = vsel %vm386_vm10, %v382_v27, %v390_v47 }
  0x33   : > { %v411_v52 = vor.u32 %v410_v48, %v406_v40  ;;  %v693_v53 = vshll.u32 %v1048_v49, 16  ;;  %v691_v58 = vshrl.u32 %v1048_v49, 16  ;;  %v1057_v60 = vcombine.low %v393_v54, %v394_v55 }
  0x34   : > { %v578_v56 = vor.u32 %v577_v51, %v573_v44 }
  0x35   : > { %1083 = vmatmul.mubr.msk.bf16.vlgmr.msra.gmra.mxu0 %vm418_vm2, %v411_v52  ;;  %v695_v59 = vrot.slane %v693_v53, 1  ;;  %v811_v63 = vshll.u32 %v1057_v60, 16  ;;  %v809_v1 = vshrl.u32 %v1057_v60, 16  ;;  %v879_v60 = vld [vmem:[%s1427_s6] sm:$0x1] }
  0x36   : > { %1093 = vmatpush3.bf16.msra.mxu0 %v1174_v50  ;;  %1101 = vmatmul.mubr.msk.bf16.vlgmr.msra.gmra.mxu1 %vm418_vm2, %v578_v56 }
  0x37   : > { %1094 = vmatprep.mubr.msk.bf16.mxu0 %vm1222_vm1, %v1221_v3  ;;  %1104 = vmatprep.subr.bf16.mxu0 %v1221_v3  ;;  %v696_v62 = vor.u32 %v695_v59, %v691_v58  ;;  %v813_v2 = vrot.slane %v811_v63, 1 }
  0x38   : > { %1111 = vmatpush3.bf16.msra.mxu1 %v1177_v57  ;;  %1112 = vmatprep.mubr.msk.bf16.mxu1 %vm1222_vm1, %v1221_v3  ;;  %v868_v57 = vld [vmem:[%s1426_s5] sm:$0x1] }
  0x39   : > { %1122 = vmatprep.subr.bf16.mxu1 %v1221_v3  ;;  %v814_v5 = vor.u32 %v813_v2, %v809_v1 }
  0x3d   : > { %1095 = vmatmul.mubr.msk.bf16.vlgmr.msra.gmra.mxu0 %vm418_vm2, %v373_v35 }
  0x3e   : > { %1105 = vmatpush3.bf16.msra.mxu0 %v1176_v61  ;;  %1113 = vmatmul.mubr.msk.bf16.vlgmr.msra.gmra.mxu1 %vm418_vm2, %v696_v62 }
  0x3f   : > { %1106 = vmatprep.mubr.msk.bf16.mxu0 %vm1222_vm1, %v1221_v3  ;;  %1116 = vmatprep.subr.bf16.mxu0 %v1221_v3 }
  0x40   : > { %1123 = vmatpush3.bf16.msra.mxu1 %v1179_v0  ;;  %1124 = vmatprep.mubr.msk.bf16.mxu1 %vm1222_vm1, %v1221_v3 }
  0x45   : > { %1107 = vmatmul.mubr.msk.bf16.vlgmr.msra.gmra.mxu0 %vm418_vm2, %v391_v42 }
  0x46   : > { %1117 = vmatpush3.bf16.msra.mxu0 %v1178_v4  ;;  %1125 = vmatmul.mubr.msk.bf16.vlgmr.msra.gmra.mxu1 %vm418_vm2, %v814_v5 }
  0x47   : > { %1118 = vmatprep.mubr.msk.bf16.mxu0 %vm1222_vm1, %v1221_v3 }
  0x4d   : > { %1119 = vmatmul.mubr.msk.bf16.vlgmr.msra.gmra.mxu0 %vm418_vm2, %v393_v54 }
  0xed   : > { %v505_v6 = vpop.f32.mrf.mxu1 }
  0xef   : > { %v1090_v7 = vpop.f32.mrf.mxu1 }
  0xf1   : > { %v508_v8 = vpop.f32.mrf.mxu1 }
  0xf3   : > { %v1091_v9 = vpop.f32.mrf.mxu1 }
  0xf5   : > { %v456_v10 = vpop.f32.mrf.mxu0 }
  0xf6   : > { %v622_v11 = vpop.f32.mrf.mxu1  ;;  %v506_v21 = vadd.f32 %v505_v6, %v456_v10 }
  0xf7   : > { %v1084_v12 = vpop.f32.mrf.mxu0 }
  0xf8   : > { %v1102_v13 = vpop.f32.mrf.mxu1 }
  0xf9   : > { %v459_v14 = vpop.f32.mrf.mxu0 }
  0xfa   : > { %v625_v15 = vpop.f32.mrf.mxu1 }
  0xfb   : > { %v1085_v16 = vpop.f32.mrf.mxu0 }
  0xfc   : > { %v1103_v17 = vpop.f32.mrf.mxu1 }
  0xfd   : > { %v557_v18 = vpop.f32.mrf.mxu0 }
  0xfe   : > { %v740_v19 = vpop.f32.mrf.mxu1  ;;  %v563_v23 = vadd.f32 %v557_v18, %v506_v21 }
  0xff   : > { %v1096_v20 = vpop.f32.mrf.mxu0 }
 0x100   : > { %v1114_v22 = vpop.f32.mrf.mxu1  ;;  %v628_v28 = vadd.f32 %v622_v11, %v563_v23 }
 0x101   : > { %v560_v3 = vpop.f32.mrf.mxu0 }
 0x102   : > { %v743_v24 = vpop.f32.mrf.mxu1 }
 0x103   : > { %v1097_v25 = vpop.f32.mrf.mxu0 }
 0x104   : > { %v1115_v26 = vpop.f32.mrf.mxu1 }
 0x105   : > { %v675_v27 = vpop.f32.mrf.mxu0 }
 0x106   : > { %v858_v29 = vpop.f32.mrf.mxu1  ;;  %v681_v31 = vadd.f32 %v675_v27, %v628_v28 }
 0x107   : > { %v1108_v30 = vpop.f32.mrf.mxu0 }
 0x108   : > { %v1126_v32 = vpop.f32.mrf.mxu1  ;;  %v746_v36 = vadd.f32 %v740_v19, %v681_v31 }
 0x109   : > { %v678_v33 = vpop.f32.mrf.mxu0 }
 0x10a   : > { %v861_v34 = vpop.f32.mrf.mxu1 }
 0x10b   : > { %v1109_v35 = vpop.f32.mrf.mxu0 }
 0x10c   : > { %v1127_v37 = vpop.f32.mrf.mxu1 }
 0x10d   : > { %v793_v38 = vpop.f32.mrf.mxu0 }
 0x10e   : > { %v799_v39 = vadd.f32 %v793_v38, %v746_v36 }
 0x10f   : > { %v1120_v40 = vpop.f32.mrf.mxu0 }
 0x110   : > { %v864_v41 = vadd.f32 %v858_v29, %v799_v39 }
 0x111   : > { %v796_v42 = vpop.f32.mrf.mxu0 }
 0x112   : > { %v865_v43 = vpack.c.bf16 %v864_v41, %v864_v41  ;;  %v869_v44 = vsel %vm418_vm2, %v864_v41, 0.0  ;;  %v880_v45 = vmul.f32 %v864_v41, %v864_v41 }
 0x113   : > { %v870_v46 = vrot.slane %v869_v44, 4  ;;  %v1121_v47 = vpop.f32.mrf.mxu0 }
 0x114   : > { %867 = vst.msk [vmem:[%s1312_s9] sm:$0xf] %vm866_vm11, %v865_v43  ;;  %v881_v48 = vsel %vm418_vm2, %v880_v45, 0.0 }
 0x115   : > { %v871_v49 = vadd.f32 %v870_v46, %v869_v44  ;;  %v882_v50 = vrot.slane %v881_v48, 4 }
 0x117   : > { %v872_v51 = vrot.slane %v871_v49, 2  ;;  %v883_v52 = vadd.f32 %v882_v50, %v881_v48 }
 0x119   : > { %v873_v53 = vadd.f32 %v872_v51, %v871_v49  ;;  %v884_v54 = vrot.slane %v883_v52, 2 }
 0x11b   : > { %v874_v55 = vrot.slane %v873_v53, 1  ;;  %v885_v56 = vadd.f32 %v884_v54, %v883_v52 }
 0x11d   : > { %v875_v58 = vadd.f32 %v874_v55, %v873_v53  ;;  %v886_v59 = vrot.slane %v885_v56, 1 }
 0x11f   : > { %v876_v61 = vadd.f32 %v875_v58, %v868_v57  ;;  %v887_v62 = vadd.f32 %v886_v59, %v885_v56 }
 0x121   : > { %878 = vst.msk [vmem:[%s1426_s5] sm:$0x1] %vm877_vm12, %v876_v61  ;;  %v888_v63 = vadd.f32 %v887_v62, %v879_v60 }
 0x123   : > { %889 = vst.msk [vmem:[%s1427_s6] sm:$0x1] %vm877_vm12, %v888_v63 }
 0x124 PF: > { %s17_s25 = sadd.s32 1, %s1218_s25   ;;  %s1428_s21 = smov %s1210_s23 }
 0x125   : > { %p14_p12 = scmp.ge.s32.totalorder %s17_s25, 18   ;;  %s1429_s22 = smov %s1214_s24 }
 0x126   : > { %s1430_s23 = smov %s1433_s26  ;;  %s1431_s24 = smov %s1437_s27 }
 0x127   :  { %16 = sbr.rel (!%p14_p12) target bundleno = 3 (0x3), region = 96 }

// kernel: custom_unet_forward.11
= control target key start
LH: loop header
LB: loop body
LE: loop exit
PB: predicated region body
PF: predicated region fallthrough
CT: control target
= control target key end

     0   :  { %s444_s15 = smov 0   ;;  %s473_s0 = inlined_call_operand.vmem [shape: bf16[32,32], index: 0, kind: input, shape index: {}]   ;;  %s474_s1 = inlined_call_operand.vmem [shape: bf16[1,32], index: 1, kind: input, shape index: {}]   ;;  %s475_s2 = inlined_call_operand.vmem [shape: bf16[32,32], index: 2, kind: input, shape index: {}]   ;;  %s476_s3 = inlined_call_operand.vmem [shape: f32[1,32], index: 3, kind: input, shape index: {}]   ;;  %s477_s4 = inlined_call_operand.vmem [shape: bf16[32,32], index: 4, kind: output, shape index: {}]  }
   0x1 LB: > { %s365_s16 = sadd.s32 4294967295, %s415_s15   ;;  %p369_p0 = scmp.ge.s32.totalorder %s415_s15, 1  ;;  %s415_s15 = sphi %s444_s15, %s14_s15  }
   0x2   : > { %p163_p1 = scmp.lt.s32.totalorder %s415_s15, 3 }
   0x4   : > { %p164_p2 = pnand %p369_p0, %p163_p1 }
   0x5   : > { %s370_s21 = sshll.u32 (!%p164_p2), %s365_s16, 1 }
   0x6   : > { %167 = sbr.rel (%p164_p2) target bundleno = 230 (0xe6), region = 36  ;;  %p190_p3 = scmp.lt.s32.totalorder (!%p164_p2), %s370_s21, 3 }
   0xb   : > { %v407_v0 = vld [vmem:[%s475_s2 + $0x8] sm:$0xff]   ;;  %v209_v1 = vlaneseq  ;;  %v417_v2 = vmov 0.0   ;;  %v408_v3 = vld [vmem:[%s475_s2] sm:$0xff]   ;;  %vm418_vm0 = vmmov 0   ;;  %s479_s21 = smov (!%p190_p3, %s370_s21), 3  ;;  %vm253_vm3 = vcmask 261120  }
   0xc   : > { %389 = vmatprep.subr.bf16.mxu0 %v417_v2  ;;  %393 = vmatprep.mubr.msk.bf16.mxu0 %vm418_vm0, %v417_v2  ;;  %v205_v4 = vld [vmem:[%s474_s1] sm:$0x1]  ;;  %s371_s24 = sshll.u32 %s479_s21, 2  ;;  %vm306_vm4 = vcmask 257024  }
   0xd   : > { %390 = vmatpush3.bf16.msra.mxu0 %v407_v0  ;;  %v210_v5 = vshrl.u32 %v209_v1, 7  ;;  %v207_v6 = vpack.i.b16 %v205_v4, %v205_v4  ;;  %s193_s27 = scalar_lea.vmem %s473_s0, %s371_s24  ;;  %v375_v19 = vld [vmem:[%s476_s3] ss:$0 sm:$0xff]  ;;  %s199_s6 = scalar_lea.vmem %s477_s4, %s371_s24 }
   0xe   : > { %391 = vmatprep.subr.bf16.mxu0 %v417_v2  ;;  %v203_v10 = vld [vmem:[%s193_s27] sm:$0xf]  ;;  %v204_v11 = vld [vmem:[%s193_s27 + $0x4] sm:$0xf] }
   0xf   : > { %v211_v7 = vsub.s32 0, %v210_v5 }
  0x11   : > { %392 = vmatpush3.bf16.msra.mxu0 %v408_v3  ;;  %v212_v8 = vrot.slane %v207_v6, %v211_v7 }
  0x13   : > { %v374_v9 = vcombine.low %v212_v8, %v212_v8 }
  0x15   : > { %v217_v12 = vadd.bf16 %v374_v9, %v203_v10  ;;  %v218_v13 = vadd.bf16 %v374_v9, %v204_v11 }
  0x17   : > { %vm219_vm1 = vcmp.ge.bf16.partialorder %v217_v12, 0  ;;  %vm220_vm2 = vcmp.ge.bf16.partialorder %v218_v13, 0  ;;  %v221_v14 = vmul.bf16 1045249613, %v217_v12  ;;  %v222_v15 = vmul.bf16 1045249613, %v218_v13 }
  0x19   : > { %v223_v16 = vsel %vm219_vm1, %v217_v12, %v221_v14  ;;  %v224_v17 = vsel %vm220_vm2, %v218_v13, %v222_v15 }
  0x1a   : > { %v376_v18 = vcombine.low %v223_v16, %v224_v17 }
  0x1c   : > { %394 = vmatmul.mubr.msk.bf16.vlgmr.msra.gmra.mxu0 %vm253_vm3, %v376_v18 }
  0xdc   : > { %v291_v20 = vpop.f32.mrf.mxu0 }
  0xdd   : > { %v292_v21 = vadd.f32 %v375_v19, %v291_v20 }
  0xde   : > { %v395_v22 = vpop.f32.mrf.mxu0 }
  0xdf   : > { %v384_v23 = vpack.c.bf16 %v292_v21, %v292_v21 }
  0xe0   : > { %v294_v24 = vpop.f32.mrf.mxu0 }
  0xe1   : > { %307 = vst.msk [vmem:[%s199_s6] sm:$0xf] %vm306_vm4, %v384_v23  ;;  %v295_v25 = vadd.f32 %v375_v19, %v294_v24 }
  0xe2   : > { %v396_v26 = vpop.f32.mrf.mxu0 }
  0xe3   : > { %v385_v27 = vpack.c.bf16 %v295_v25, %v295_v25 }
  0xe5   : > { %308 = vst.msk [vmem:[%s199_s6 + $0x4] sm:$0xf] %vm306_vm4, %v385_v27 }
  0xe6 PF: > { %s14_s15 = sadd.s32 1, %s415_s15  }
  0xe7   : > { %p11_p4 = scmp.ge.s32.totalorder %s14_s15, 4  }
  0xe9   :  { %13 = sbr.rel (!%p11_p4) target bundleno = 1 (0x1), region = 66 }

// kernel: custom_unet_forward.12
= control target key start
LH: loop header
LB: loop body
LE: loop exit
PB: predicated region body
PF: predicated region fallthrough
CT: control target
= control target key end

     0   :  { %s549_s21 = smov 0   ;;  %s605_s0 = inlined_call_operand.vmem [shape: bf16[32,32], index: 0, kind: input, shape index: {}]   ;;  %s606_s1 = inlined_call_operand.vmem [shape: bf16[1,32], index: 1, kind: input, shape index: {}]   ;;  %s607_s2 = inlined_call_operand.vmem [shape: bf16[32,32], index: 2, kind: input, shape index: {}]   ;;  %s608_s3 = inlined_call_operand.vmem [shape: f32[1,32], index: 3, kind: input, shape index: {}]   ;;  %s609_s4 = inlined_call_operand.vmem [shape: bf16[32,32], index: 4, kind: output, shape index: {0}]   ;;  %s610_s5 = inlined_call_operand.vmem [shape: f32[1,32], index: 5, kind: output, shape index: {1}]   ;;  %s611_s6 = inlined_call_operand.vmem [shape: f32[1,32], index: 6, kind: output, shape index: {2}]  }
   0x1 LB: > { %s455_s22 = sadd.s32 4294967295, %s508_s21   ;;  %p459_p0 = scmp.ge.s32.totalorder %s508_s21, 1  ;;  %s508_s21 = sphi %s549_s21, %s17_s21  }
   0x2   : > { %p208_p1 = scmp.lt.s32.totalorder %s508_s21, 3 }
   0x4   : > { %p209_p2 = pnand %p459_p0, %p208_p1 }
   0x5   : > { %s460_s27 = sshll.u32 (!%p209_p2), %s455_s22, 1  ;;  %p472_p4 = scmp.ne.s32.totalorder (!%p209_p2), %s455_s22, 0 }
   0x6   : > { %212 = sbr.rel (%p209_p2) target bundleno = 251 (0xfb), region = 36  ;;  %p239_p3 = scmp.lt.s32.totalorder (!%p209_p2), %s460_s27, 3 }
   0xb   : > { %v500_v0 = vld [vmem:[%s607_s2 + $0x8] sm:$0xff]   ;;  %v257_v1 = vlaneseq  ;;  %v510_v2 = vmov 0.0   ;;  %v501_v3 = vld [vmem:[%s607_s2] sm:$0xff]   ;;  %vm511_vm0 = vmmov 0   ;;  %s613_s27 = smov (!%p239_p3, %s460_s27), 3  ;;  %v512_v14 = vmov 0  }
   0xc   : > { %480 = vmatprep.subr.bf16.mxu0 %v510_v2  ;;  %484 = vmatprep.mubr.msk.bf16.mxu0 %vm511_vm0, %v510_v2  ;;  %v253_v4 = vld [vmem:[%s606_s1] sm:$0x1]  ;;  %s461_s30 = sshll.u32 %s613_s27, 2  ;;  %vm297_vm1 = vcmask 261120   ;;  %vm350_vm2 = vcmask 257024  }
   0xd   : > { %481 = vmatpush3.bf16.msra.mxu0 %v500_v0  ;;  %v258_v5 = vshrl.u32 %v257_v1, 7  ;;  %v255_v6 = vpack.i.b16 %v253_v4, %v253_v4  ;;  %s242_s9 = scalar_lea.vmem %s605_s0, %s461_s30  ;;  %v465_v18 = vld [vmem:[%s608_s3] ss:$0 sm:$0xff]  ;;  %s248_s14 = scalar_lea.vmem %s609_s4, %s461_s30 }
   0xe   : > { %482 = vmatprep.subr.bf16.mxu0 %v510_v2  ;;  %v251_v10 = vld [vmem:[%s242_s9] sm:$0xf]  ;;  %v252_v11 = vld [vmem:[%s242_s9 + $0x4] sm:$0xf] }
   0xf   : > { %v259_v7 = vsub.s32 0, %v258_v5 }
  0x11   : > { %483 = vmatpush3.bf16.msra.mxu0 %v501_v3  ;;  %v260_v8 = vrot.slane %v255_v6, %v259_v7 }
  0x13   : > { %v464_v9 = vcombine.low %v260_v8, %v260_v8 }
  0x15   : > { %v265_v12 = vadd.bf16 %v464_v9, %v251_v10  ;;  %v266_v13 = vadd.bf16 %v464_v9, %v252_v11 }
  0x17   : > { %v267_v15 = vmax.bf16 %v512_v14, %v265_v12  ;;  %v268_v16 = vmax.bf16 %v512_v14, %v266_v13 }
  0x19   : > { %v466_v17 = vcombine.low %v267_v15, %v268_v16 }
  0x1b   : > { %485 = vmatmul.mubr.msk.bf16.vlgmr.msra.gmra.mxu0 %vm297_vm1, %v466_v17 }
  0xdb   : > { %v335_v19 = vpop.f32.mrf.mxu0 }
  0xdc   : > { %v336_v20 = vadd.f32 %v465_v18, %v335_v19 }
  0xdd   : > { %v486_v21 = vpop.f32.mrf.mxu0 }
  0xde   : > { %v475_v22 = vpack.c.bf16 %v336_v20, %v336_v20 }
  0xdf   : > { %v338_v23 = vpop.f32.mrf.mxu0 }
  0xe0   : > { %351 = vst.msk [vmem:[%s248_s14] sm:$0xf] %vm350_vm2, %v475_v22  ;;  %v339_v24 = vadd.f32 %v465_v18, %v338_v23  ;;  %356 = sbr.rel (%p472_p4) target bundleno = 231 (0xe7), region = 40 }
  0xe1   : > { %v487_v25 = vpop.f32.mrf.mxu0 }
  0xe2   : > { %v476_v26 = vpack.c.bf16 %v339_v24, %v339_v24 }
  0xe4   : > { %352 = vst.msk [vmem:[%s248_s14 + $0x4] sm:$0xf] %vm350_vm2, %v476_v26 }
  0xe5   : > { %vm357_vm3 = vcmask 253952   ;;  %v513_v27 = vmov 0.0  }
  0xe6   : > { %358 = vst.msk [vmem:[%s610_s5] sm:$0x1] %vm357_vm3, %v513_v27  ;;  %359 = vst.msk [vmem:[%s611_s6] sm:$0x1] %vm357_vm3, %v513_v27 }
  0xe7 PF: > { %v361_v28 = vsel %vm297_vm1, %v336_v20, 0.0  ;;  %v362_v29 = vsel %vm297_vm1, %v339_v24, 0.0  ;;  %v374_v30 = vmul.f32 %v336_v20, %v336_v20  ;;  %v375_v32 = vmul.f32 %v339_v24, %v339_v24 }
  0xe8   : > { %v363_v31 = vadd.f32 %v362_v29, %v361_v28  ;;  %vm371_vm4 = vcmask 253952  }
  0xe9   : > { %v376_v33 = vsel %vm297_vm1, %v374_v30, 0.0  ;;  %v377_v35 = vsel %vm297_vm1, %v375_v32, 0.0 }
  0xea   : > { %v364_v34 = vrot.slane %v363_v31, 4  ;;  %v378_v36 = vadd.f32 %v377_v35, %v376_v33 }
  0xec   : > { %v365_v37 = vadd.f32 %v364_v34, %v363_v31  ;;  %v379_v38 = vrot.slane %v378_v36, 4 }
  0xed   : > { %v360_v44 = vld [vmem:[%s610_s5] sm:$0x1] }
  0xee   : > { %v366_v39 = vrot.slane %v365_v37, 2  ;;  %v380_v40 = vadd.f32 %v379_v38, %v378_v36  ;;  %v373_v49 = vld [vmem:[%s611_s6] sm:$0x1] }
  0xf0   : > { %v367_v41 = vadd.f32 %v366_v39, %v365_v37  ;;  %v381_v42 = vrot.slane %v380_v40, 2 }
  0xf2   : > { %v368_v43 = vrot.slane %v367_v41, 1  ;;  %v382_v45 = vadd.f32 %v381_v42, %v380_v40 }
  0xf4   : > { %v369_v46 = vadd.f32 %v368_v43, %v367_v41  ;;  %v383_v47 = vrot.slane %v382_v45, 1 }
  0xf6   : > { %v370_v48 = vadd.f32 %v369_v46, %v360_v44  ;;  %v384_v50 = vadd.f32 %v383_v47, %v382_v45 }
  0xf8   : > { %372 = vst.msk [vmem:[%s610_s5] sm:$0x1] %vm371_vm4, %v370_v48  ;;  %v385_v51 = vadd.f32 %v384_v50, %v373_v49 }
  0xfa   : > { %386 = vst.msk [vmem:[%s611_s6] sm:$0x1] %vm371_vm4, %v385_v51 }
  0xfb PF: > { %s17_s21 = sadd.s32 1, %s508_s21  }
  0xfc   : > { %p14_p5 = scmp.ge.s32.totalorder %s17_s21, 4  }
  0xfe   :  { %16 = sbr.rel (!%p14_p5) target bundleno = 1 (0x1), region = 86 }

// kernel: custom_unet_forward.10
= control target key start
LH: loop header
LB: loop body
LE: loop exit
PB: predicated region body
PF: predicated region fallthrough
CT: control target
= control target key end

     0   :  { %s1330_s21 = smov 0   ;;  %s1332_s22 = smov 0   ;;  %s1515_s0 = inlined_call_operand.vmem [shape: bf16[2,10,5,32], index: 0, kind: input, shape index: {}, may-alias: {0,1}]   ;;  %s1516_s1 = inlined_call_operand.vmem [shape: bf16[2,10,5,32], index: 1, kind: input, shape index: {}, may-alias: {0,1}]   ;;  %s1517_s2 = inlined_call_operand.vmem [shape: bf16[1,32], index: 2, kind: input, shape index: {}]   ;;  %s1518_s3 = inlined_call_operand.vmem [shape: bf16[8,32,32], index: 3, kind: input, shape index: {}]   ;;  %s1519_s4 = inlined_call_operand.vmem [shape: bf16[2,4,4,32], index: 4, kind: output, shape index: {0}]   ;;  %s1520_s5 = inlined_call_operand.vmem [shape: f32[1,32], index: 5, kind: output, shape index: {1}]   ;;  %s1521_s6 = inlined_call_operand.vmem [shape: f32[1,32], index: 6, kind: output, shape index: {2}]  }
   0x1   :  { %s1334_s23 = smov 0   ;;  %s1336_s24 = smov 0  }
   0x2   :  { %s1338_s25 = smov 0  }
   0x3 LB: > { %s26_s26 = sadd.s32 1, %s1282_s23  ;;  %s29_s27 = sadd.s32 1, %s1286_s24  ;;  %s1290_s25 = sphi %s1338_s25, %s17_s25   ;;  %s1286_s24 = sphi %s1336_s24, %s1525_s24   ;;  %s1282_s23 = sphi %s1334_s23, %s1524_s23   ;;  %s1278_s22 = sphi %s1332_s22, %s1523_s22   ;;  %s1274_s21 = sphi %s1330_s21, %s1522_s21  }
   0x4   : > { %p27_p0 = scmp.ge.s32.totalorder %s26_s26, 4  ;;  %p1037_p1 = scmp.ge.s32.totalorder %s1290_s25, 1 }
   0x5   : > { %p249_p2 = scmp.lt.s32.totalorder %s1290_s25, 9 }
   0x6   : > { %s1527_s26 = smov (%p27_p0, %s26_s26), 0  ;;  %s1529_s27 = smov (!%p27_p0, %s29_s27), %s1286_s24 }
   0x7   : > { %p250_p3 = pnand %p1037_p1, %p249_p2  ;;  %p31_p4 = scmp.ge.s32.totalorder %s1529_s27, 2 }
   0x8   : > { %s1038_s28 = sshll.u32 (!%p250_p3), %s1274_s21, 1  ;;  %p297_p5 = scmp.lt.s32.totalorder (!%p250_p3), %s1278_s22, 1 }
   0x9   : > { %s1531_s27 = smov (%p31_p4, %s1529_s27), 0  ;;  %253 = sbr.rel (%p250_p3) target bundleno = 289 (0x121), region = 36 }
   0xa   : > { %p299_p6 = scmp.lt.s32.totalorder (!%p250_p3), %s1038_s28, 9  ;;  %s1103_s29 = sadd.s32 (!%p250_p3), 2, %s1038_s28 }
   0xb   : > { %p310_p7 = scmp.lt.s32.totalorder (!%p250_p3), %s1103_s29, 9  ;;  %p320_p8 = scmp.lt.s32.totalorder (!%p250_p3), %s1274_s21, 3 }
   0xc   : > { %p328_p9 = scmp.eq.s32.totalorder (!%p250_p3), %s1278_s22, 0  ;;  %p329_p10 = scmp.eq.s32.totalorder (!%p250_p3), %s1274_s21, 0 }
   0xe   : > { %s298_s30 = scalar_select %p297_p5, %s1278_s22, 1 }
   0xf   : > { %s1533_s28 = smov (!%p299_p6, %s1038_s28), 9  ;;  %s1535_s29 = smov (!%p310_p7, %s1103_s29), 9 }
  0x10   : > { %s1192_s7 = smul.u32 10, %s298_s30  ;;  %s1042_s13 = sshll.u32 %s298_s30, 2 }
  0x11   : > { %s1537_s21 = smov (!%p320_p8, %s1274_s21), 3  ;;  %p330_p11 = pnand %p329_p10, %p328_p9 }
  0x12   : > { %s302_s8 = sadd.s32 %s1192_s7, %s1533_s28  ;;  %s313_s14 = sadd.s32 %s1192_s7, %s1535_s29 }
  0x13   : > { %s1039_s9 = sshll.u32 %s302_s8, 2  ;;  %s1041_s15 = sshll.u32 %s313_s14, 2 }
  0x14   : > { %s1373_s12 = scalar_lea.vmem %s1515_s0, %s1039_s9  ;;  %s323_s16 = sadd.s32 %s1042_s13, %s1537_s21 }
  0x15   : > { %s1379_s19 = scalar_lea.vmem %s1516_s1, %s1041_s15  ;;  %s1043_s20 = sshll.u32 %s323_s16, 1 }
  0x16   : > { %s1384_s8 = scalar_lea.vmem %s1519_s4, %s1043_s20  ;;  %333 = sbr.rel (%p330_p11) target bundleno = 29 (0x1d), region = 40 }
  0x1b   : > { %vm334_vm0 = vcmask 253952   ;;  %v1292_v0 = vmov 0.0  }
  0x1c   : > { %335 = vst.msk [vmem:[%s1520_s5] sm:$0x1] %vm334_vm0, %v1292_v0  ;;  %336 = vst.msk [vmem:[%s1521_s6] sm:$0x1] %vm334_vm0, %v1292_v0 }
  0x1d PF: > { %v1236_v1 = vld [vmem:[%s1518_s3 + $0x8] sm:$0xff]   ;;  %v343_v2 = vlaneseq  ;;  %v1293_v3 = vmov 0.0   ;;  %v1237_v4 = vld [vmem:[%s1518_s3 + $0x18] sm:$0xff]   ;;  %v1238_v5 = vld [vmem:[%s1518_s3] sm:$0xff]   ;;  %vm1294_vm1 = vmmov 0   ;;  %vm396_vm2 = vcmask 261120  }
  0x1e   : > { %1136 = vmatprep.subr.bf16.mxu1 %v1293_v3  ;;  %1128 = vmatprep.subr.bf16.mxu0 %v1293_v3  ;;  %v1239_v7 = vld [vmem:[%s1518_s3 + $0x10] sm:$0xff]   ;;  %v337_v8 = vld [vmem:[%s1517_s2] sm:$0x1]  ;;  %v339_v13 = vld [vmem:[%s1373_s12 + $0x4] sm:$0x7]  ;;  %vm895_vm7 = vcmask 257024  }
  0x1f   : > { %1137 = vmatpush3.bf16.msra.mxu1 %v1236_v1  ;;  %1140 = vmatprep.mubr.msk.bf16.mxu1 %vm1294_vm1, %v1293_v3  ;;  %v344_v6 = vshrl.u32 %v343_v2, 7  ;;  %v341_v10 = vpack.i.b16 %v337_v8, %v337_v8  ;;  %v338_v11 = vld [vmem:[%s1373_s12] sm:$0x7]  ;;  %v1240_v16 = vld [vmem:[%s1518_s3 + $0x38] sm:$0xff]   ;;  %v1242_v24 = vld [vmem:[%s1518_s3 + $0x30] sm:$0xff]   ;;  %vm892_vm8 = vcmask 254976  }
  0x20   : > { %1129 = vmatpush3.bf16.msra.mxu0 %v1237_v4  ;;  %1138 = vmatprep.subr.bf16.mxu1 %v1293_v3  ;;  %v355_v23 = vld [vmem:[%s1379_s19] sm:$0x7]  ;;  %v1241_v30 = vld [vmem:[%s1518_s3 + $0x28] sm:$0xff]   ;;  %v1244_v34 = vld [vmem:[%s1518_s3 + $0x58] sm:$0xff]   ;;  %vm904_vm9 = vcmask 253952  }
  0x21   : > { %1130 = vmatprep.subr.bf16.mxu0 %v1293_v3  ;;  %v345_v9 = vsub.s32 0, %v344_v6  ;;  %1132 = vmatprep.mubr.msk.bf16.mxu0 %vm1294_vm1, %v1293_v3  ;;  %v356_v36 = vld [vmem:[%s1379_s19 + $0x4] sm:$0x7]  ;;  %v1246_v45 = vld [vmem:[%s1518_s3 + $0x50] sm:$0xff]   ;;  %v1245_v50 = vld [vmem:[%s1518_s3 + $0x48] sm:$0xff]  }
  0x22   : > { %v1243_v44 = vld [vmem:[%s1518_s3 + $0x20] sm:$0xff]   ;;  %v1248_v51 = vld [vmem:[%s1518_s3 + $0x78] sm:$0xff]   ;;  %v1250_v56 = vld [vmem:[%s1518_s3 + $0x70] sm:$0xff]  }
  0x23   : > { %1139 = vmatpush3.bf16.msra.mxu1 %v1238_v5  ;;  %v346_v12 = vrot.slane %v341_v10, %v345_v9  ;;  %v1247_v55 = vld [vmem:[%s1518_s3 + $0x40] sm:$0xff]   ;;  %v1249_v58 = vld [vmem:[%s1518_s3 + $0x68] sm:$0xff]  }
  0x24   : > { %1131 = vmatpush3.bf16.msra.mxu0 %v1239_v7  ;;  %1152 = vmatprep.subr.bf16.mxu1 %v1293_v3  ;;  %v1251_v59 = vld [vmem:[%s1518_s3 + $0x60] sm:$0xff]  }
  0x25   : > { %1144 = vmatprep.subr.bf16.mxu0 %v1293_v3  ;;  %v347_v14 = vadd.bf16 %v346_v12, %v338_v11  ;;  %v348_v15 = vadd.bf16 %v346_v12, %v339_v13  ;;  %v357_v25 = vadd.bf16 %v355_v23, %v346_v12  ;;  %v358_v40 = vadd.bf16 %v356_v36, %v346_v12 }
  0x27   : > { %vm349_vm3 = vcmp.ge.bf16.partialorder %v347_v14, 0  ;;  %v351_v17 = vmul.bf16 1045249613, %v347_v14  ;;  %vm350_vm4 = vcmp.ge.bf16.partialorder %v348_v15, 0  ;;  %v352_v18 = vmul.bf16 1045249613, %v348_v15 }
  0x28   : > { %vm359_vm5 = vcmp.ge.bf16.partialorder %v357_v25, 0  ;;  %v361_v31 = vmul.bf16 1045249613, %v357_v25  ;;  %vm360_vm6 = vcmp.ge.bf16.partialorder %v358_v40, 0  ;;  %v362_v43 = vmul.bf16 1045249613, %v358_v40 }
  0x29   : > { %v353_v19 = vsel %vm349_vm3, %v347_v14, %v351_v17  ;;  %v354_v20 = vsel %vm350_vm4, %v348_v15, %v352_v18 }
  0x2a   : > { %v1048_v21 = vcombine.low %v353_v19, %v353_v19  ;;  %1141 = vmatmul.mubr.msk.bf16.vlgmr.msra.gmra.mxu1 %vm396_vm2, %v353_v19  ;;  %v1066_v22 = vcombine.low %v354_v20, %v354_v20  ;;  %v363_v35 = vsel %vm359_vm5, %v357_v25, %v361_v31  ;;  %v364_v47 = vsel %vm360_vm6, %v358_v40, %v362_v43 }
  0x2b   : > { %1153 = vmatpush3.bf16.msra.mxu1 %v1240_v16  ;;  %1156 = vmatprep.mubr.msk.bf16.mxu1 %vm1294_vm1, %v1293_v3  ;;  %v1081_v39 = vcombine.low %v363_v35, %v363_v35  ;;  %v1096_v48 = vcombine.low %v364_v47, %v364_v47 }
  0x2c   : > { %v378_v26 = vshrl.u32 %v1048_v21, 16  ;;  %v380_v27 = vshll.u32 %v1048_v21, 16  ;;  %1154 = vmatprep.subr.bf16.mxu1 %v1293_v3  ;;  %v565_v28 = vshrl.u32 %v1066_v22, 16  ;;  %v567_v29 = vshll.u32 %v1066_v22, 16 }
  0x2d   : > { %v697_v41 = vshrl.u32 %v1081_v39, 16  ;;  %v699_v42 = vshll.u32 %v1081_v39, 16  ;;  %v831_v52 = vshll.u32 %v1096_v48, 16  ;;  %v829_v53 = vshrl.u32 %v1096_v48, 16  ;;  %v894_v48 = vld [vmem:[%s1520_s5] sm:$0x1] }
  0x2e   : > { %v382_v32 = vrot.slane %v380_v27, 1  ;;  %v569_v33 = vrot.slane %v567_v29, 1 }
  0x2f   : > { %1155 = vmatpush3.bf16.msra.mxu1 %v1242_v24  ;;  %v701_v46 = vrot.slane %v699_v42, 1  ;;  %v833_v54 = vrot.slane %v831_v52, 1 }
  0x30   : > { %v383_v37 = vor.u32 %v382_v32, %v378_v26  ;;  %v570_v38 = vor.u32 %v569_v33, %v565_v28  ;;  %1168 = vmatprep.subr.bf16.mxu1 %v1293_v3 }
  0x31   : > { %v702_v49 = vor.u32 %v701_v46, %v697_v41  ;;  %v834_v57 = vor.u32 %v833_v54, %v829_v53 }
  0x32   : > { %1133 = vmatmul.mubr.msk.bf16.vlgmr.msra.gmra.mxu0 %vm396_vm2, %v383_v37  ;;  %1157 = vmatmul.mubr.msk.bf16.vlgmr.msra.gmra.mxu1 %vm396_vm2, %v570_v38 }
  0x33   : > { %1145 = vmatpush3.bf16.msra.mxu0 %v1241_v30  ;;  %1169 = vmatpush3.bf16.msra.mxu1 %v1244_v34 }
  0x34   : > { %1146 = vmatprep.subr.bf16.mxu0 %v1293_v3  ;;  %1148 = vmatprep.mubr.msk.bf16.mxu0 %vm1294_vm1, %v1293_v3 }
  0x35   : > { %1170 = vmatprep.subr.bf16.mxu1 %v1293_v3  ;;  %1172 = vmatprep.mubr.msk.bf16.mxu1 %vm1294_vm1, %v1293_v3 }
  0x37   : > { %1147 = vmatpush3.bf16.msra.mxu0 %v1243_v44  ;;  %1171 = vmatpush3.bf16.msra.mxu1 %v1246_v45 }
  0x38   : > { %1160 = vmatprep.subr.bf16.mxu0 %v1293_v3  ;;  %1184 = vmatprep.subr.bf16.mxu1 %v1293_v3 }
  0x3a   : > { %1149 = vmatmul.mubr.msk.bf16.vlgmr.msra.gmra.mxu0 %vm396_vm2, %v354_v20  ;;  %1173 = vmatmul.mubr.msk.bf16.vlgmr.msra.gmra.mxu1 %vm396_vm2, %v702_v49 }
  0x3b   : > { %1161 = vmatpush3.bf16.msra.mxu0 %v1245_v50  ;;  %1185 = vmatpush3.bf16.msra.mxu1 %v1248_v51  ;;  %v906_v51 = vld [vmem:[%s1521_s6] sm:$0x1] }
  0x3c   : > { %1162 = vmatprep.subr.bf16.mxu0 %v1293_v3  ;;  %1164 = vmatprep.mubr.msk.bf16.mxu0 %vm1294_vm1, %v1293_v3 }
  0x3d   : > { %1186 = vmatprep.subr.bf16.mxu1 %v1293_v3  ;;  %1188 = vmatprep.mubr.msk.bf16.mxu1 %vm1294_vm1, %v1293_v3 }
  0x3f   : > { %1163 = vmatpush3.bf16.msra.mxu0 %v1247_v55  ;;  %1187 = vmatpush3.bf16.msra.mxu1 %v1250_v56 }
  0x40   : > { %1176 = vmatprep.subr.bf16.mxu0 %v1293_v3 }
  0x42   : > { %1165 = vmatmul.mubr.msk.bf16.vlgmr.msra.gmra.mxu0 %vm396_vm2, %v363_v35  ;;  %1189 = vmatmul.mubr.msk.bf16.vlgmr.msra.gmra.mxu1 %vm396_vm2, %v834_v57 }
  0x43   : > { %1177 = vmatpush3.bf16.msra.mxu0 %v1249_v58  ;;  %1180 = vmatprep.mubr.msk.bf16.mxu0 %vm1294_vm1, %v1293_v3 }
  0x44   : > { %1178 = vmatprep.subr.bf16.mxu0 %v1293_v3 }
  0x47   : > { %1179 = vmatpush3.bf16.msra.mxu0 %v1251_v59 }
  0x4a   : > { %1181 = vmatmul.mubr.msk.bf16.vlgmr.msra.gmra.mxu0 %vm396_vm2, %v364_v47 }
  0xea   : > { %v489_v60 = vpop.f32.mrf.mxu1 }
  0xec   : > { %v1142_v61 = vpop.f32.mrf.mxu1 }
  0xee   : > { %v492_v62 = vpop.f32.mrf.mxu1 }
  0xf0   : > { %v1143_v63 = vpop.f32.mrf.mxu1 }
  0xf2   : > { %v434_v0 = vpop.f32.mrf.mxu0  ;;  %v620_v1 = vpop.f32.mrf.mxu1 }
  0xf3   : > { %v490_v3 = vadd.f32 %v489_v60, %v434_v0 }
  0xf4   : > { %v1134_v2 = vpop.f32.mrf.mxu0  ;;  %v1158_v4 = vpop.f32.mrf.mxu1 }
  0xf6   : > { %v437_v5 = vpop.f32.mrf.mxu0  ;;  %v623_v6 = vpop.f32.mrf.mxu1 }
  0xf8   : > { %v1135_v7 = vpop.f32.mrf.mxu0  ;;  %v1159_v8 = vpop.f32.mrf.mxu1 }
  0xfa   : > { %v549_v9 = vpop.f32.mrf.mxu0  ;;  %v752_v10 = vpop.f32.mrf.mxu1 }
  0xfb   : > { %v555_v15 = vadd.f32 %v549_v9, %v490_v3 }
  0xfc   : > { %v1150_v11 = vpop.f32.mrf.mxu0  ;;  %v1174_v12 = vpop.f32.mrf.mxu1 }
  0xfd   : > { %v626_v20 = vadd.f32 %v620_v1, %v555_v15 }
  0xfe   : > { %v552_v13 = vpop.f32.mrf.mxu0  ;;  %v755_v14 = vpop.f32.mrf.mxu1 }
 0x100   : > { %v1151_v16 = vpop.f32.mrf.mxu0  ;;  %v1175_v17 = vpop.f32.mrf.mxu1 }
 0x102   : > { %v681_v18 = vpop.f32.mrf.mxu0  ;;  %v884_v19 = vpop.f32.mrf.mxu1 }
 0x103   : > { %v687_v23 = vadd.f32 %v681_v18, %v626_v20 }
 0x104   : > { %v1166_v21 = vpop.f32.mrf.mxu0  ;;  %v1190_v22 = vpop.f32.mrf.mxu1 }
 0x105   : > { %v758_v28 = vadd.f32 %v752_v10, %v687_v23 }
 0x106   : > { %v684_v24 = vpop.f32.mrf.mxu0  ;;  %v887_v25 = vpop.f32.mrf.mxu1 }
 0x108   : > { %v1167_v26 = vpop.f32.mrf.mxu0  ;;  %v1191_v27 = vpop.f32.mrf.mxu1 }
 0x10a   : > { %v813_v29 = vpop.f32.mrf.mxu0 }
 0x10b   : > { %v819_v30 = vadd.f32 %v813_v29, %v758_v28 }
 0x10c   : > { %v1182_v31 = vpop.f32.mrf.mxu0 }
 0x10d   : > { %v890_v32 = vadd.f32 %v884_v19, %v819_v30 }
 0x10e   : > { %v816_v33 = vpop.f32.mrf.mxu0 }
 0x10f   : > { %v891_v34 = vpack.c.bf16 %v890_v32, %v890_v32  ;;  %v896_v35 = vsel %vm895_vm7, %v890_v32, 0.0  ;;  %v907_v36 = vmul.f32 %v890_v32, %v890_v32 }
 0x110   : > { %v897_v37 = vrot.slane %v896_v35, 4  ;;  %v1183_v38 = vpop.f32.mrf.mxu0 }
 0x111   : > { %893 = vst.msk [vmem:[%s1384_s8] sm:$0x3] %vm892_vm8, %v891_v34  ;;  %v908_v39 = vsel %vm895_vm7, %v907_v36, 0.0 }
 0x112   : > { %v898_v40 = vadd.f32 %v897_v37, %v896_v35  ;;  %v909_v41 = vrot.slane %v908_v39, 4 }
 0x114   : > { %v899_v42 = vrot.slane %v898_v40, 2  ;;  %v910_v43 = vadd.f32 %v909_v41, %v908_v39 }
 0x116   : > { %v900_v44 = vadd.f32 %v899_v42, %v898_v40  ;;  %v911_v45 = vrot.slane %v910_v43, 2 }
 0x118   : > { %v901_v46 = vrot.slane %v900_v44, 1  ;;  %v912_v47 = vadd.f32 %v911_v45, %v910_v43 }
 0x11a   : > { %v902_v49 = vadd.f32 %v901_v46, %v900_v44  ;;  %v913_v50 = vrot.slane %v912_v47, 1 }
 0x11c   : > { %v903_v52 = vadd.f32 %v902_v49, %v894_v48  ;;  %v914_v53 = vadd.f32 %v913_v50, %v912_v47 }
 0x11e   : > { %905 = vst.msk [vmem:[%s1520_s5] sm:$0x1] %vm904_vm9, %v903_v52  ;;  %v915_v54 = vadd.f32 %v914_v53, %v906_v51 }
 0x120   : > { %916 = vst.msk [vmem:[%s1521_s6] sm:$0x1] %vm904_vm9, %v915_v54 }
 0x121 PF: > { %s17_s25 = sadd.s32 1, %s1290_s25   ;;  %s1522_s21 = smov %s1282_s23 }
 0x122   : > { %p14_p12 = scmp.ge.s32.totalorder %s17_s25, 10   ;;  %s1523_s22 = smov %s1286_s24 }
 0x123   : > { %s1524_s23 = smov %s1527_s26  ;;  %s1525_s24 = smov %s1531_s27 }
 0x124   :  { %16 = sbr.rel (!%p14_p12) target bundleno = 3 (0x3), region = 96 }

// kernel: custom_unet_forward.13
= control target key start
LH: loop header
LB: loop body
LE: loop exit
PB: predicated region body
PF: predicated region fallthrough
CT: control target
= control target key end

     0   :  { %s2595_s21 = smov 0   ;;  %s2597_s22 = smov 0   ;;  %s2989_s0 = inlined_call_operand.vmem [shape: bf16[2,6,6,32], index: 0, kind: input, shape index: {}, may-alias: {0,1,2}]   ;;  %s2990_s1 = inlined_call_operand.vmem [shape: bf16[2,6,6,32], index: 1, kind: input, shape index: {}, may-alias: {0,1,2}]   ;;  %s2991_s2 = inlined_call_operand.vmem [shape: bf16[2,6,6,32], index: 2, kind: input, shape index: {}, may-alias: {0,1,2}]   ;;  %s2992_s3 = inlined_call_operand.vmem [shape: bf16[1,32], index: 3, kind: input, shape index: {}]   ;;  %s2993_s4 = inlined_call_operand.vmem [shape: bf16[9,32,64], index: 4, kind: input, shape index: {}]   ;;  %s2994_s5 = inlined_call_operand.vmem [shape: bf16[2,6,6,32], index: 5, kind: input, shape index: {}, may-alias: {5,6,7}]   ;;  %s2995_s6 = inlined_call_operand.vmem [shape: bf16[2,6,6,32], index: 6, kind: input, shape index: {}, may-alias: {5,6,7}]   ;;  %s2996_s7 = inlined_call_operand.vmem [shape: bf16[2,6,6,32], index: 7, kind: input, shape index: {}, may-alias: {5,6,7}]   ;;  %s2997_s8 = inlined_call_operand.vmem [shape: bf16[1,32], index: 8, kind: input, shape index: {}]   ;;  %s2998_s9 = inlined_call_operand.vmem [shape: bf16[9,32,64], index: 9, kind: input, shape index: {}]   ;;  %s2999_s10 = inlined_call_operand.vmem [shape: bf16[2,8,4,32], index: 10, kind: output, shape index: {0}]   ;;  %s3000_s11 = inlined_call_operand.vmem [shape: f32[1,64], index: 11, kind: output, shape index: {1}]   ;;  %s3001_s12 = inlined_call_operand.vmem [shape: f32[1,64], index: 12, kind: output, shape index: {2}]  }
   0x1   :  { %3007 = sst [smem:[#allocation7_spill]] %s2992_s3  ;;  %s2599_s23 = smov 0  }
   0x2   :  { %3008 = sst [smem:[#allocation8_spill]] %s2993_s4  ;;  %s2601_s24 = smov 0  }
   0x3   :  { %3009 = sst [smem:[#allocation9_spill]] %s2997_s8  ;;  %s2603_s25 = smov 0  }
   0x4   :  { %3010 = sst [smem:[#allocation10_spill]] %s2998_s9 }
   0x5 LB: > { %3011 = sst [smem:[#allocation2_spill]] %s2514_s23  ;;  %s32_s26 = sadd.s32 1, %s2514_s23  ;;  %s2522_s25 = sphi %s2603_s25, %s23_s25   ;;  %s2518_s24 = sphi %s2601_s24, %s3026_s24   ;;  %s2514_s23 = sphi %s2599_s23, %s3025_s23   ;;  %s2510_s22 = sphi %s2597_s22, %s3024_s22   ;;  %s2506_s21 = sphi %s2595_s21, %s3023_s21  }
   0x6   : > { %3012 = sst [smem:[#allocation3_spill]] %s2518_s24  ;;  %s35_s27 = sadd.s32 1, %s2518_s24 }
   0x7   : > { %3013 = sst [smem:[#allocation4_spill]] %s2522_s25  ;;  %p33_p0 = scmp.ge.s32.totalorder %s32_s26, 4 }
   0x8   : > { %p2066_p1 = scmp.ge.s32.totalorder %s2522_s25, 1  ;;  %p467_p2 = scmp.lt.s32.totalorder %s2522_s25, 9 }
   0x9   : > { %s3028_s26 = smov (%p33_p0, %s32_s26), 0  ;;  %s3030_s27 = smov (!%p33_p0, %s35_s27), %s2518_s24 }
   0xa   : > { %3014 = sst [smem:[#allocation5_spill]] %s3028_s26  ;;  %p468_p3 = pnand %p2066_p1, %p467_p2 }
   0xb   : > { %p37_p4 = scmp.ge.s32.totalorder %s3030_s27, 2  ;;  %p560_p5 = scmp.lt.s32.totalorder (!%p468_p3), %s2510_s22, 1 }
   0xc   : > { %471 = sbr.rel (%p468_p3) target bundleno = 443 (0x1bb), region = 60  ;;  %p562_p6 = scmp.lt.s32.totalorder (!%p468_p3), %s2506_s21, 5 }
   0xd   : > { %s3032_s27 = smov (%p37_p4, %s3030_s27), 0  ;;  %s568_s28 = sadd.s32 (!%p468_p3), 1, %s2506_s21 }
   0xe   : > { %3015 = sst [smem:[#allocation6_spill]] %s3032_s27  ;;  %s578_s29 = sadd.s32 (!%p468_p3), 2, %s2506_s21 }
   0xf   : > { %p571_p7 = scmp.lt.s32.totalorder (!%p468_p3), %s568_s28, 5  ;;  %p581_p8 = scmp.lt.s32.totalorder (!%p468_p3), %s578_s29, 5 }
  0x10   : > { %s2073_s15 = sshll.u32 (!%p468_p3), %s2506_s21, 1  ;;  %p627_p10 = scmp.eq.s32.totalorder (!%p468_p3), %s2510_s22, 0 }
  0x11   : > { %s561_s30 = scalar_select %p560_p5, %s2510_s22, 1 }
  0x12   : > { %s563_s13 = scalar_select %p562_p6, %s2506_s21, 5 }
  0x13   : > { %s2401_s14 = smul.u32 6, %s561_s30  ;;  %p2636_p9 = scmp.lt.s32.totalorder %s2073_s15, 7 }
  0x14   : > { %s2074_s19 = sshll.u32 %s561_s30, 3  ;;  %s3034_s28 = smov (!%p571_p7, %s568_s28), 5 }
  0x15   : > { %s565_s16 = sadd.s32 %s2401_s14, %s563_s13  ;;  %s3036_s29 = smov (!%p581_p8, %s578_s29), 5 }
  0x16   : > { %s2640_s18 = sshll.u32 %s565_s16, 2  ;;  %s574_s13 = sadd.s32 %s2401_s14, %s3034_s28 }
  0x17   : > { %s567_s26 = scalar_lea.vmem %s2989_s0, %s2640_s18  ;;  %s2651_s9 = sshll.u32 %s574_s13, 2 }
  0x18   : > { %s584_s16 = sadd.s32 %s2401_s14, %s3036_s29  ;;  %s576_s30 = scalar_lea.vmem %s2990_s1, %s2651_s9 }
  0x19   : > { %s2657_s4 = sshll.u32 %s584_s16, 2  ;;  %s604_s22 = scalar_lea.vmem %s2995_s6, %s2651_s9 }
  0x1a   : > { %s586_s23 = scalar_lea.vmem %s2991_s2, %s2657_s4  ;;  %s614_s29 = scalar_lea.vmem %s2996_s7, %s2657_s4 }
  0x1b   : > { %p628_p11 = scmp.eq.s32.totalorder %s2506_s21, 0  ;;  %s3038_s15 = smov (!%p2636_p9, %s2073_s15), 7 }
  0x1c   : > { %s622_s3 = sadd.s32 %s2074_s19, %s3038_s15 }
  0x1d   : > { %p629_p12 = pnand %p628_p11, %p627_p10  ;;  %s2075_s8 = sshll.u32 %s622_s3, 1 }
  0x1e   : > { %s2677_s27 = scalar_lea.vmem %s2999_s10, %s2075_s8 }
  0x1f   : > { %632 = sbr.rel (%p629_p12) target bundleno = 38 (0x26), region = 64 }
  0x24   : > { %vm633_vm0 = vcmask 516096   ;;  %v2524_v0 = vmov 0.0  }
  0x25   : > { %634 = vst.msk [vmem:[%s3000_s11] sm:$0x1] %vm633_vm0, %v2524_v0  ;;  %635 = vst.msk [vmem:[%s3001_s12] sm:$0x1] %vm633_vm0, %v2524_v0 }
  0x26 PF: > { %s3017_s17 = sld [smem:[#allocation8_spill]]  ;;  %v641_v2 = vlaneseq  ;;  %v2525_v3 = vmov 0.0   ;;  %vm2526_vm1 = vmmov 0   ;;  %v637_v11 = vld [vmem:[%s567_s26] sm:$0x7]  ;;  %vm684_vm2 = vcmask 261120   ;;  %s3021_s26 = scalar_lea.vmem %s2994_s5, %s2640_s18 }
  0x27   : > { %2265 = vmatprep.subr.bf16.mxu1 %v2525_v3  ;;  %2257 = vmatprep.subr.bf16.mxu0 %v2525_v3  ;;  %s3018_s25 = sld [smem:[#allocation7_spill]]  ;;  %v650_v14 = vld [vmem:[%s586_s23] sm:$0x7]  ;;  %v2527_v17 = vmov 0   ;;  %vm1848_vm3 = vcmask 519168   ;;  %vm1832_vm4 = vcmask 254976  }
  0x28   : > { %2269 = vmatprep.mubr.msk.bf16.mxu1 %vm2526_vm1, %v2525_v3  ;;  %v2698_v6 = vshrl.u32 %v641_v2, 7  ;;  %2261 = vmatprep.mubr.msk.bf16.mxu0 %vm2526_vm1, %v2525_v3  ;;  %v647_v16 = vld [vmem:[%s576_s30] sm:$0x7]  ;;  %s3019_s3 = sld [smem:[#allocation9_spill]]  ;;  %s2529_s20 = smov 96   ;;  %vm1857_vm5 = vcmask 516096  }
  0x29   : > { %s3020_s19 = sld [smem:[#allocation10_spill]]  ;;  %v1234_v54 = vld [vmem:[%s3021_s26] sm:$0x7] }
  0x2a   : > { %v643_v9 = vsub.s32 0, %v2698_v6  ;;  %v1244_v55 = vld [vmem:[%s604_s22] sm:$0x7] }
  0x2c   : > { %v2448_v1 = vld [vmem:[%s3017_s17 + $0x8] sm:$0xff]   ;;  %v2449_v4 = vld [vmem:[%s3017_s17 + $0x18] sm:$0xff]   ;;  %v2450_v5 = vld [vmem:[%s3017_s17] sm:$0xff]  }
  0x2d   : > { %2266 = vmatpush3.bf16.msra.mxu1 %v2448_v1  ;;  %2258 = vmatpush3.bf16.msra.mxu0 %v2449_v4  ;;  %v2451_v7 = vld [vmem:[%s3017_s17 + $0x10] sm:$0xff]   ;;  %v636_v8 = vld [vmem:[%s3018_s25] sm:$0x1]  ;;  %v2452_v15 = vld [vmem:[%s3017_s17 + $0x38] sm:$0xff]  }
  0x2e   : > { %2267 = vmatprep.subr.bf16.mxu1 %v2525_v3  ;;  %2259 = vmatprep.subr.bf16.mxu0 %v2525_v3  ;;  %v639_v10 = vpack.i.b16 %v636_v8, %v636_v8  ;;  %v2454_v22 = vld [vmem:[%s3017_s17 + $0x30] sm:$0xff]   ;;  %v2453_v26 = vld [vmem:[%s3017_s17 + $0x28] sm:$0xff]   ;;  %v2456_v29 = vld [vmem:[%s3017_s17 + $0x58] sm:$0xff]  }
  0x2f   : > { %v2455_v32 = vld [vmem:[%s3017_s17 + $0x20] sm:$0xff]   ;;  %v2458_v34 = vld [vmem:[%s3017_s17 + $0x50] sm:$0xff]   ;;  %v2457_v37 = vld [vmem:[%s3017_s17 + $0x48] sm:$0xff]  }
  0x30   : > { %v644_v12 = vrot.slane %v639_v10, %v643_v9  ;;  %v1233_v35 = vld [vmem:[%s3019_s3] sm:$0x1]  ;;  %v2460_v41 = vld [vmem:[%s3017_s17 + $0x78] sm:$0xff]   ;;  %v2462_v48 = vld [vmem:[%s3017_s17 + $0x70] sm:$0xff]  }
  0x31   : > { %2268 = vmatpush3.bf16.msra.mxu1 %v2450_v5  ;;  %2260 = vmatpush3.bf16.msra.mxu0 %v2451_v7  ;;  %v1236_v44 = vpack.i.b16 %v1233_v35, %v1233_v35  ;;  %v2459_v47 = vld [vmem:[%s3017_s17 + $0x40] sm:$0xff]   ;;  %v2461_v49 = vld [vmem:[%s3017_s17 + $0x68] sm:$0xff]   ;;  %v2469_v10 = vld [vmem:[%s3020_s19 + $0x18] sm:$0xff]  }
  0x32   : > { %2281 = vmatprep.subr.bf16.mxu1 %v2525_v3  ;;  %2273 = vmatprep.subr.bf16.mxu0 %v2525_v3  ;;  %v645_v13 = vadd.bf16 %v644_v12, %v637_v11  ;;  %v651_v19 = vadd.bf16 %v650_v14, %v644_v12  ;;  %v648_v21 = vadd.bf16 %v647_v16, %v644_v12  ;;  %v2464_v50 = vld [vmem:[%s3020_s19 + $0x8] sm:$0xff]   ;;  %v2463_v58 = vld [vmem:[%s3017_s17 + $0x60] sm:$0xff]   ;;  %v2471_v16 = vld [vmem:[%s3020_s19 + $0x10] sm:$0xff]  }
  0x33   : > { %v2805_v51 = vrot.slane %v1236_v44, %v643_v9  ;;  %v2466_v59 = vld [vmem:[%s3020_s19] sm:$0xff]   ;;  %v2465_v62 = vld [vmem:[%s3017_s17 + $0x88] sm:$0xff]   ;;  %v2481_v35 = vld [vmem:[%s3020_s19 + $0x78] sm:$0xff]  }
  0x34   : > { %v646_v18 = vmax.bf16 %v2527_v17, %v645_v13  ;;  %v649_v27 = vmax.bf16 %v2527_v17, %v648_v21  ;;  %v2746_v28 = vmax.bf16 %v2527_v17, %v651_v19  ;;  %v2468_v63 = vld [vmem:[%s3020_s19 + $0x28] sm:$0xff]   ;;  %v2467_v2 = vld [vmem:[%s3017_s17 + $0x80] sm:$0xff]   ;;  %v2473_v21 = vld [vmem:[%s3020_s19 + $0x38] sm:$0xff]  }
  0x35   : > { %v1242_v56 = vadd.bf16 %v2805_v51, %v1234_v54  ;;  %v1245_v57 = vadd.bf16 %v1244_v55, %v2805_v51  ;;  %v2470_v4 = vld [vmem:[%s3020_s19 + $0x20] sm:$0xff]   ;;  %v2472_v11 = vld [vmem:[%s3020_s19 + $0x48] sm:$0xff]  }
  0x36   : > { %v2080_v20 = vcombine.low %v646_v18, %v646_v18  ;;  %2270 = vmatmul.mubr.msk.bf16.vlgmr.msra.gmra.mxu1 %vm684_vm2, %v646_v18  ;;  %v2105_v31 = vcombine.low %v649_v27, %v649_v27  ;;  %v2759_v33 = vcombine.low %v2746_v28, %v2746_v28  ;;  %v2474_v18 = vld [vmem:[%s3020_s19 + $0x40] sm:$0xff]  }
  0x37   : > { %2282 = vmatpush3.bf16.msra.mxu1 %v2452_v15  ;;  %2285 = vmatprep.mubr.msk.bf16.mxu1 %vm2526_vm1, %v2525_v3  ;;  %v1243_v60 = vmax.bf16 %v2527_v17, %v1242_v56  ;;  %v2837_v61 = vmax.bf16 %v2527_v17, %v1245_v57 }
  0x38   : > { %v666_v23 = vshrl.u32 %v2080_v20, 16  ;;  %v668_v24 = vshll.u32 %v2080_v20, 16  ;;  %2283 = vmatprep.subr.bf16.mxu1 %v2525_v3  ;;  %v788_v36 = vrot.slane %v2080_v20, 1  ;;  %v917_v38 = vshll.u32 %v2105_v31, 16 }
  0x39   : > { %v982_v39 = vrot.slane %v2105_v31, 1  ;;  %v1111_v40 = vshll.u32 %v2759_v33, 16  ;;  %v915_v42 = vshrl.u32 %v2105_v31, 16  ;;  %v1109_v45 = vshrl.u32 %v2759_v33, 16  ;;  %v2482_v31 = vld [vmem:[%s3020_s19 + $0x80] sm:$0xff]  }
  0x3a   : > { %v670_v25 = vrot.slane %v668_v24, 1  ;;  %v919_v43 = vrot.slane %v917_v38, 1  ;;  %v2145_v0 = vcombine.low %v1243_v60, %v1243_v60  ;;  %v2852_v1 = vcombine.low %v2837_v61, %v2837_v61  ;;  %v2483_v38 = vld [vmem:[%s3020_s19 + $0x70] sm:$0xff]  }
  0x3b   : > { %2284 = vmatpush3.bf16.msra.mxu1 %v2454_v22  ;;  %v1113_v46 = vrot.slane %v1111_v40, 1  ;;  %v1176_v5 = vrot.slane %v2759_v33, 1  ;;  %v2476_v22 = vld [vmem:[%s3020_s19 + $0x68] sm:$0xff]  }
  0x3c   : > { %v671_v30 = vor.u32 %v670_v25, %v666_v23  ;;  %2297 = vmatprep.subr.bf16.mxu1 %v2525_v3  ;;  %v920_v52 = vor.u32 %v919_v43, %v915_v42  ;;  %v1386_v7 = vrot.slane %v2145_v0, 1  ;;  %v1321_v8 = vshll.u32 %v2145_v0, 16  ;;  %v1247_v23 = vld [vmem:[%s614_s29] sm:$0x7]  ;;  %v2475_v25 = vld [vmem:[%s3020_s19 + $0x30] sm:$0xff]  }
  0x3d   : > { %v1114_v53 = vor.u32 %v1113_v46, %v1109_v45  ;;  %v1515_v9 = vshll.u32 %v2852_v1, 16  ;;  %v1319_v12 = vshrl.u32 %v2145_v0, 16  ;;  %v1513_v14 = vshrl.u32 %v2852_v1, 16 }
  0x3e   : > { %2262 = vmatmul.mubr.msk.bf16.vlgmr.msra.gmra.mxu0 %vm684_vm2, %v671_v30  ;;  %2286 = vmatmul.mubr.msk.bf16.vlgmr.msra.gmra.mxu1 %vm684_vm2, %v649_v27  ;;  %v1323_v13 = vrot.slane %v1321_v8, 1  ;;  %v1248_v24 = vadd.bf16 %v1247_v23, %v2805_v51  ;;  %v2479_v30 = vld [vmem:[%s3020_s19 + $0x50] sm:$0xff]  }
  0x3f   : > { %2274 = vmatpush3.bf16.msra.mxu0 %v2453_v26  ;;  %2298 = vmatpush3.bf16.msra.mxu1 %v2456_v29  ;;  %v1517_v15 = vrot.slane %v1515_v9, 1  ;;  %v2478_v26 = vld [vmem:[%s3020_s19 + $0x60] sm:$0xff]   ;;  %v2480_v29 = vld [vmem:[%s3020_s19 + $0x88] sm:$0xff]  }
  0x40   : > { %2275 = vmatprep.subr.bf16.mxu0 %v2525_v3  ;;  %2277 = vmatprep.mubr.msk.bf16.mxu0 %vm2526_vm1, %v2525_v3  ;;  %v1324_v19 = vor.u32 %v1323_v13, %v1319_v12  ;;  %v1249_v27 = vmax.bf16 %v2527_v17, %v1248_v24 }
  0x41   : > { %2299 = vmatprep.subr.bf16.mxu1 %v2525_v3  ;;  %2301 = vmatprep.mubr.msk.bf16.mxu1 %vm2526_vm1, %v2525_v3  ;;  %v1518_v20 = vor.u32 %v1517_v15, %v1513_v14 }
  0x42   : > { %v2189_v17 = vcombine.low %v1249_v27, %v1249_v27 }
  0x43   : > { %2276 = vmatpush3.bf16.msra.mxu0 %v2455_v32  ;;  %2300 = vmatpush3.bf16.msra.mxu1 %v2458_v34  ;;  %v1580_v32 = vrot.slane %v2852_v1, 1 }
  0x44   : > { %2289 = vmatprep.subr.bf16.mxu0 %v2525_v3  ;;  %2313 = vmatprep.subr.bf16.mxu1 %v2525_v3  ;;  %v1774_v33 = vrot.slane %v2189_v17, 1  ;;  %v1709_v34 = vshll.u32 %v2189_v17, 16 }
  0x46   : > { %2278 = vmatmul.mubr.msk.bf16.vlgmr.msra.gmra.mxu0 %vm684_vm2, %v788_v36  ;;  %2302 = vmatmul.mubr.msk.bf16.vlgmr.msra.gmra.mxu1 %vm684_vm2, %v982_v39  ;;  %v1707_v36 = vshrl.u32 %v2189_v17, 16 }
  0x47   : > { %2290 = vmatpush3.bf16.msra.mxu0 %v2457_v37  ;;  %2314 = vmatpush3.bf16.msra.mxu1 %v2460_v41  ;;  %v1711_v37 = vrot.slane %v1709_v34, 1 }
  0x48   : > { %2291 = vmatprep.subr.bf16.mxu0 %v2525_v3  ;;  %2293 = vmatprep.mubr.msk.bf16.mxu0 %vm2526_vm1, %v2525_v3 }
  0x49   : > { %2315 = vmatprep.subr.bf16.mxu1 %v2525_v3  ;;  %2317 = vmatprep.mubr.msk.bf16.mxu1 %vm2526_vm1, %v2525_v3  ;;  %v1712_v39 = vor.u32 %v1711_v37, %v1707_v36 }
  0x4b   : > { %2292 = vmatpush3.bf16.msra.mxu0 %v2459_v47  ;;  %2316 = vmatpush3.bf16.msra.mxu1 %v2462_v48 }
  0x4c   : > { %2305 = vmatprep.subr.bf16.mxu0 %v2525_v3  ;;  %2329 = vmatprep.subr.bf16.mxu1 %v2525_v3 }
  0x4e   : > { %2294 = vmatmul.mubr.msk.bf16.vlgmr.msra.gmra.mxu0 %vm684_vm2, %v920_v52  ;;  %2318 = vmatmul.mubr.msk.bf16.vlgmr.msra.gmra.mxu1 %vm684_vm2, %v1114_v53 }
  0x4f   : > { %2306 = vmatpush3.bf16.msra.mxu0 %v2461_v49  ;;  %2330 = vmatpush3.bf16.msra.mxu1 %v2464_v50 }
  0x50   : > { %2307 = vmatprep.subr.bf16.mxu0 %v2525_v3  ;;  %2309 = vmatprep.mubr.msk.bf16.mxu0 %vm2526_vm1, %v2525_v3 }
  0x51   : > { %2331 = vmatprep.subr.bf16.mxu1 %v2525_v3  ;;  %2333 = vmatprep.mubr.msk.bf16.mxu1 %vm2526_vm1, %v2525_v3 }
  0x53   : > { %2308 = vmatpush3.bf16.msra.mxu0 %v2463_v58  ;;  %2332 = vmatpush3.bf16.msra.mxu1 %v2466_v59 }
  0x54   : > { %2321 = vmatprep.subr.bf16.mxu0 %v2525_v3  ;;  %2345 = vmatprep.subr.bf16.mxu1 %v2525_v3 }
  0x56   : > { %2310 = vmatmul.mubr.msk.bf16.vlgmr.msra.gmra.mxu0 %vm684_vm2, %v2746_v28  ;;  %2334 = vmatmul.mubr.msk.bf16.vlgmr.msra.gmra.mxu1 %vm684_vm2, %v1243_v60  ;;  %v2477_v28 = vld [vmem:[%s3020_s19 + $0x58] sm:$0xff]  }
  0x57   : > { %2322 = vmatpush3.bf16.msra.mxu0 %v2465_v62  ;;  %2346 = vmatpush3.bf16.msra.mxu1 %v2468_v63 }
  0x58   : > { %2323 = vmatprep.subr.bf16.mxu0 %v2525_v3  ;;  %2325 = vmatprep.mubr.msk.bf16.mxu0 %vm2526_vm1, %v2525_v3 }
  0x59   : > { %2347 = vmatprep.subr.bf16.mxu1 %v2525_v3  ;;  %2349 = vmatprep.mubr.msk.bf16.mxu1 %vm2526_vm1, %v2525_v3 }
  0x5b   : > { %2324 = vmatpush3.bf16.msra.mxu0 %v2467_v2  ;;  %2348 = vmatpush3.bf16.msra.mxu1 %v2470_v4 }
  0x5c   : > { %2337 = vmatprep.subr.bf16.mxu0 %v2525_v3  ;;  %2361 = vmatprep.subr.bf16.mxu1 %v2525_v3 }
  0x5e   : > { %2326 = vmatmul.mubr.msk.bf16.vlgmr.msra.gmra.mxu0 %vm684_vm2, %v1176_v5  ;;  %2350 = vmatmul.mubr.msk.bf16.vlgmr.msra.gmra.mxu1 %vm684_vm2, %v1386_v7 }
  0x5f   : > { %2338 = vmatpush3.bf16.msra.mxu0 %v2469_v10  ;;  %2362 = vmatpush3.bf16.msra.mxu1 %v2472_v11 }
  0x60   : > { %2339 = vmatprep.subr.bf16.mxu0 %v2525_v3  ;;  %2341 = vmatprep.mubr.msk.bf16.mxu0 %vm2526_vm1, %v2525_v3 }
  0x61   : > { %2363 = vmatprep.subr.bf16.mxu1 %v2525_v3  ;;  %2365 = vmatprep.mubr.msk.bf16.mxu1 %vm2526_vm1, %v2525_v3 }
  0x63   : > { %2340 = vmatpush3.bf16.msra.mxu0 %v2471_v16  ;;  %2364 = vmatpush3.bf16.msra.mxu1 %v2474_v18 }
  0x64   : > { %2353 = vmatprep.subr.bf16.mxu0 %v2525_v3  ;;  %2377 = vmatprep.subr.bf16.mxu1 %v2525_v3 }
  0x66   : > { %2342 = vmatmul.mubr.msk.bf16.vlgmr.msra.gmra.mxu0 %vm684_vm2, %v1324_v19  ;;  %2366 = vmatmul.mubr.msk.bf16.vlgmr.msra.gmra.mxu1 %vm684_vm2, %v1518_v20 }
  0x67   : > { %2354 = vmatpush3.bf16.msra.mxu0 %v2473_v21  ;;  %2378 = vmatpush3.bf16.msra.mxu1 %v2476_v22 }
  0x68   : > { %2355 = vmatprep.subr.bf16.mxu0 %v2525_v3  ;;  %2357 = vmatprep.mubr.msk.bf16.mxu0 %vm2526_vm1, %v2525_v3 }
  0x69   : > { %2379 = vmatprep.subr.bf16.mxu1 %v2525_v3  ;;  %2381 = vmatprep.mubr.msk.bf16.mxu1 %vm2526_vm1, %v2525_v3 }
  0x6b   : > { %2356 = vmatpush3.bf16.msra.mxu0 %v2475_v25  ;;  %2380 = vmatpush3.bf16.msra.mxu1 %v2478_v26 }
  0x6c   : > { %2369 = vmatprep.subr.bf16.mxu0 %v2525_v3  ;;  %2393 = vmatprep.subr.bf16.mxu1 %v2525_v3 }
  0x6e   : > { %2358 = vmatmul.mubr.msk.bf16.vlgmr.msra.gmra.mxu0 %vm684_vm2, %v2837_v61  ;;  %2382 = vmatmul.mubr.msk.bf16.vlgmr.msra.gmra.mxu1 %vm684_vm2, %v1249_v27 }
  0x6f   : > { %2370 = vmatpush3.bf16.msra.mxu0 %v2477_v28  ;;  %2394 = vmatpush3.bf16.msra.mxu1 %v2480_v29 }
  0x70   : > { %2371 = vmatprep.subr.bf16.mxu0 %v2525_v3  ;;  %2373 = vmatprep.mubr.msk.bf16.mxu0 %vm2526_vm1, %v2525_v3 }
  0x71   : > { %2395 = vmatprep.subr.bf16.mxu1 %v2525_v3  ;;  %2397 = vmatprep.mubr.msk.bf16.mxu1 %vm2526_vm1, %v2525_v3 }
  0x73   : > { %2372 = vmatpush3.bf16.msra.mxu0 %v2479_v30  ;;  %2396 = vmatpush3.bf16.msra.mxu1 %v2482_v31 }
  0x74   : > { %2385 = vmatprep.subr.bf16.mxu0 %v2525_v3 }
  0x76   : > { %2374 = vmatmul.mubr.msk.bf16.vlgmr.msra.gmra.mxu0 %vm684_vm2, %v1580_v32  ;;  %2398 = vmatmul.mubr.msk.bf16.vlgmr.msra.gmra.mxu1 %vm684_vm2, %v1774_v33 }
  0x77   : > { %2386 = vmatpush3.bf16.msra.mxu0 %v2481_v35  ;;  %2389 = vmatprep.mubr.msk.bf16.mxu0 %vm2526_vm1, %v2525_v3 }
  0x78   : > { %2387 = vmatprep.subr.bf16.mxu0 %v2525_v3 }
  0x7b   : > { %2388 = vmatpush3.bf16.msra.mxu0 %v2483_v38 }
  0x7e   : > { %2390 = vmatmul.mubr.msk.bf16.vlgmr.msra.gmra.mxu0 %vm684_vm2, %v1712_v39 }
  0xf6   : > { %v777_v40 = vpop.f32.mrf.mxu1 }
  0xf8   : > { %v2271_v41 = vpop.f32.mrf.mxu1 }
  0xfa   : > { %v780_v42 = vpop.f32.mrf.mxu1 }
  0xfc   : > { %v2272_v43 = vpop.f32.mrf.mxu1 }
  0xfe   : > { %v722_v44 = vpop.f32.mrf.mxu0  ;;  %v899_v45 = vpop.f32.mrf.mxu1 }
  0xff   : > { %v778_v1 = vadd.f32 %v777_v40, %v722_v44 }
 0x100   : > { %v2263_v46 = vpop.f32.mrf.mxu0  ;;  %v2287_v47 = vpop.f32.mrf.mxu1 }
 0x102   : > { %v725_v48 = vpop.f32.mrf.mxu0  ;;  %v902_v49 = vpop.f32.mrf.mxu1 }
 0x104   : > { %v2264_v50 = vpop.f32.mrf.mxu0  ;;  %v2288_v51 = vpop.f32.mrf.mxu1 }
 0x106   : > { %v838_v52 = vpop.f32.mrf.mxu0  ;;  %v1032_v53 = vpop.f32.mrf.mxu1 }
 0x107   : > { %v844_v5 = vadd.f32 %v838_v52, %v778_v1 }
 0x108   : > { %v2279_v54 = vpop.f32.mrf.mxu0  ;;  %v2303_v3 = vpop.f32.mrf.mxu1 }
 0x109   : > { %v905_v11 = vadd.f32 %v899_v45, %v844_v5  ;;  %v2528_v3 = vmov 1983009808  }
 0x10a   : > { %v841_v55 = vpop.f32.mrf.mxu0  ;;  %v1035_v56 = vpop.f32.mrf.mxu1 }
 0x10b   : > { %v1836_v55 = vunpack.c.l.s4 %v2528_v3 }
 0x10c   : > { %v2280_v57 = vpop.f32.mrf.mxu0  ;;  %v2304_v58 = vpop.f32.mrf.mxu1 }
 0x10e   : > { %v970_v59 = vpop.f32.mrf.mxu0  ;;  %v1164_v60 = vpop.f32.mrf.mxu1 }
 0x10f   : > { %v976_v14 = vadd.f32 %v970_v59, %v905_v11 }
 0x110   : > { %v2295_v61 = vpop.f32.mrf.mxu0  ;;  %v2319_v62 = vpop.f32.mrf.mxu1 }
 0x111   : > { %v1038_v20 = vadd.f32 %v1032_v53, %v976_v14  ;;  %v1837_v61 = vunpack.c.0.s8 %v1836_v55 }
 0x112   : > { %v973_v63 = vpop.f32.mrf.mxu0  ;;  %v1167_v0 = vpop.f32.mrf.mxu1 }
 0x114   : > { %v2296_v2 = vpop.f32.mrf.mxu0  ;;  %v2320_v4 = vpop.f32.mrf.mxu1 }
 0x115   : > { %v1840_v2 = vsub.s32 %v1837_v61, %v2698_v6 }
 0x116   : > { %v1093_v7 = vpop.f32.mrf.mxu0  ;;  %v1303_v8 = vpop.f32.mrf.mxu1 }
 0x117   : > { %v1099_v23 = vadd.f32 %v1093_v7, %v1038_v20 }
 0x118   : > { %v2311_v9 = vpop.f32.mrf.mxu0  ;;  %v2335_v10 = vpop.f32.mrf.mxu1 }
 0x119   : > { %v1170_v28 = vadd.f32 %v1164_v60, %v1099_v23 }
 0x11a   : > { %v1096_v12 = vpop.f32.mrf.mxu0  ;;  %v1306_v13 = vpop.f32.mrf.mxu1 }
 0x11c   : > { %v2312_v15 = vpop.f32.mrf.mxu0  ;;  %v2336_v16 = vpop.f32.mrf.mxu1 }
 0x11e   : > { %v1226_v18 = vpop.f32.mrf.mxu0  ;;  %v1436_v19 = vpop.f32.mrf.mxu1 }
 0x11f   : > { %v1232_v30 = vadd.f32 %v1226_v18, %v1170_v28 }
 0x120   : > { %v2327_v21 = vpop.f32.mrf.mxu0  ;;  %v2351_v22 = vpop.f32.mrf.mxu1 }
 0x121   : > { %v1309_v35 = vadd.f32 %v1303_v8, %v1232_v30  ;;  %v1847_v21 = vld [vmem:[%s3000_s11] sm:$0x1] }
 0x122   : > { %v1229_v24 = vpop.f32.mrf.mxu0  ;;  %v1439_v25 = vpop.f32.mrf.mxu1 }
 0x123   : > { %v1859_v24 = vld [vmem:[%s3001_s12] sm:$0x1] }
 0x124   : > { %v2328_v26 = vpop.f32.mrf.mxu0  ;;  %v2352_v27 = vpop.f32.mrf.mxu1 }
 0x126   : > { %v1374_v29 = vpop.f32.mrf.mxu0  ;;  %v1568_v17 = vpop.f32.mrf.mxu1 }
 0x127   : > { %v1380_v38 = vadd.f32 %v1374_v29, %v1309_v35 }
 0x128   : > { %v2343_v31 = vpop.f32.mrf.mxu0  ;;  %v2367_v32 = vpop.f32.mrf.mxu1 }
 0x129   : > { %v1442_v43 = vadd.f32 %v1436_v19, %v1380_v38 }
 0x12a   : > { %v1377_v33 = vpop.f32.mrf.mxu0  ;;  %v1571_v34 = vpop.f32.mrf.mxu1 }
 0x12c   : > { %v2344_v36 = vpop.f32.mrf.mxu0  ;;  %v2368_v37 = vpop.f32.mrf.mxu1 }
 0x12e   : > { %v1497_v39 = vpop.f32.mrf.mxu0  ;;  %v1691_v40 = vpop.f32.mrf.mxu1 }
 0x12f   : > { %v1503_v46 = vadd.f32 %v1497_v39, %v1442_v43 }
 0x130   : > { %v2359_v41 = vpop.f32.mrf.mxu0  ;;  %v2383_v42 = vpop.f32.mrf.mxu1 }
 0x131   : > { %v1574_v51 = vadd.f32 %v1568_v17, %v1503_v46 }
 0x132   : > { %v1500_v44 = vpop.f32.mrf.mxu0  ;;  %v1694_v45 = vpop.f32.mrf.mxu1 }
 0x134   : > { %v2360_v47 = vpop.f32.mrf.mxu0  ;;  %v2384_v48 = vpop.f32.mrf.mxu1 }
 0x136   : > { %v1630_v49 = vpop.f32.mrf.mxu0  ;;  %v1824_v50 = vpop.f32.mrf.mxu1 }
 0x137   : > { %v1636_v54 = vadd.f32 %v1630_v49, %v1574_v51 }
 0x138   : > { %v2375_v52 = vpop.f32.mrf.mxu0  ;;  %v2399_v53 = vpop.f32.mrf.mxu1 }
 0x139   : > { %v1697_v60 = vadd.f32 %v1691_v40, %v1636_v54 }
 0x13a   : > { %v1633_v56 = vpop.f32.mrf.mxu0  ;;  %v1827_v57 = vpop.f32.mrf.mxu1 }
 0x13c   : > { %v2376_v58 = vpop.f32.mrf.mxu0  ;;  %v2400_v59 = vpop.f32.mrf.mxu1 }
 0x13e   : > { %v1762_v62 = vpop.f32.mrf.mxu0 }
 0x13f   : > { %v1768_v63 = vadd.f32 %v1762_v62, %v1697_v60 }
 0x140   : > { %v2391_v0 = vpop.f32.mrf.mxu0 }
 0x141   : > { %v1830_v1 = vadd.f32 %v1824_v50, %v1768_v63 }
 0x142   : > { %v1765_v4 = vpop.f32.mrf.mxu0 }
 0x143   : > { %v1849_v5 = vsel %vm1848_vm3, %v1830_v1, 0.0  ;;  %v1860_v7 = vmul.f32 %v1830_v1, %v1830_v1  ;;  %v1831_v8 = vpack.c.bf16 %v1830_v1, %v1830_v1 }
 0x144   : > { %v1850_v9 = vrot.slane %v1849_v5, 4  ;;  %v2392_v10 = vpop.f32.mrf.mxu0 }
 0x145   : > { %v1861_v11 = vsel %vm1848_vm3, %v1860_v7, 0.0  ;;  %v1841_v12 = vrot.slane %v1831_v8, %v1840_v2  ;;  %1833 = vst.msk [vmem:[%s2677_s27] sm:$0x3] %vm1832_vm4, %v1831_v8 }
 0x146   : > { %v1851_v13 = vadd.f32 %v1850_v9, %v1849_v5  ;;  %v1862_v14 = vrot.slane %v1861_v11, 4 }
 0x147   : > { %1842 = vrot.lane.b32.xlu0 %v1841_v12, %s2529_s20 }
 0x148   : > { %v1852_v15 = vrot.slane %v1851_v13, 2  ;;  %v1863_v16 = vadd.f32 %v1862_v14, %v1861_v11 }
 0x14a   : > { %v1853_v18 = vadd.f32 %v1852_v15, %v1851_v13  ;;  %v1864_v6 = vrot.slane %v1863_v16, 2 }
 0x14c   : > { %v1854_v19 = vrot.slane %v1853_v18, 1  ;;  %v1865_v20 = vadd.f32 %v1864_v6, %v1863_v16 }
 0x14e   : > { %v1855_v22 = vadd.f32 %v1854_v19, %v1853_v18  ;;  %v1866_v23 = vrot.slane %v1865_v20, 1 }
 0x150   : > { %v1856_v25 = vadd.f32 %v1855_v22, %v1847_v21  ;;  %v1867_v26 = vadd.f32 %v1866_v23, %v1865_v20 }
 0x152   : > { %1858 = vst.msk [vmem:[%s3000_s11] sm:$0x1] %vm1857_vm5, %v1856_v25  ;;  %v1868_v27 = vadd.f32 %v1867_v26, %v1859_v24 }
 0x154   : > { %1869 = vst.msk [vmem:[%s3001_s12] sm:$0x1] %vm1857_vm5, %v1868_v27 }
 0x1b9   : > { %v1843_v28 = vpop.permute.xlu0 %1842 }
 0x1ba   : > { %2200 = vst.msk [vmem:[%s2677_s27 + $0x2] sm:$0x3] %vm1832_vm4, %v1843_v28 }
 0x1bb PF: > { %s3022_s3 = sld [smem:[#allocation4_spill]] }
 0x1bc   : > { %s3023_s21 = sld [smem:[#allocation2_spill]] }
 0x1bd   : > { %s3024_s22 = sld [smem:[#allocation3_spill]] }
 0x1be   : > { %s3025_s23 = sld [smem:[#allocation5_spill]] }
 0x1bf   : > { %s3026_s24 = sld [smem:[#allocation6_spill]] }
 0x1c1   : > { %s23_s25 = sadd.s32 1, %s3022_s3  }
 0x1c2   : > { %p20_p13 = scmp.ge.s32.totalorder %s23_s25, 10  }
 0x1c4   :  { %22 = sbr.rel (!%p20_p13) target bundleno = 5 (0x5), region = 142 }

// kernel: custom_unet_forward.14
= control target key start
LH: loop header
LB: loop body
LE: loop exit
PB: predicated region body
PF: predicated region fallthrough
CT: control target
= control target key end

     0   :  { %s2406_s21 = smov 0   ;;  %s2408_s22 = smov 0   ;;  %s2704_s0 = inlined_call_operand.vmem [shape: bf16[2,10,10,16], index: 0, kind: input, shape index: {}, may-alias: {0,1,2}]   ;;  %s2705_s1 = inlined_call_operand.vmem [shape: bf16[2,10,10,16], index: 1, kind: input, shape index: {}, may-alias: {0,1,2}]   ;;  %s2706_s2 = inlined_call_operand.vmem [shape: bf16[2,10,10,16], index: 2, kind: input, shape index: {}, may-alias: {0,1,2}]   ;;  %s2707_s3 = inlined_call_operand.vmem [shape: bf16[1,16], index: 3, kind: input, shape index: {}]   ;;  %s2708_s4 = inlined_call_operand.vmem [shape: bf16[9,16,32], index: 4, kind: input, shape index: {}]   ;;  %s2709_s5 = inlined_call_operand.vmem [shape: bf16[2,10,10,16], index: 5, kind: input, shape index: {}, may-alias: {5,6,7}]   ;;  %s2710_s6 = inlined_call_operand.vmem [shape: bf16[2,10,10,16], index: 6, kind: input, shape index: {}, may-alias: {5,6,7}]   ;;  %s2711_s7 = inlined_call_operand.vmem [shape: bf16[2,10,10,16], index: 7, kind: input, shape index: {}, may-alias: {5,6,7}]   ;;  %s2712_s8 = inlined_call_operand.vmem [shape: bf16[1,16], index: 8, kind: input, shape index: {}]   ;;  %s2713_s9 = inlined_call_operand.vmem [shape: bf16[9,16,32], index: 9, kind: input, shape index: {}]   ;;  %s2714_s10 = inlined_call_operand.vmem [shape: bf16[2,16,8,16], index: 10, kind: output, shape index: {0}]   ;;  %s2715_s11 = inlined_call_operand.vmem [shape: f32[1,32], index: 11, kind: output, shape index: {1}]   ;;  %s2716_s12 = inlined_call_operand.vmem [shape: f32[1,32], index: 12, kind: output, shape index: {2}]  }
   0x1   :  { %2723 = sst [smem:[#allocation8_spill]] %s2704_s0  ;;  %s2410_s23 = smov 0  }
   0x2   :  { %2724 = sst [smem:[#allocation9_spill]] %s2707_s3  ;;  %s2412_s24 = smov 0  }
   0x3   :  { %2725 = sst [smem:[#allocation10_spill]] %s2708_s4  ;;  %s2414_s25 = smov 0  }
   0x4   :  { %2726 = sst [smem:[#allocation11_spill]] %s2709_s5 }
   0x5   :  { %2727 = sst [smem:[#allocation12_spill]] %s2712_s8 }
   0x6   :  { %2728 = sst [smem:[#allocation13_spill]] %s2713_s9 }
   0x7 LB: > { %2729 = sst [smem:[#allocation2_spill]] %s2326_s23  ;;  %s32_s26 = sadd.s32 1, %s2326_s23  ;;  %s2334_s25 = sphi %s2414_s25, %s23_s25   ;;  %s2330_s24 = sphi %s2412_s24, %s2747_s24   ;;  %s2326_s23 = sphi %s2410_s23, %s2746_s23   ;;  %s2322_s22 = sphi %s2408_s22, %s2745_s22   ;;  %s2318_s21 = sphi %s2406_s21, %s2744_s21  }
   0x8   : > { %2730 = sst [smem:[#allocation3_spill]] %s2330_s24  ;;  %s35_s27 = sadd.s32 1, %s2330_s24 }
   0x9   : > { %2731 = sst [smem:[#allocation4_spill]] %s2334_s25  ;;  %p33_p0 = scmp.ge.s32.totalorder %s32_s26, 8 }
   0xa   : > { %p1991_p1 = scmp.ge.s32.totalorder %s2334_s25, 1  ;;  %p473_p2 = scmp.lt.s32.totalorder %s2334_s25, 17 }
   0xb   : > { %s2749_s26 = smov (%p33_p0, %s32_s26), 0  ;;  %s2751_s27 = smov (!%p33_p0, %s35_s27), %s2330_s24 }
   0xc   : > { %2732 = sst [smem:[#allocation5_spill]] %s2749_s26  ;;  %p474_p3 = pnand %p1991_p1, %p473_p2 }
   0xd   : > { %p37_p4 = scmp.ge.s32.totalorder %s2751_s27, 2 }
   0xe   : > { %477 = sbr.rel (%p474_p3) target bundleno = 454 (0x1c6), region = 60 }
   0xf   : > { %s2753_s27 = smov (%p37_p4, %s2751_s27), 0 }
  0x10   : > { %2733 = sst [smem:[#allocation6_spill]] %s2753_s27 }
  0x13   : > { %p572_p5 = scmp.lt.s32.totalorder %s2322_s22, 1  ;;  %p574_p6 = scmp.lt.s32.totalorder %s2318_s21, 9 }
  0x14   : > { %s581_s28 = sadd.s32 1, %s2318_s21  ;;  %s592_s29 = sadd.s32 2, %s2318_s21 }
  0x15   : > { %s2445_s30 = scalar_select %p572_p5, %s2322_s22, 1 }
  0x16   : > { %s575_s13 = scalar_select %p574_p6, %s2318_s21, 9 }
  0x17   : > { %s2232_s14 = smul.u32 20, %s2445_s30  ;;  %p584_p7 = scmp.lt.s32.totalorder %s581_s28, 9 }
  0x18   : > { %s1992_s15 = sshll.u32 %s575_s13, 1  ;;  %p595_p8 = scmp.lt.s32.totalorder %s592_s29, 9 }
  0x19   : > { %s578_s16 = sadd.s32 %s2232_s14, %s1992_s15  ;;  %s2004_s17 = sshll.u32 %s2318_s21, 1 }
  0x1a   : > { %s1993_s18 = sshll.u32 %s578_s16, 2  ;;  %p2450_p9 = scmp.lt.s32.totalorder %s2004_s17, 15 }
  0x1b   : > { %s2735_s0 = sld [smem:[#allocation8_spill]]  ;;  %s2755_s28 = smov (!%p584_p7, %s581_s28), 9 }
  0x1c   : > { %s2737_s5 = sld [smem:[#allocation11_spill]]  ;;  %s2757_s29 = smov (!%p595_p8, %s592_s29), 9 }
  0x1d   : > { %s1994_s13 = sshll.u32 %s2755_s28, 1  ;;  %s2005_s15 = sshll.u32 %s2445_s30, 4 }
  0x1e   : > { %s588_s16 = sadd.s32 %s2232_s14, %s1994_s13  ;;  %s1996_s9 = sshll.u32 %s2757_s29, 1 }
  0x1f   : > { %s1995_s8 = sshll.u32 %s588_s16, 2  ;;  %s599_s3 = sadd.s32 %s2232_s14, %s1996_s9 }
  0x20   : > { %s2468_s20 = scalar_lea.vmem %s2705_s1, %s1995_s8  ;;  %s2478_s28 = scalar_lea.vmem %s2710_s6, %s1995_s8 }
  0x21   : > { %s2457_s26 = scalar_lea.vmem %s2735_s0, %s1993_s18  ;;  %s1997_s0 = sshll.u32 %s599_s3, 2 }
  0x22   : > { %2736 = sst [smem:[#allocation7_spill]] %s2457_s26  ;;  %s2462_s25 = scalar_lea.vmem %s2737_s5, %s1993_s18 }
  0x23   : > { %s2473_s24 = scalar_lea.vmem %s2706_s2, %s1997_s0  ;;  %s2483_s9 = scalar_lea.vmem %s2711_s7, %s1997_s0 }
  0x24   : > { %p645_p10 = scmp.eq.s32.totalorder %s2322_s22, 0  ;;  %s2759_s17 = smov (!%p2450_p9, %s2004_s17), 15 }
  0x25   : > { %p646_p11 = scmp.eq.s32.totalorder %s2318_s21, 0  ;;  %s640_s3 = sadd.s32 %s2005_s15, %s2759_s17 }
  0x26   : > { %s2006_s4 = sshll.u32 %s640_s3, 2 }
  0x27   : > { %p647_p12 = pnand %p646_p11, %p645_p10  ;;  %s2492_s13 = scalar_lea.vmem %s2714_s10, %s2006_s4 }
  0x29   : > { %650 = sbr.rel (%p647_p12) target bundleno = 48 (0x30), region = 64 }
  0x2e   : > { %vm651_vm0 = vcmask 253952   ;;  %v2336_v0 = vmov 0.0  }
  0x2f   : > { %652 = vst.msk [vmem:[%s2715_s11] sm:$0x1] %vm651_vm0, %v2336_v0  ;;  %653 = vst.msk [vmem:[%s2716_s12] sm:$0x1] %vm651_vm0, %v2336_v0 }
  0x30 PF: > { %s2738_s19 = sld [smem:[#allocation10_spill]]  ;;  %v660_v2 = vlaneseq  ;;  %v2337_v3 = vmov 0.0   ;;  %vm2338_vm1 = vmmov 0   ;;  %vm707_vm2 = vcmask 130048   ;;  %v672_v14 = vld [vmem:[%s2468_s20] sm:$0xf] }
  0x31   : > { %s2739_s15 = sld [smem:[#allocation7_spill]]  ;;  %2130 = vmatprep.subr.bf16.mxu1 %v2337_v3  ;;  %2124 = vmatprep.subr.bf16.mxu0 %v2337_v3  ;;  %v673_v15 = vld [vmem:[%s2468_s20 + $0x4] sm:$0x1]  ;;  %v678_v18 = vld [vmem:[%s2473_s24] sm:$0xf]  ;;  %v2339_v20 = vmov 0  }
  0x32   : > { %2132 = vmatprep.mubr.msk.bf16.mxu1 %vm2338_vm1, %v2337_v3  ;;  %s2740_s30 = sld [smem:[#allocation9_spill]]  ;;  %v661_v7 = vshrl.u32 %v660_v2, 7  ;;  %2126 = vmatprep.mubr.msk.bf16.mxu0 %vm2338_vm1, %v2337_v3  ;;  %v679_v19 = vld [vmem:[%s2473_s24 + $0x4] sm:$0x1]  ;;  %v1199_v57 = vld [vmem:[%s2462_s25] sm:$0xf] }
  0x33   : > { %s2741_s8 = sld [smem:[#allocation12_spill]]  ;;  %v1200_v58 = vld [vmem:[%s2462_s25 + $0x4] sm:$0x1]  ;;  %v1216_v59 = vld [vmem:[%s2478_s28] sm:$0xf]  ;;  %vm1755_vm3 = vcmask 261120  }
  0x34   : > { %v662_v8 = vsub.s32 0, %v661_v7  ;;  %v1217_v60 = vld [vmem:[%s2478_s28 + $0x4] sm:$0x1]  ;;  %s2742_s18 = sld [smem:[#allocation13_spill]]  ;;  %vm1744_vm4 = vcmask 125952   ;;  %s2340_s16 = smov 112  }
  0x35   : > { %vm1764_vm5 = vcmask 253952  }
  0x36   : > { %v2278_v1 = vld [vmem:[%s2738_s19] sm:$0xff]   ;;  %v2279_v4 = vld [vmem:[%s2738_s19 + $0x8] sm:$0xff]   ;;  %v2281_v13 = vld [vmem:[%s2738_s19 + $0x18] sm:$0xff]  }
  0x37   : > { %2131 = vmatpush3.bf16.msra.mxu1 %v2278_v1  ;;  %2125 = vmatpush3.bf16.msra.mxu0 %v2279_v4  ;;  %v655_v9 = vld [vmem:[%s2739_s15] sm:$0xf]  ;;  %v656_v11 = vld [vmem:[%s2739_s15 + $0x4] sm:$0x1]  ;;  %v2280_v35 = vld [vmem:[%s2738_s19 + $0x10] sm:$0xff]  }
  0x38   : > { %v654_v5 = vld [vmem:[%s2740_s30] sm:$0x1]  ;;  %2136 = vmatprep.subr.bf16.mxu0 %v2337_v3  ;;  %2142 = vmatprep.subr.bf16.mxu1 %v2337_v3  ;;  %v2283_v37 = vld [vmem:[%s2738_s19 + $0x28] sm:$0xff]   ;;  %v2285_v47 = vld [vmem:[%s2738_s19 + $0x38] sm:$0xff]  }
  0x39   : > { %v658_v6 = vpack.i.b16 %v654_v5, %v654_v5  ;;  %v1198_v38 = vld [vmem:[%s2741_s8] sm:$0x1]  ;;  %v2284_v55 = vld [vmem:[%s2738_s19 + $0x30] sm:$0xff]  }
  0x3a   : > { %v1202_v41 = vpack.i.b16 %v1198_v38, %v1198_v38  ;;  %v2282_v46 = vld [vmem:[%s2738_s19 + $0x20] sm:$0xff]  }
  0x3b   : > { %v663_v10 = vrot.slane %v658_v6, %v662_v8  ;;  %v2287_v61 = vld [vmem:[%s2742_s18] sm:$0xff]  }
  0x3c   : > { %v1207_v48 = vrot.slane %v1202_v41, %v662_v8  ;;  %v2286_v7 = vld [vmem:[%s2738_s19 + $0x40] sm:$0xff]   ;;  %v2289_v8 = vld [vmem:[%s2742_s18 + $0x10] sm:$0xff]  }
  0x3d   : > { %v2007_v12 = vcombine.low %v663_v10, %v663_v10 }
  0x3e   : > { %v2574_v53 = vcombine.low %v1207_v48, %v1207_v48 }
  0x3f   : > { %v668_v16 = vadd.bf16 %v2007_v12, %v655_v9  ;;  %v669_v17 = vadd.bf16 %v2007_v12, %v656_v11  ;;  %v674_v23 = vadd.bf16 %v2007_v12, %v672_v14  ;;  %v675_v25 = vadd.bf16 %v2007_v12, %v673_v15  ;;  %v2288_v15 = vld [vmem:[%s2742_s18 + $0x8] sm:$0xff]  }
  0x40   : > { %v680_v26 = vadd.bf16 %v2007_v12, %v678_v18  ;;  %v681_v27 = vadd.bf16 %v2007_v12, %v679_v19  ;;  %v1212_v62 = vadd.bf16 %v2574_v53, %v1199_v57  ;;  %v1213_v63 = vadd.bf16 %v2574_v53, %v1200_v58 }
  0x41   : > { %v670_v21 = vmax.bf16 %v2339_v20, %v668_v16  ;;  %v671_v22 = vmax.bf16 %v2339_v20, %v669_v17  ;;  %v676_v30 = vmax.bf16 %v2339_v20, %v674_v23  ;;  %v677_v32 = vmax.bf16 %v2339_v20, %v675_v25  ;;  %v2291_v16 = vld [vmem:[%s2742_s18 + $0x20] sm:$0xff]  }
  0x42   : > { %v2535_v33 = vmax.bf16 %v2339_v20, %v680_v26  ;;  %v683_v34 = vmax.bf16 %v2339_v20, %v681_v27  ;;  %v1218_v0 = vadd.bf16 %v2574_v53, %v1216_v59  ;;  %v1219_v1 = vadd.bf16 %v2574_v53, %v1217_v60  ;;  %v1222_v25 = vld [vmem:[%s2483_s9] sm:$0xf]  ;;  %v1223_v26 = vld [vmem:[%s2483_s9 + $0x4] sm:$0x1]  ;;  %v2293_v27 = vld [vmem:[%s2742_s18 + $0x30] sm:$0xff]  }
  0x43   : > { %v2010_v24 = vcombine.low %v670_v21, %v671_v22  ;;  %2133 = vmatmul.mubr.msk.bf16.vlgmr.msra.gmra.mxu1 %vm707_vm2, %v670_v21  ;;  %v2025_v39 = vcombine.low %v676_v30, %v677_v32  ;;  %v1214_v2 = vmax.bf16 %v2339_v20, %v1212_v62  ;;  %v1215_v4 = vmax.bf16 %v2339_v20, %v1213_v63  ;;  %v2292_v32 = vld [vmem:[%s2742_s18 + $0x28] sm:$0xff]  }
  0x44   : > { %2143 = vmatpush3.bf16.msra.mxu1 %v2281_v13  ;;  %2144 = vmatprep.mubr.msk.bf16.mxu1 %vm2338_vm1, %v2337_v3  ;;  %v2550_v40 = vcombine.low %v2535_v33, %v683_v34  ;;  %v1220_v5 = vmax.bf16 %v2339_v20, %v1218_v0  ;;  %v1221_v6 = vmax.bf16 %v2339_v20, %v1219_v1 }
  0x45   : > { %v695_v28 = vshrl.u32 %v2010_v24, 16  ;;  %v697_v29 = vshll.u32 %v2010_v24, 16  ;;  %2154 = vmatprep.subr.bf16.mxu1 %v2337_v3  ;;  %v803_v42 = vrot.slane %v2010_v24, 1  ;;  %v975_v43 = vrot.slane %v2025_v39, 1  ;;  %v2290_v24 = vld [vmem:[%s2742_s18 + $0x18] sm:$0xff]  }
  0x46   : > { %v918_v44 = vshll.u32 %v2025_v39, 16  ;;  %v1090_v45 = vshll.u32 %v2550_v40, 16  ;;  %v916_v49 = vshrl.u32 %v2025_v39, 16  ;;  %v1088_v51 = vshrl.u32 %v2550_v40, 16 }
  0x47   : > { %v699_v31 = vrot.slane %v697_v29, 1  ;;  %v2050_v9 = vcombine.low %v1214_v2, %v1215_v4  ;;  %v2063_v10 = vcombine.low %v1220_v5, %v1221_v6  ;;  %v1147_v11 = vrot.slane %v2550_v40, 1 }
  0x48   : > { %v920_v50 = vrot.slane %v918_v44, 1  ;;  %v1092_v52 = vrot.slane %v1090_v45, 1  ;;  %v1225_v29 = vadd.bf16 %v2574_v53, %v1223_v26 }
  0x49   : > { %v700_v36 = vor.u32 %v699_v31, %v695_v28  ;;  %v1348_v12 = vrot.slane %v2050_v9, 1  ;;  %v1291_v13 = vshll.u32 %v2050_v9, 16  ;;  %v1463_v14 = vshll.u32 %v2063_v10, 16 }
  0x4a   : > { %v921_v54 = vor.u32 %v920_v50, %v916_v49  ;;  %v1093_v56 = vor.u32 %v1092_v52, %v1088_v51  ;;  %v1289_v17 = vshrl.u32 %v2050_v9, 16  ;;  %v1461_v19 = vshrl.u32 %v2063_v10, 16 }
  0x4b   : > { %2127 = vmatmul.mubr.msk.bf16.vlgmr.msra.gmra.mxu0 %vm707_vm2, %v700_v36  ;;  %2145 = vmatmul.mubr.msk.bf16.vlgmr.msra.gmra.mxu1 %vm707_vm2, %v676_v30  ;;  %v1293_v18 = vrot.slane %v1291_v13, 1  ;;  %v1465_v21 = vrot.slane %v1463_v14, 1  ;;  %v1224_v28 = vadd.bf16 %v2574_v53, %v1222_v25  ;;  %v1227_v31 = vmax.bf16 %v2339_v20, %v1225_v29 }
  0x4c   : > { %2137 = vmatpush3.bf16.msra.mxu0 %v2280_v35  ;;  %2138 = vmatprep.mubr.msk.bf16.mxu0 %vm2338_vm1, %v2337_v3 }
  0x4d   : > { %2148 = vmatprep.subr.bf16.mxu0 %v2337_v3  ;;  %2155 = vmatpush3.bf16.msra.mxu1 %v2283_v37  ;;  %v1294_v22 = vor.u32 %v1293_v18, %v1289_v17  ;;  %v1466_v23 = vor.u32 %v1465_v21, %v1461_v19  ;;  %v1226_v30 = vmax.bf16 %v2339_v20, %v1224_v28  ;;  %v1520_v20 = vrot.slane %v2063_v10, 1  ;;  %v2294_v37 = vld [vmem:[%s2742_s18 + $0x38] sm:$0xff]  }
  0x4e   : > { %2156 = vmatprep.mubr.msk.bf16.mxu1 %vm2338_vm1, %v2337_v3  ;;  %2166 = vmatprep.subr.bf16.mxu1 %v2337_v3 }
  0x4f   : > { %v2076_v34 = vcombine.low %v1226_v30, %v1227_v31 }
  0x51   : > { %v1692_v35 = vrot.slane %v2076_v34, 1  ;;  %v1635_v36 = vshll.u32 %v2076_v34, 16  ;;  %v1633_v38 = vshrl.u32 %v2076_v34, 16 }
  0x53   : > { %2139 = vmatmul.mubr.msk.bf16.vlgmr.msra.gmra.mxu0 %vm707_vm2, %v803_v42  ;;  %2157 = vmatmul.mubr.msk.bf16.vlgmr.msra.gmra.mxu1 %vm707_vm2, %v975_v43  ;;  %v1637_v39 = vrot.slane %v1635_v36, 1 }
  0x54   : > { %2149 = vmatpush3.bf16.msra.mxu0 %v2282_v46  ;;  %2150 = vmatprep.mubr.msk.bf16.mxu0 %vm2338_vm1, %v2337_v3 }
  0x55   : > { %2160 = vmatprep.subr.bf16.mxu0 %v2337_v3  ;;  %2167 = vmatpush3.bf16.msra.mxu1 %v2285_v47  ;;  %v1638_v40 = vor.u32 %v1637_v39, %v1633_v38 }
  0x56   : > { %2168 = vmatprep.mubr.msk.bf16.mxu1 %vm2338_vm1, %v2337_v3  ;;  %2178 = vmatprep.subr.bf16.mxu1 %v2337_v3 }
  0x5b   : > { %2151 = vmatmul.mubr.msk.bf16.vlgmr.msra.gmra.mxu0 %vm707_vm2, %v921_v54  ;;  %2169 = vmatmul.mubr.msk.bf16.vlgmr.msra.gmra.mxu1 %vm707_vm2, %v1093_v56 }
  0x5c   : > { %2161 = vmatpush3.bf16.msra.mxu0 %v2284_v55  ;;  %2162 = vmatprep.mubr.msk.bf16.mxu0 %vm2338_vm1, %v2337_v3 }
  0x5d   : > { %2172 = vmatprep.subr.bf16.mxu0 %v2337_v3  ;;  %2179 = vmatpush3.bf16.msra.mxu1 %v2287_v61 }
  0x5e   : > { %2180 = vmatprep.mubr.msk.bf16.mxu1 %vm2338_vm1, %v2337_v3  ;;  %2190 = vmatprep.subr.bf16.mxu1 %v2337_v3 }
  0x63   : > { %2163 = vmatmul.mubr.msk.bf16.vlgmr.msra.gmra.mxu0 %vm707_vm2, %v2535_v33  ;;  %2181 = vmatmul.mubr.msk.bf16.vlgmr.msra.gmra.mxu1 %vm707_vm2, %v1214_v2  ;;  %v2295_v33 = vld [vmem:[%s2742_s18 + $0x40] sm:$0xff]  }
  0x64   : > { %2173 = vmatpush3.bf16.msra.mxu0 %v2286_v7  ;;  %2174 = vmatprep.mubr.msk.bf16.mxu0 %vm2338_vm1, %v2337_v3 }
  0x65   : > { %2184 = vmatprep.subr.bf16.mxu0 %v2337_v3  ;;  %2191 = vmatpush3.bf16.msra.mxu1 %v2289_v8 }
  0x66   : > { %2192 = vmatprep.mubr.msk.bf16.mxu1 %vm2338_vm1, %v2337_v3  ;;  %2202 = vmatprep.subr.bf16.mxu1 %v2337_v3 }
  0x6b   : > { %2175 = vmatmul.mubr.msk.bf16.vlgmr.msra.gmra.mxu0 %vm707_vm2, %v1147_v11  ;;  %2193 = vmatmul.mubr.msk.bf16.vlgmr.msra.gmra.mxu1 %vm707_vm2, %v1348_v12 }
  0x6c   : > { %2185 = vmatpush3.bf16.msra.mxu0 %v2288_v15  ;;  %2186 = vmatprep.mubr.msk.bf16.mxu0 %vm2338_vm1, %v2337_v3 }
  0x6d   : > { %2196 = vmatprep.subr.bf16.mxu0 %v2337_v3  ;;  %2203 = vmatpush3.bf16.msra.mxu1 %v2291_v16 }
  0x6e   : > { %2204 = vmatprep.mubr.msk.bf16.mxu1 %vm2338_vm1, %v2337_v3  ;;  %2214 = vmatprep.subr.bf16.mxu1 %v2337_v3 }
  0x73   : > { %2187 = vmatmul.mubr.msk.bf16.vlgmr.msra.gmra.mxu0 %vm707_vm2, %v1294_v22  ;;  %2205 = vmatmul.mubr.msk.bf16.vlgmr.msra.gmra.mxu1 %vm707_vm2, %v1466_v23 }
  0x74   : > { %2197 = vmatpush3.bf16.msra.mxu0 %v2290_v24  ;;  %2198 = vmatprep.mubr.msk.bf16.mxu0 %vm2338_vm1, %v2337_v3 }
  0x75   : > { %2208 = vmatprep.subr.bf16.mxu0 %v2337_v3  ;;  %2215 = vmatpush3.bf16.msra.mxu1 %v2293_v27 }
  0x76   : > { %2216 = vmatprep.mubr.msk.bf16.mxu1 %vm2338_vm1, %v2337_v3  ;;  %2226 = vmatprep.subr.bf16.mxu1 %v2337_v3 }
  0x7b   : > { %2199 = vmatmul.mubr.msk.bf16.vlgmr.msra.gmra.mxu0 %vm707_vm2, %v1220_v5  ;;  %2217 = vmatmul.mubr.msk.bf16.vlgmr.msra.gmra.mxu1 %vm707_vm2, %v1226_v30 }
  0x7c   : > { %2209 = vmatpush3.bf16.msra.mxu0 %v2292_v32  ;;  %2210 = vmatprep.mubr.msk.bf16.mxu0 %vm2338_vm1, %v2337_v3 }
  0x7d   : > { %2220 = vmatprep.subr.bf16.mxu0 %v2337_v3  ;;  %2227 = vmatpush3.bf16.msra.mxu1 %v2295_v33 }
  0x7e   : > { %2228 = vmatprep.mubr.msk.bf16.mxu1 %vm2338_vm1, %v2337_v3 }
  0x83   : > { %2211 = vmatmul.mubr.msk.bf16.vlgmr.msra.gmra.mxu0 %vm707_vm2, %v1520_v20  ;;  %2229 = vmatmul.mubr.msk.bf16.vlgmr.msra.gmra.mxu1 %vm707_vm2, %v1692_v35 }
  0x84   : > { %2221 = vmatpush3.bf16.msra.mxu0 %v2294_v37  ;;  %2222 = vmatprep.mubr.msk.bf16.mxu0 %vm2338_vm1, %v2337_v3 }
  0x8b   : > { %2223 = vmatmul.mubr.msk.bf16.vlgmr.msra.gmra.mxu0 %vm707_vm2, %v1638_v40 }
 0x103   : > { %v794_v41 = vpop.f32.mrf.mxu1 }
 0x105   : > { %v2134_v42 = vpop.f32.mrf.mxu1 }
 0x107   : > { %v797_v43 = vpop.f32.mrf.mxu1 }
 0x109   : > { %v2135_v44 = vpop.f32.mrf.mxu1 }
 0x10b   : > { %v745_v45 = vpop.f32.mrf.mxu0  ;;  %v900_v46 = vpop.f32.mrf.mxu1 }
 0x10c   : > { %v795_v2 = vadd.f32 %v794_v41, %v745_v45 }
 0x10d   : > { %v2128_v47 = vpop.f32.mrf.mxu0  ;;  %v2146_v48 = vpop.f32.mrf.mxu1 }
 0x10f   : > { %v748_v49 = vpop.f32.mrf.mxu0  ;;  %v903_v50 = vpop.f32.mrf.mxu1 }
 0x111   : > { %v2129_v51 = vpop.f32.mrf.mxu0  ;;  %v2147_v52 = vpop.f32.mrf.mxu1 }
 0x113   : > { %v847_v53 = vpop.f32.mrf.mxu0  ;;  %v1019_v54 = vpop.f32.mrf.mxu1 }
 0x114   : > { %v853_v6 = vadd.f32 %v847_v53, %v795_v2 }
 0x115   : > { %v2140_v55 = vpop.f32.mrf.mxu0  ;;  %v2158_v56 = vpop.f32.mrf.mxu1 }
 0x116   : > { %v906_v11 = vadd.f32 %v900_v46, %v853_v6 }
 0x117   : > { %v850_v3 = vpop.f32.mrf.mxu0  ;;  %v1022_v57 = vpop.f32.mrf.mxu1 }
 0x119   : > { %v2141_v58 = vpop.f32.mrf.mxu0  ;;  %v2159_v59 = vpop.f32.mrf.mxu1 }
 0x11b   : > { %v965_v60 = vpop.f32.mrf.mxu0  ;;  %v1137_v61 = vpop.f32.mrf.mxu1 }
 0x11c   : > { %v971_v14 = vadd.f32 %v965_v60, %v906_v11 }
 0x11d   : > { %v2152_v62 = vpop.f32.mrf.mxu0  ;;  %v2170_v63 = vpop.f32.mrf.mxu1 }
 0x11e   : > { %v1025_v19 = vadd.f32 %v1019_v54, %v971_v14 }
 0x11f   : > { %v968_v0 = vpop.f32.mrf.mxu0  ;;  %v1140_v1 = vpop.f32.mrf.mxu1 }
 0x121   : > { %v2153_v4 = vpop.f32.mrf.mxu0  ;;  %v2171_v5 = vpop.f32.mrf.mxu1 }
 0x123   : > { %v1072_v7 = vpop.f32.mrf.mxu0  ;;  %v1273_v8 = vpop.f32.mrf.mxu1 }
 0x124   : > { %v1078_v23 = vadd.f32 %v1072_v7, %v1025_v19 }
 0x125   : > { %v2164_v9 = vpop.f32.mrf.mxu0  ;;  %v2182_v10 = vpop.f32.mrf.mxu1 }
 0x126   : > { %v1143_v28 = vadd.f32 %v1137_v61, %v1078_v23 }
 0x127   : > { %v1075_v12 = vpop.f32.mrf.mxu0  ;;  %v1276_v13 = vpop.f32.mrf.mxu1 }
 0x129   : > { %v2165_v15 = vpop.f32.mrf.mxu0  ;;  %v2183_v16 = vpop.f32.mrf.mxu1 }
 0x12a   : > { %v1754_v15 = vld [vmem:[%s2715_s11] sm:$0x1] }
 0x12b   : > { %v1191_v17 = vpop.f32.mrf.mxu0  ;;  %v1392_v18 = vpop.f32.mrf.mxu1 }
 0x12c   : > { %v1197_v31 = vadd.f32 %v1191_v17, %v1143_v28 }
 0x12d   : > { %v2176_v21 = vpop.f32.mrf.mxu0  ;;  %v2194_v22 = vpop.f32.mrf.mxu1 }
 0x12e   : > { %v1279_v35 = vadd.f32 %v1273_v8, %v1197_v31 }
 0x12f   : > { %v1194_v24 = vpop.f32.mrf.mxu0  ;;  %v1395_v25 = vpop.f32.mrf.mxu1 }
 0x131   : > { %v2177_v26 = vpop.f32.mrf.mxu0  ;;  %v2195_v27 = vpop.f32.mrf.mxu1 }
 0x133   : > { %v1338_v29 = vpop.f32.mrf.mxu0  ;;  %v1510_v30 = vpop.f32.mrf.mxu1 }
 0x134   : > { %v1344_v38 = vadd.f32 %v1338_v29, %v1279_v35 }
 0x135   : > { %v2188_v32 = vpop.f32.mrf.mxu0  ;;  %v2206_v33 = vpop.f32.mrf.mxu1 }
 0x136   : > { %v1398_v43 = vadd.f32 %v1392_v18, %v1344_v38  ;;  %v1766_v18 = vld [vmem:[%s2716_s12] sm:$0x1] }
 0x137   : > { %v1341_v34 = vpop.f32.mrf.mxu0  ;;  %v1513_v20 = vpop.f32.mrf.mxu1 }
 0x139   : > { %v2189_v36 = vpop.f32.mrf.mxu0  ;;  %v2207_v37 = vpop.f32.mrf.mxu1 }
 0x13b   : > { %v1445_v39 = vpop.f32.mrf.mxu0  ;;  %v1617_v40 = vpop.f32.mrf.mxu1 }
 0x13c   : > { %v1451_v46 = vadd.f32 %v1445_v39, %v1398_v43 }
 0x13d   : > { %v2200_v41 = vpop.f32.mrf.mxu0  ;;  %v2218_v42 = vpop.f32.mrf.mxu1 }
 0x13e   : > { %v1516_v51 = vadd.f32 %v1510_v30, %v1451_v46 }
 0x13f   : > { %v1448_v44 = vpop.f32.mrf.mxu0  ;;  %v1620_v45 = vpop.f32.mrf.mxu1 }
 0x141   : > { %v2201_v47 = vpop.f32.mrf.mxu0  ;;  %v2219_v48 = vpop.f32.mrf.mxu1 }
 0x143   : > { %v1564_v49 = vpop.f32.mrf.mxu0  ;;  %v1736_v50 = vpop.f32.mrf.mxu1 }
 0x144   : > { %v1570_v54 = vadd.f32 %v1564_v49, %v1516_v51 }
 0x145   : > { %v2212_v52 = vpop.f32.mrf.mxu0  ;;  %v2230_v53 = vpop.f32.mrf.mxu1 }
 0x146   : > { %v1623_v58 = vadd.f32 %v1617_v40, %v1570_v54 }
 0x147   : > { %v1567_v55 = vpop.f32.mrf.mxu0  ;;  %v1739_v56 = vpop.f32.mrf.mxu1 }
 0x149   : > { %v2213_v3 = vpop.f32.mrf.mxu0  ;;  %v2231_v57 = vpop.f32.mrf.mxu1 }
 0x14b   : > { %v1682_v59 = vpop.f32.mrf.mxu0 }
 0x14c   : > { %v1688_v60 = vadd.f32 %v1682_v59, %v1623_v58 }
 0x14d   : > { %v2224_v61 = vpop.f32.mrf.mxu0 }
 0x14e   : > { %v1742_v62 = vadd.f32 %v1736_v50, %v1688_v60 }
 0x14f   : > { %v1685_v63 = vpop.f32.mrf.mxu0 }
 0x150   : > { %v1756_v0 = vsel %vm1755_vm3, %v1742_v62, 0.0  ;;  %v1767_v1 = vmul.f32 %v1742_v62, %v1742_v62  ;;  %v1743_v2 = vpack.c.bf16 %v1742_v62, %v1742_v62 }
 0x151   : > { %v1757_v4 = vrot.slane %v1756_v0, 4  ;;  %v2225_v5 = vpop.f32.mrf.mxu0 }
 0x152   : > { %v1768_v6 = vsel %vm1755_vm3, %v1767_v1, 0.0  ;;  %1749 = vrot.lane.b32.xlu0 %v1743_v2, %s2340_s16  ;;  %1745 = vst.msk [vmem:[%s2492_s13] sm:$0xf] %vm1744_vm4, %v1743_v2 }
 0x153   : > { %v1758_v7 = vadd.f32 %v1757_v4, %v1756_v0  ;;  %v1769_v8 = vrot.slane %v1768_v6, 4 }
 0x155   : > { %v1759_v9 = vrot.slane %v1758_v7, 2  ;;  %v1770_v10 = vadd.f32 %v1769_v8, %v1768_v6 }
 0x157   : > { %v1760_v11 = vadd.f32 %v1759_v9, %v1758_v7  ;;  %v1771_v12 = vrot.slane %v1770_v10, 2 }
 0x159   : > { %v1761_v13 = vrot.slane %v1760_v11, 1  ;;  %v1772_v14 = vadd.f32 %v1771_v12, %v1770_v10 }
 0x15b   : > { %v1762_v16 = vadd.f32 %v1761_v13, %v1760_v11  ;;  %v1773_v17 = vrot.slane %v1772_v14, 1 }
 0x15d   : > { %v1763_v19 = vadd.f32 %v1762_v16, %v1754_v15  ;;  %v1774_v21 = vadd.f32 %v1773_v17, %v1772_v14 }
 0x15f   : > { %1765 = vst.msk [vmem:[%s2715_s11] sm:$0x1] %vm1764_vm5, %v1763_v19  ;;  %v1775_v22 = vadd.f32 %v1774_v21, %v1766_v18 }
 0x161   : > { %1776 = vst.msk [vmem:[%s2716_s12] sm:$0x1] %vm1764_vm5, %v1775_v22 }
 0x1c4   : > { %v1750_v23 = vpop.permute.xlu0 %1749 }
 0x1c5   : > { %2084 = vst.msk [vmem:[%s2492_s13 + $0x4] sm:$0xf] %vm1744_vm4, %v1750_v23 }
 0x1c6 PF: > { %s2743_s24 = sld [smem:[#allocation4_spill]] }
 0x1c7   : > { %s2744_s21 = sld [smem:[#allocation2_spill]] }
 0x1c8   : > { %s2745_s22 = sld [smem:[#allocation3_spill]] }
 0x1c9   : > { %s2746_s23 = sld [smem:[#allocation5_spill]] }
 0x1cc   : > { %s23_s25 = sadd.s32 1, %s2743_s24   ;;  %s2747_s24 = sld [smem:[#allocation6_spill]] }
 0x1cd   : > { %p20_p13 = scmp.ge.s32.totalorder %s23_s25, 18  }
 0x1cf   :  { %22 = sbr.rel (!%p20_p13) target bundleno = 7 (0x7), region = 142 }

// kernel: custom_unet_forward.15
= control target key start
LH: loop header
LB: loop body
LE: loop exit
PB: predicated region body
PF: predicated region fallthrough
CT: control target
= control target key end

     0   :  { %s1843_s24 = smov 0   ;;  %s2214_s0 = inlined_call_operand.vmem [shape: bf16[512,8], index: 0, kind: input, shape index: {}]   ;;  %s2215_s1 = inlined_call_operand.vmem [shape: bf16[1,8], index: 1, kind: input, shape index: {}]   ;;  %s2216_s2 = inlined_call_operand.vmem [shape: bf16[8,2], index: 2, kind: input, shape index: {}]   ;;  %s2217_s3 = inlined_call_operand.vmem [shape: bf16[512,8], index: 3, kind: input, shape index: {}]   ;;  %s2218_s4 = inlined_call_operand.vmem [shape: bf16[1,8], index: 4, kind: input, shape index: {}]   ;;  %s2219_s5 = inlined_call_operand.vmem [shape: bf16[8,2], index: 5, kind: input, shape index: {}]   ;;  %s2220_s6 = inlined_call_operand.vmem [shape: f32[1,2], index: 6, kind: input, shape index: {}]   ;;  %s2221_s7 = inlined_call_operand.vmem [shape: f32[512,2], index: 7, kind: output, shape index: {}]  }
   0x1 LB: > { %s1441_s25 = sadd.s32 4294967295, %s1800_s24   ;;  %p1445_p0 = scmp.ge.s32.totalorder %s1800_s24, 1  ;;  %s1800_s24 = sphi %s1843_s24, %s17_s24  }
   0x2   : > { %p249_p1 = scmp.lt.s32.totalorder %s1800_s24, 3 }
   0x4   : > { %p250_p2 = pnand %p1445_p0, %p249_p1 }
   0x5   : > { %s1446_s30 = sshll.u32 (!%p250_p2), %s1441_s25, 5 }
   0x6   : > { %253 = sbr.rel (%p250_p2) target bundleno = 322 (0x142), region = 48  ;;  %p287_p3 = scmp.lt.s32.totalorder (!%p250_p2), %s1446_s30, 63 }
   0xb   : > { %v522_v0 = vld [vmem:[%s2219_s5] sm:$0xf]  ;;  %vm652_vm0 = vcmask 1043456   ;;  %v341_v2 = vlaneseq  ;;  %s2223_s30 = smov (!%p287_p3, %s1446_s30), 63  ;;  %vm603_vm1 = vcmask 64512   ;;  %v1802_v33 = vmov 0  }
   0xc   : > { %v413_v1 = vld [vmem:[%s2216_s2] sm:$0xf]  ;;  %1655 = vmatprep.subr.msk.bf16.mxu0 %vm652_vm0, %v522_v0  ;;  %v654_v3 = vsel %vm652_vm0, %v522_v0, 0  ;;  %s1447_s12 = sshll.u32 %s2223_s30, 2  ;;  %s1451_s21 = sshll.u32 %s2223_s30, 3  ;;  %vm1340_vm2 = vcmask 15360  }
   0xd   : > { %1656 = vmatprep.subr.msk.bf16.mxu1 %vm652_vm0, %v413_v1  ;;  %v946_v4 = vsel %vm652_vm0, %v413_v1, 0  ;;  %v446_v5 = vld [vmem:[%s2218_s4] sm:$0x1]  ;;  %1588 = vmatpush3.bf16.msra.mxu0 %v654_v3  ;;  %v342_v6 = vshrl.u32 %v341_v2, 7  ;;  %s1869_s15 = scalar_lea.vmem %s2217_s3, %s1447_s12  ;;  %s1876_s18 = scalar_lea.vmem %s2214_s0, %s1447_s12 }
   0xe   : > { %1622 = vmatpush3.bf16.msra.mxu1 %v946_v4  ;;  %v448_v7 = vpack.i.b16 %v446_v5, %v446_v5  ;;  %v337_v8 = vld [vmem:[%s2215_s1] sm:$0x1]  ;;  %v415_v14 = vld [vmem:[%s1869_s15 + $0x4] sm:$0xf]  ;;  %v416_v15 = vld [vmem:[%s1869_s15 + $0x8] sm:$0xf]  ;;  %s2129_s25 = scalar_lea.vmem %s2221_s7, %s1451_s21 }
   0xf   : > { %v339_v9 = vpack.i.b16 %v337_v8, %v337_v8  ;;  %v343_v10 = vsub.s32 0, %v342_v6  ;;  %v414_v13 = vld [vmem:[%s1869_s15] sm:$0xf]  ;;  %v306_v18 = vld [vmem:[%s1876_s18 + $0x4] sm:$0xf] }
  0x10   : > { %v305_v17 = vld [vmem:[%s1876_s18] sm:$0xf]  ;;  %v417_v20 = vld [vmem:[%s1869_s15 + $0xc] sm:$0xf]  ;;  %v307_v21 = vld [vmem:[%s1876_s18 + $0x8] sm:$0xf] }
  0x11   : > { %v453_v11 = vrot.slane %v448_v7, %v343_v10  ;;  %v344_v12 = vrot.slane %v339_v9, %v343_v10  ;;  %v308_v22 = vld [vmem:[%s1876_s18 + $0xc] sm:$0xf]  ;;  %v418_v31 = vld [vmem:[%s1869_s15 + $0x10] sm:$0xf]  ;;  %v419_v32 = vld [vmem:[%s1869_s15 + $0x14] sm:$0xf] }
  0x12   : > { %v309_v38 = vld [vmem:[%s1876_s18 + $0x10] sm:$0xf]  ;;  %v310_v39 = vld [vmem:[%s1876_s18 + $0x14] sm:$0xf]  ;;  %v420_v44 = vld [vmem:[%s1869_s15 + $0x18] sm:$0xf] }
  0x13   : > { %v1879_v16 = vcombine.low %v453_v11, %v453_v11  ;;  %v1883_v19 = vcombine.low %v344_v12, %v344_v12  ;;  %v421_v49 = vld [vmem:[%s1869_s15 + $0x1c] sm:$0xf]  ;;  %v311_v54 = vld [vmem:[%s1876_s18 + $0x18] sm:$0xf]  ;;  %v422_v59 = vld [vmem:[%s1869_s15 + $0x20] sm:$0xf] }
  0x14   : > { %v312_v55 = vld [vmem:[%s1876_s18 + $0x1c] sm:$0xf]  ;;  %v423_v60 = vld [vmem:[%s1869_s15 + $0x24] sm:$0xf]  ;;  %v313_v0 = vld [vmem:[%s1876_s18 + $0x20] sm:$0xf] }
  0x15   : > { %v458_v23 = vadd.bf16 %v1879_v16, %v414_v13  ;;  %v459_v24 = vadd.bf16 %v1879_v16, %v415_v14  ;;  %v349_v25 = vadd.bf16 %v1883_v19, %v305_v17  ;;  %v350_v26 = vadd.bf16 %v1883_v19, %v306_v18  ;;  %v314_v1 = vld [vmem:[%s1876_s18 + $0x24] sm:$0xf]  ;;  %v424_v6 = vld [vmem:[%s1869_s15 + $0x28] sm:$0xf]  ;;  %v425_v11 = vld [vmem:[%s1869_s15 + $0x2c] sm:$0xf] }
  0x16   : > { %v460_v27 = vadd.bf16 %v1879_v16, %v416_v15  ;;  %v461_v28 = vadd.bf16 %v1879_v16, %v417_v20  ;;  %v351_v29 = vadd.bf16 %v1883_v19, %v307_v21  ;;  %v352_v30 = vadd.bf16 %v1883_v19, %v308_v22  ;;  %v315_v17 = vld [vmem:[%s1876_s18 + $0x28] sm:$0xf]  ;;  %v316_v18 = vld [vmem:[%s1876_s18 + $0x2c] sm:$0xf] }
  0x17   : > { %v490_v34 = vmax.bf16 %v1802_v33, %v458_v23  ;;  %v491_v35 = vmax.bf16 %v1802_v33, %v459_v24  ;;  %v381_v36 = vmax.bf16 %v1802_v33, %v349_v25  ;;  %v382_v37 = vmax.bf16 %v1802_v33, %v350_v26  ;;  %v426_v24 = vld [vmem:[%s1869_s15 + $0x30] sm:$0xf]  ;;  %v427_v25 = vld [vmem:[%s1869_s15 + $0x34] sm:$0xf] }
  0x18   : > { %v492_v40 = vmax.bf16 %v1802_v33, %v460_v27  ;;  %v493_v41 = vmax.bf16 %v1802_v33, %v461_v28  ;;  %v383_v42 = vmax.bf16 %v1802_v33, %v351_v29  ;;  %v384_v43 = vmax.bf16 %v1802_v33, %v352_v30  ;;  %v317_v30 = vld [vmem:[%s1876_s18 + $0x30] sm:$0xf] }
  0x19   : > { %v1454_v45 = vcombine.low %v490_v34, %v491_v35  ;;  %v1486_v46 = vcombine.low %v381_v36, %v382_v37  ;;  %v462_v47 = vadd.bf16 %v1879_v16, %v418_v31  ;;  %v463_v48 = vadd.bf16 %v1879_v16, %v419_v32 }
  0x1a   : > { %v1455_v50 = vcombine.low %v492_v40, %v493_v41  ;;  %v1487_v51 = vcombine.low %v383_v42, %v384_v43  ;;  %v353_v52 = vadd.bf16 %v1883_v19, %v309_v38  ;;  %v354_v53 = vadd.bf16 %v1883_v19, %v310_v39  ;;  %v318_v40 = vld [vmem:[%s1876_s18 + $0x34] sm:$0xf]  ;;  %v428_v41 = vld [vmem:[%s1869_s15 + $0x38] sm:$0xf] }
  0x1b   : > { %1589 = vmatprep.mubr.msk.bf16.mxu0 %vm603_vm1, %v1454_v45  ;;  %1623 = vmatprep.mubr.msk.bf16.mxu1 %vm603_vm1, %v1486_v46  ;;  %v494_v56 = vmax.bf16 %v1802_v33, %v462_v47  ;;  %v495_v57 = vmax.bf16 %v1802_v33, %v463_v48  ;;  %v464_v58 = vadd.bf16 %v1879_v16, %v420_v44  ;;  %v429_v45 = vld [vmem:[%s1869_s15 + $0x3c] sm:$0xf]  ;;  %v319_v46 = vld [vmem:[%s1876_s18 + $0x38] sm:$0xf] }
  0x1c   : > { %1590 = vmatmul.mubr.msk.bf16.vlgmr.msra.gmra.mxu0 %vm603_vm1, %v1455_v50  ;;  %1624 = vmatmul.mubr.msk.bf16.vlgmr.msra.gmra.mxu1 %vm603_vm1, %v1487_v51  ;;  %v385_v61 = vmax.bf16 %v1802_v33, %v353_v52  ;;  %v386_v62 = vmax.bf16 %v1802_v33, %v354_v53  ;;  %v465_v63 = vadd.bf16 %v1879_v16, %v421_v49  ;;  %v320_v47 = vld [vmem:[%s1876_s18 + $0x3c] sm:$0xf]  ;;  %v430_v50 = vld [vmem:[%s1869_s15 + $0x40] sm:$0xf]  ;;  %v431_v51 = vld [vmem:[%s1869_s15 + $0x44] sm:$0xf] }
  0x1d   : > { %v1456_v2 = vcombine.low %v494_v56, %v495_v57  ;;  %v496_v3 = vmax.bf16 %v1802_v33, %v464_v58  ;;  %v355_v4 = vadd.bf16 %v1883_v19, %v311_v54  ;;  %v356_v5 = vadd.bf16 %v1883_v19, %v312_v55  ;;  %v321_v55 = vld [vmem:[%s1876_s18 + $0x40] sm:$0xf] }
  0x1e   : > { %v1488_v7 = vcombine.low %v385_v61, %v386_v62  ;;  %v497_v8 = vmax.bf16 %v1802_v33, %v465_v63  ;;  %v466_v9 = vadd.bf16 %v1879_v16, %v422_v59  ;;  %v467_v10 = vadd.bf16 %v1879_v16, %v423_v60  ;;  %v322_v60 = vld [vmem:[%s1876_s18 + $0x44] sm:$0xf] }
  0x1f   : > { %1593 = vmatprep.mubr.msk.bf16.mxu0 %vm603_vm1, %v1456_v2  ;;  %v387_v12 = vmax.bf16 %v1802_v33, %v355_v4  ;;  %v388_v13 = vmax.bf16 %v1802_v33, %v356_v5  ;;  %v357_v14 = vadd.bf16 %v1883_v19, %v313_v0  ;;  %v358_v15 = vadd.bf16 %v1883_v19, %v314_v1 }
  0x20   : > { %1627 = vmatprep.mubr.msk.bf16.mxu1 %vm603_vm1, %v1488_v7  ;;  %v1457_v20 = vcombine.low %v496_v3, %v497_v8  ;;  %v498_v21 = vmax.bf16 %v1802_v33, %v466_v9  ;;  %v499_v22 = vmax.bf16 %v1802_v33, %v467_v10  ;;  %v468_v23 = vadd.bf16 %v1879_v16, %v424_v6 }
  0x21   : > { %v1489_v26 = vcombine.low %v387_v12, %v388_v13  ;;  %v389_v27 = vmax.bf16 %v1802_v33, %v357_v14  ;;  %v390_v28 = vmax.bf16 %v1802_v33, %v358_v15  ;;  %v469_v29 = vadd.bf16 %v1879_v16, %v425_v11  ;;  %v432_v11 = vld [vmem:[%s1869_s15 + $0x48] sm:$0xf]  ;;  %v433_v12 = vld [vmem:[%s1869_s15 + $0x4c] sm:$0xf] }
  0x22   : > { %v1458_v31 = vcombine.low %v498_v21, %v499_v22  ;;  %v500_v32 = vmax.bf16 %v1802_v33, %v468_v23  ;;  %v359_v34 = vadd.bf16 %v1883_v19, %v315_v17  ;;  %v360_v35 = vadd.bf16 %v1883_v19, %v316_v18  ;;  %v323_v15 = vld [vmem:[%s1876_s18 + $0x48] sm:$0xf]  ;;  %v324_v17 = vld [vmem:[%s1876_s18 + $0x4c] sm:$0xf]  ;;  %v434_v18 = vld [vmem:[%s1869_s15 + $0x50] sm:$0xf] }
  0x23   : > { %v1490_v36 = vcombine.low %v389_v27, %v390_v28  ;;  %v501_v37 = vmax.bf16 %v1802_v33, %v469_v29  ;;  %v470_v38 = vadd.bf16 %v1879_v16, %v426_v24  ;;  %v471_v39 = vadd.bf16 %v1879_v16, %v427_v25  ;;  %v325_v21 = vld [vmem:[%s1876_s18 + $0x50] sm:$0xf]  ;;  %v326_v22 = vld [vmem:[%s1876_s18 + $0x54] sm:$0xf] }
  0x24   : > { %1594 = vmatmul.mubr.msk.bf16.gmra.mxu0 %vm603_vm1, %v1457_v20  ;;  %1628 = vmatmul.mubr.msk.bf16.gmra.mxu1 %vm603_vm1, %v1489_v26  ;;  %v391_v42 = vmax.bf16 %v1802_v33, %v359_v34  ;;  %v392_v43 = vmax.bf16 %v1802_v33, %v360_v35  ;;  %v361_v44 = vadd.bf16 %v1883_v19, %v317_v30  ;;  %v435_v20 = vld [vmem:[%s1869_s15 + $0x54] sm:$0xf] }
  0x25   : > { %1597 = vmatprep.mubr.msk.bf16.mxu0 %vm603_vm1, %v1458_v31  ;;  %1631 = vmatprep.mubr.msk.bf16.mxu1 %vm603_vm1, %v1490_v36  ;;  %v502_v48 = vmax.bf16 %v1802_v33, %v470_v38  ;;  %v503_v49 = vmax.bf16 %v1802_v33, %v471_v39  ;;  %v1459_v52 = vcombine.low %v500_v32, %v501_v37  ;;  %v436_v38 = vld [vmem:[%s1869_s15 + $0x58] sm:$0xf] }
  0x26   : > { %v362_v53 = vadd.bf16 %v1883_v19, %v318_v40  ;;  %v393_v54 = vmax.bf16 %v1802_v33, %v361_v44  ;;  %v472_v56 = vadd.bf16 %v1879_v16, %v428_v41  ;;  %v473_v57 = vadd.bf16 %v1879_v16, %v429_v45  ;;  %v328_v44 = vld [vmem:[%s1876_s18 + $0x5c] sm:$0xf] }
  0x27   : > { %v363_v58 = vadd.bf16 %v1883_v19, %v319_v46  ;;  %v364_v59 = vadd.bf16 %v1883_v19, %v320_v47  ;;  %v1491_v61 = vcombine.low %v391_v42, %v392_v43  ;;  %v474_v63 = vadd.bf16 %v1879_v16, %v430_v50  ;;  %v437_v42 = vld [vmem:[%s1869_s15 + $0x5c] sm:$0xf]  ;;  %v327_v43 = vld [vmem:[%s1876_s18 + $0x58] sm:$0xf]  ;;  %v329_v50 = vld [vmem:[%s1876_s18 + $0x60] sm:$0xf] }
  0x28   : > { %v394_v62 = vmax.bf16 %v1802_v33, %v362_v53  ;;  %v475_v0 = vadd.bf16 %v1879_v16, %v431_v51  ;;  %v1460_v1 = vcombine.low %v502_v48, %v503_v49  ;;  %v365_v2 = vadd.bf16 %v1883_v19, %v321_v55  ;;  %v438_v48 = vld [vmem:[%s1869_s15 + $0x60] sm:$0xf]  ;;  %v439_v49 = vld [vmem:[%s1869_s15 + $0x64] sm:$0xf] }
  0x29   : > { %v366_v4 = vadd.bf16 %v1883_v19, %v322_v60  ;;  %v504_v5 = vmax.bf16 %v1802_v33, %v472_v56  ;;  %v505_v6 = vmax.bf16 %v1802_v33, %v473_v57  ;;  %v395_v7 = vmax.bf16 %v1802_v33, %v363_v58  ;;  %v330_v51 = vld [vmem:[%s1876_s18 + $0x64] sm:$0xf] }
  0x2a   : > { %v1492_v3 = vcombine.low %v393_v54, %v394_v62  ;;  %v396_v8 = vmax.bf16 %v1802_v33, %v364_v59  ;;  %v506_v9 = vmax.bf16 %v1802_v33, %v474_v63  ;;  %v507_v10 = vmax.bf16 %v1802_v33, %v475_v0 }
  0x2b   : > { %v397_v13 = vmax.bf16 %v1802_v33, %v365_v2  ;;  %v398_v14 = vmax.bf16 %v1802_v33, %v366_v4  ;;  %v1461_v23 = vcombine.low %v504_v5, %v505_v6  ;;  %v476_v25 = vadd.bf16 %v1879_v16, %v432_v11  ;;  %v440_v6 = vld [vmem:[%s1869_s15 + $0x68] sm:$0xf]  ;;  %v332_v11 = vld [vmem:[%s1876_s18 + $0x6c] sm:$0xf] }
  0x2c   : > { %1598 = vmatmul.mubr.msk.bf16.gmra.mxu0 %vm603_vm1, %v1459_v52  ;;  %1632 = vmatmul.mubr.msk.bf16.gmra.mxu1 %vm603_vm1, %v1491_v61  ;;  %v1493_v24 = vcombine.low %v395_v7, %v396_v8  ;;  %v477_v26 = vadd.bf16 %v1879_v16, %v433_v12  ;;  %v1462_v27 = vcombine.low %v506_v9, %v507_v10  ;;  %v441_v7 = vld [vmem:[%s1869_s15 + $0x6c] sm:$0xf]  ;;  %v331_v10 = vld [vmem:[%s1876_s18 + $0x68] sm:$0xf]  ;;  %v442_v12 = vld [vmem:[%s1869_s15 + $0x70] sm:$0xf] }
  0x2d   : > { %1601 = vmatprep.mubr.msk.bf16.mxu0 %vm603_vm1, %v1460_v1  ;;  %1635 = vmatprep.mubr.msk.bf16.mxu1 %vm603_vm1, %v1492_v3  ;;  %v367_v28 = vadd.bf16 %v1883_v19, %v323_v15  ;;  %v368_v29 = vadd.bf16 %v1883_v19, %v324_v17  ;;  %v478_v30 = vadd.bf16 %v1879_v16, %v434_v18  ;;  %v334_v15 = vld [vmem:[%s1876_s18 + $0x74] sm:$0xf] }
  0x2e   : > { %v1494_v31 = vcombine.low %v397_v13, %v398_v14  ;;  %v479_v32 = vadd.bf16 %v1879_v16, %v435_v20  ;;  %v369_v34 = vadd.bf16 %v1883_v19, %v325_v21  ;;  %v370_v35 = vadd.bf16 %v1883_v19, %v326_v22  ;;  %v443_v13 = vld [vmem:[%s1869_s15 + $0x74] sm:$0xf]  ;;  %v333_v14 = vld [vmem:[%s1876_s18 + $0x70] sm:$0xf] }
  0x2f   : > { %v508_v36 = vmax.bf16 %v1802_v33, %v476_v25  ;;  %v509_v37 = vmax.bf16 %v1802_v33, %v477_v26  ;;  %v399_v39 = vmax.bf16 %v1802_v33, %v367_v28  ;;  %v400_v40 = vmax.bf16 %v1802_v33, %v368_v29 }
  0x30   : > { %v510_v41 = vmax.bf16 %v1802_v33, %v478_v30  ;;  %v511_v45 = vmax.bf16 %v1802_v33, %v479_v32  ;;  %v401_v46 = vmax.bf16 %v1802_v33, %v369_v34  ;;  %v402_v47 = vmax.bf16 %v1802_v33, %v370_v35 }
  0x31   : > { %v480_v52 = vadd.bf16 %v1879_v16, %v436_v38  ;;  %v481_v53 = vadd.bf16 %v1879_v16, %v437_v42  ;;  %v371_v54 = vadd.bf16 %v1883_v19, %v327_v43  ;;  %v372_v55 = vadd.bf16 %v1883_v19, %v328_v44  ;;  %v336_v42 = vld [vmem:[%s1876_s18 + $0x7c] sm:$0xf] }
  0x32   : > { %v1463_v56 = vcombine.low %v508_v36, %v509_v37  ;;  %v1495_v57 = vcombine.low %v399_v39, %v400_v40  ;;  %v482_v58 = vadd.bf16 %v1879_v16, %v438_v48  ;;  %v483_v59 = vadd.bf16 %v1879_v16, %v439_v49  ;;  %v444_v36 = vld [vmem:[%s1869_s15 + $0x78] sm:$0xf]  ;;  %v445_v40 = vld [vmem:[%s1869_s15 + $0x7c] sm:$0xf] }
  0x33   : > { %v1464_v60 = vcombine.low %v510_v41, %v511_v45  ;;  %v1496_v61 = vcombine.low %v401_v46, %v402_v47  ;;  %v373_v62 = vadd.bf16 %v1883_v19, %v329_v50  ;;  %v374_v63 = vadd.bf16 %v1883_v19, %v330_v51  ;;  %v335_v41 = vld [vmem:[%s1876_s18 + $0x78] sm:$0xf] }
  0x34   : > { %1602 = vmatmul.mubr.msk.bf16.gmra.mxu0 %vm603_vm1, %v1461_v23  ;;  %1636 = vmatmul.mubr.msk.bf16.gmra.mxu1 %vm603_vm1, %v1493_v24  ;;  %v512_v0 = vmax.bf16 %v1802_v33, %v480_v52  ;;  %v513_v1 = vmax.bf16 %v1802_v33, %v481_v53  ;;  %v403_v2 = vmax.bf16 %v1802_v33, %v371_v54 }
  0x35   : > { %1605 = vmatprep.mubr.msk.bf16.mxu0 %vm603_vm1, %v1462_v27  ;;  %1639 = vmatprep.mubr.msk.bf16.mxu1 %vm603_vm1, %v1494_v31  ;;  %v404_v3 = vmax.bf16 %v1802_v33, %v372_v55  ;;  %v514_v4 = vmax.bf16 %v1802_v33, %v482_v58  ;;  %v515_v5 = vmax.bf16 %v1802_v33, %v483_v59 }
  0x36   : > { %v405_v8 = vmax.bf16 %v1802_v33, %v373_v62  ;;  %v406_v9 = vmax.bf16 %v1802_v33, %v374_v63  ;;  %v1465_v17 = vcombine.low %v512_v0, %v513_v1  ;;  %v484_v20 = vadd.bf16 %v1879_v16, %v440_v6 }
  0x37   : > { %v1497_v18 = vcombine.low %v403_v2, %v404_v3  ;;  %v485_v21 = vadd.bf16 %v1879_v16, %v441_v7  ;;  %v1466_v22 = vcombine.low %v514_v4, %v515_v5  ;;  %v375_v23 = vadd.bf16 %v1883_v19, %v331_v10 }
  0x38   : > { %v376_v24 = vadd.bf16 %v1883_v19, %v332_v11  ;;  %v486_v25 = vadd.bf16 %v1879_v16, %v442_v12  ;;  %v1498_v26 = vcombine.low %v405_v8, %v406_v9  ;;  %v487_v27 = vadd.bf16 %v1879_v16, %v443_v13 }
  0x39   : > { %v377_v28 = vadd.bf16 %v1883_v19, %v333_v14  ;;  %v378_v29 = vadd.bf16 %v1883_v19, %v334_v15  ;;  %v516_v30 = vmax.bf16 %v1802_v33, %v484_v20  ;;  %v517_v31 = vmax.bf16 %v1802_v33, %v485_v21 }
  0x3a   : > { %v407_v32 = vmax.bf16 %v1802_v33, %v375_v23  ;;  %v408_v34 = vmax.bf16 %v1802_v33, %v376_v24  ;;  %v518_v35 = vmax.bf16 %v1802_v33, %v486_v25  ;;  %v519_v37 = vmax.bf16 %v1802_v33, %v487_v27 }
  0x3b   : > { %v409_v38 = vmax.bf16 %v1802_v33, %v377_v28  ;;  %v410_v39 = vmax.bf16 %v1802_v33, %v378_v29  ;;  %v1467_v43 = vcombine.low %v516_v30, %v517_v31  ;;  %v488_v44 = vadd.bf16 %v1879_v16, %v444_v36 }
  0x3c   : > { %1606 = vmatmul.mubr.msk.bf16.gmra.mxu0 %vm603_vm1, %v1463_v56  ;;  %1640 = vmatmul.mubr.msk.bf16.gmra.mxu1 %vm603_vm1, %v1495_v57  ;;  %v1499_v45 = vcombine.low %v407_v32, %v408_v34  ;;  %v489_v46 = vadd.bf16 %v1879_v16, %v445_v40  ;;  %v379_v47 = vadd.bf16 %v1883_v19, %v335_v41  ;;  %v2107_v57 = vld [vmem:[%s2220_s6] ss:$0 sm:$0xff] }
  0x3d   : > { %1609 = vmatprep.mubr.msk.bf16.mxu0 %vm603_vm1, %v1464_v60  ;;  %1643 = vmatprep.mubr.msk.bf16.mxu1 %vm603_vm1, %v1496_v61  ;;  %v380_v48 = vadd.bf16 %v1883_v19, %v336_v42  ;;  %v1468_v49 = vcombine.low %v518_v35, %v519_v37  ;;  %v1500_v50 = vcombine.low %v409_v38, %v410_v39 }
  0x3e   : > { %v520_v51 = vmax.bf16 %v1802_v33, %v488_v44  ;;  %v521_v52 = vmax.bf16 %v1802_v33, %v489_v46  ;;  %v411_v53 = vmax.bf16 %v1802_v33, %v379_v47 }
  0x3f   : > { %v412_v54 = vmax.bf16 %v1802_v33, %v380_v48 }
  0x40   : > { %v1469_v16 = vcombine.low %v520_v51, %v521_v52 }
  0x41   : > { %v1501_v19 = vcombine.low %v411_v53, %v412_v54 }
  0x44   : > { %1610 = vmatmul.mubr.msk.bf16.gmra.mxu0 %vm603_vm1, %v1465_v17  ;;  %1644 = vmatmul.mubr.msk.bf16.gmra.mxu1 %vm603_vm1, %v1497_v18 }
  0x45   : > { %1613 = vmatprep.mubr.msk.bf16.mxu0 %vm603_vm1, %v1466_v22  ;;  %1647 = vmatprep.mubr.msk.bf16.mxu1 %vm603_vm1, %v1498_v26 }
  0x4c   : > { %1614 = vmatmul.mubr.msk.bf16.gmra.mxu0 %vm603_vm1, %v1467_v43  ;;  %1648 = vmatmul.mubr.msk.bf16.gmra.mxu1 %vm603_vm1, %v1499_v45 }
  0x4d   : > { %1617 = vmatprep.mubr.msk.bf16.mxu0 %vm603_vm1, %v1468_v49  ;;  %1651 = vmatprep.mubr.msk.bf16.mxu1 %vm603_vm1, %v1500_v50 }
  0x54   : > { %1618 = vmatmul.mubr.msk.bf16.gmra.mxu0 %vm603_vm1, %v1469_v16  ;;  %1652 = vmatmul.mubr.msk.bf16.gmra.mxu1 %vm603_vm1, %v1501_v19 }
  0xdc   : > { %v1591_v55 = vpop.f32.mrf.mxu0  ;;  %v1625_v56 = vpop.f32.mrf.mxu1 }
  0xdd   : > { %v991_v58 = vadd.f32 %v1625_v56, %v1591_v55 }
  0xde   : > { %v690_v59 = vpop.f32.mrf.mxu0  ;;  %v982_v33 = vpop.f32.mrf.mxu1 }
  0xdf   : > { %v1118_v60 = vadd.f32 %v2107_v57, %v991_v58  ;;  %v983_v61 = vadd.f32 %v982_v33, %v690_v59 }
  0xe0   : > { %v1592_v62 = vpop.f32.mrf.mxu0  ;;  %v1626_v63 = vpop.f32.mrf.mxu1 }
  0xe1   : > { %v1521_v0 = vmul.f32 -1.442695, %v1118_v60  ;;  %v1116_v1 = vadd.f32 %v2107_v57, %v983_v61  ;;  %v994_v2 = vadd.f32 %v1626_v63, %v1592_v62 }
  0xe2   : > { %v693_v3 = vpop.f32.mrf.mxu0  ;;  %v985_v4 = vpop.f32.mrf.mxu1 }
  0xe3   : > { %1666 = vpow2.f32 %v1521_v0  ;;  %v1519_v5 = vmul.f32 -1.442695, %v1116_v1  ;;  %v1119_v6 = vadd.f32 %v2107_v57, %v994_v2  ;;  %v986_v7 = vadd.f32 %v985_v4, %v693_v3 }
  0xe4   : > { %v1595_v8 = vpop.f32.mrf.mxu0  ;;  %v1629_v9 = vpop.f32.mrf.mxu1 }
  0xe5   : > { %1668 = vpow2.f32 %v1519_v5  ;;  %v1522_v10 = vmul.f32 -1.442695, %v1119_v6  ;;  %v1117_v11 = vadd.f32 %v2107_v57, %v986_v7  ;;  %v1007_v12 = vadd.f32 %v1629_v9, %v1595_v8 }
  0xe6   : > { %v706_v13 = vpop.f32.mrf.mxu0  ;;  %v998_v14 = vpop.f32.mrf.mxu1 }
  0xe7   : > { %1670 = vpow2.f32 %v1522_v10  ;;  %v1520_v15 = vmul.f32 -1.442695, %v1117_v11  ;;  %v1122_v17 = vadd.f32 %v2107_v57, %v1007_v12  ;;  %v999_v18 = vadd.f32 %v998_v14, %v706_v13 }
  0xe8   : > { %v1596_v20 = vpop.f32.mrf.mxu0  ;;  %v1630_v21 = vpop.f32.mrf.mxu1 }
  0xe9   : > { %1672 = vpow2.f32 %v1520_v15  ;;  %v1525_v22 = vmul.f32 -1.442695, %v1122_v17  ;;  %v1120_v23 = vadd.f32 %v2107_v57, %v999_v18  ;;  %v1010_v24 = vadd.f32 %v1630_v21, %v1596_v20 }
  0xea   : > { %v709_v25 = vpop.f32.mrf.mxu0  ;;  %v1001_v26 = vpop.f32.mrf.mxu1 }
  0xeb   : > { %1674 = vpow2.f32 %v1525_v22  ;;  %v1523_v27 = vmul.f32 -1.442695, %v1120_v23  ;;  %v1123_v28 = vadd.f32 %v2107_v57, %v1010_v24  ;;  %v1002_v29 = vadd.f32 %v1001_v26, %v709_v25 }
  0xec   : > { %v1599_v30 = vpop.f32.mrf.mxu0  ;;  %v1633_v31 = vpop.f32.mrf.mxu1 }
  0xed   : > { %1676 = vpow2.f32 %v1523_v27  ;;  %v1526_v32 = vmul.f32 -1.442695, %v1123_v28  ;;  %v1121_v34 = vadd.f32 %v2107_v57, %v1002_v29  ;;  %v1023_v35 = vadd.f32 %v1633_v31, %v1599_v30 }
  0xee   : > { %v722_v36 = vpop.f32.mrf.mxu0  ;;  %v1014_v37 = vpop.f32.mrf.mxu1 }
  0xef   : > { %1678 = vpow2.f32 %v1526_v32  ;;  %v1524_v38 = vmul.f32 -1.442695, %v1121_v34  ;;  %v1126_v39 = vadd.f32 %v2107_v57, %v1023_v35  ;;  %v1015_v40 = vadd.f32 %v1014_v37, %v722_v36 }
  0xf0   : > { %v1667_v41 = vpop.eup %1666  ;;  %v1600_v42 = vpop.f32.mrf.mxu0 }
  0xf1   : > { %v1634_v43 = vpop.f32.mrf.mxu1  ;;  %v1246_v44 = vadd.f32 1.0, %v1667_v41  ;;  %1680 = vpow2.f32 %v1524_v38  ;;  %v1529_v45 = vmul.f32 -1.442695, %v1126_v39  ;;  %v1124_v46 = vadd.f32 %v2107_v57, %v1015_v40 }
  0xf2   : > { %v1669_v47 = vpop.eup %1668  ;;  %v1026_v48 = vadd.f32 %v1634_v43, %v1600_v42  ;;  %v725_v49 = vpop.f32.mrf.mxu0 }
  0xf3   : > { %v1017_v50 = vpop.f32.mrf.mxu1  ;;  %1682 = vrcp.f32 %v1246_v44  ;;  %v1244_v51 = vadd.f32 1.0, %v1669_v47  ;;  %v1527_v52 = vmul.f32 -1.442695, %v1124_v46 }
  0xf4   : > { %v1018_v53 = vadd.f32 %v1017_v50, %v725_v49  ;;  %v1671_v54 = vpop.eup %1670  ;;  %1684 = vpow2.f32 %v1529_v45  ;;  %v1127_v16 = vadd.f32 %v2107_v57, %v1026_v48  ;;  %v1603_v19 = vpop.f32.mrf.mxu0 }
  0xf5   : > { %v1637_v55 = vpop.f32.mrf.mxu1  ;;  %1686 = vrcp.f32 %v1244_v51  ;;  %v1247_v56 = vadd.f32 1.0, %v1671_v54 }
  0xf6   : > { %v1125_v58 = vadd.f32 %v2107_v57, %v1018_v53  ;;  %v1039_v59 = vadd.f32 %v1637_v55, %v1603_v19  ;;  %v1673_v33 = vpop.eup %1672  ;;  %1688 = vpow2.f32 %v1527_v52  ;;  %v1530_v60 = vmul.f32 -1.442695, %v1127_v16  ;;  %v738_v61 = vpop.f32.mrf.mxu0 }
  0xf7   : > { %v1030_v62 = vpop.f32.mrf.mxu1  ;;  %1690 = vrcp.f32 %v1247_v56  ;;  %v1245_v63 = vadd.f32 1.0, %v1673_v33 }
  0xf8   : > { %v1528_v0 = vmul.f32 -1.442695, %v1125_v58  ;;  %v1130_v1 = vadd.f32 %v2107_v57, %v1039_v59  ;;  %v1675_v2 = vpop.eup %1674  ;;  %1692 = vpow2.f32 %v1530_v60  ;;  %v1031_v3 = vadd.f32 %v1030_v62, %v738_v61  ;;  %v1604_v4 = vpop.f32.mrf.mxu0 }
  0xf9   : > { %v1638_v5 = vpop.f32.mrf.mxu1  ;;  %1694 = vrcp.f32 %v1245_v63  ;;  %v1250_v6 = vadd.f32 1.0, %v1675_v2 }
  0xfa   : > { %v1533_v7 = vmul.f32 -1.442695, %v1130_v1  ;;  %v1042_v8 = vadd.f32 %v1638_v5, %v1604_v4  ;;  %v1677_v9 = vpop.eup %1676  ;;  %1696 = vpow2.f32 %v1528_v0  ;;  %v1128_v10 = vadd.f32 %v2107_v57, %v1031_v3  ;;  %v741_v11 = vpop.f32.mrf.mxu0 }
  0xfb   : > { %v1033_v12 = vpop.f32.mrf.mxu1  ;;  %1698 = vrcp.f32 %v1250_v6  ;;  %v1248_v13 = vadd.f32 1.0, %v1677_v9 }
  0xfc   : > { %v1131_v14 = vadd.f32 %v2107_v57, %v1042_v8  ;;  %v1034_v15 = vadd.f32 %v1033_v12, %v741_v11  ;;  %v1679_v17 = vpop.eup %1678  ;;  %1700 = vpow2.f32 %v1533_v7  ;;  %v1531_v18 = vmul.f32 -1.442695, %v1128_v10  ;;  %v1607_v20 = vpop.f32.mrf.mxu0 }
  0xfd   : > { %v1641_v21 = vpop.f32.mrf.mxu1  ;;  %1702 = vrcp.f32 %v1248_v13  ;;  %v1251_v22 = vadd.f32 1.0, %v1679_v17 }
  0xfe   : > { %v1534_v23 = vmul.f32 -1.442695, %v1131_v14  ;;  %v1129_v24 = vadd.f32 %v2107_v57, %v1034_v15  ;;  %v1681_v25 = vpop.eup %1680  ;;  %1704 = vpow2.f32 %v1531_v18  ;;  %v1055_v26 = vadd.f32 %v1641_v21, %v1607_v20  ;;  %v754_v27 = vpop.f32.mrf.mxu0 }
  0xff   : > { %v1046_v28 = vpop.f32.mrf.mxu1  ;;  %1706 = vrcp.f32 %v1251_v22  ;;  %v1249_v29 = vadd.f32 1.0, %v1681_v25 }
 0x100   : > { %v1532_v30 = vmul.f32 -1.442695, %v1129_v24  ;;  %v1047_v31 = vadd.f32 %v1046_v28, %v754_v27  ;;  %v1683_v32 = vpop.eup %1682  ;;  %1708 = vpow2.f32 %v1534_v23  ;;  %v1134_v34 = vadd.f32 %v2107_v57, %v1055_v26  ;;  %v1608_v35 = vpop.f32.mrf.mxu0 }
 0x101   : > { %v1642_v36 = vpop.f32.mrf.mxu1  ;;  %v1685_v37 = vpop.eup %1684  ;;  %1343 = vst.msk [vmem:[%s2129_s25 + $0x10] sm:$0xff] %vm1340_vm2, %v1683_v32  ;;  %1710 = vrcp.f32 %v1249_v29 }
 0x102   : > { %v1132_v38 = vadd.f32 %v2107_v57, %v1047_v31  ;;  %v1058_v39 = vadd.f32 %v1642_v36, %v1608_v35  ;;  %v1687_v40 = vpop.eup %1686  ;;  %v1254_v41 = vadd.f32 1.0, %v1685_v37  ;;  %1712 = vpow2.f32 %v1532_v30  ;;  %v757_v43 = vpop.f32.mrf.mxu0 }
 0x103   : > { %v1537_v42 = vmul.f32 -1.442695, %v1134_v34  ;;  %v1049_v44 = vpop.f32.mrf.mxu1  ;;  %v1689_v45 = vpop.eup %1688  ;;  %1341 = vst.msk [vmem:[%s2129_s25] sm:$0xff] %vm1340_vm2, %v1687_v40 }
 0x104   : > { %v1535_v46 = vmul.f32 -1.442695, %v1132_v38  ;;  %v1135_v47 = vadd.f32 %v2107_v57, %v1058_v39  ;;  %v1050_v48 = vadd.f32 %v1049_v44, %v757_v43  ;;  %v1691_v49 = vpop.eup %1690  ;;  %1714 = vrcp.f32 %v1254_v41  ;;  %v1611_v51 = vpop.f32.mrf.mxu0 }
 0x105   : > { %v1252_v50 = vadd.f32 1.0, %v1689_v45  ;;  %v1645_v52 = vpop.f32.mrf.mxu1  ;;  %v1693_v53 = vpop.eup %1692  ;;  %1344 = vst.msk [vmem:[%s2129_s25 + $0x18] sm:$0xff] %vm1340_vm2, %v1691_v49  ;;  %1716 = vpow2.f32 %v1537_v42 }
 0x106   : > { %v1538_v54 = vmul.f32 -1.442695, %v1135_v47  ;;  %v1133_v16 = vadd.f32 %v2107_v57, %v1050_v48  ;;  %v1071_v19 = vadd.f32 %v1645_v52, %v1611_v51  ;;  %v1695_v55 = vpop.eup %1694  ;;  %v1255_v56 = vadd.f32 1.0, %v1693_v53  ;;  %v770_v58 = vpop.f32.mrf.mxu0 }
 0x107   : > { %1718 = vrcp.f32 %v1252_v50  ;;  %v1062_v59 = vpop.f32.mrf.mxu1  ;;  %v1697_v33 = vpop.eup %1696  ;;  %1342 = vst.msk [vmem:[%s2129_s25 + $0x8] sm:$0xff] %vm1340_vm2, %v1695_v55 }
 0x108   : > { %1720 = vpow2.f32 %v1535_v46  ;;  %v1536_v60 = vmul.f32 -1.442695, %v1133_v16  ;;  %v1138_v61 = vadd.f32 %v2107_v57, %v1071_v19  ;;  %v1063_v62 = vadd.f32 %v1062_v59, %v770_v58  ;;  %v1699_v63 = vpop.eup %1698  ;;  %v1612_v1 = vpop.f32.mrf.mxu0 }
 0x109   : > { %1722 = vrcp.f32 %v1255_v56  ;;  %v1253_v0 = vadd.f32 1.0, %v1697_v33  ;;  %v1646_v2 = vpop.f32.mrf.mxu1  ;;  %v1701_v3 = vpop.eup %1700  ;;  %1347 = vst.msk [vmem:[%s2129_s25 + $0x30] sm:$0xff] %vm1340_vm2, %v1699_v63 }
 0x10a   : > { %1724 = vpow2.f32 %v1538_v54  ;;  %v1541_v4 = vmul.f32 -1.442695, %v1138_v61  ;;  %v1136_v5 = vadd.f32 %v2107_v57, %v1063_v62  ;;  %v1074_v6 = vadd.f32 %v1646_v2, %v1612_v1  ;;  %v1703_v7 = vpop.eup %1702  ;;  %v773_v9 = vpop.f32.mrf.mxu0 }
 0x10b   : > { %1726 = vrcp.f32 %v1253_v0  ;;  %v1258_v8 = vadd.f32 1.0, %v1701_v3  ;;  %v1065_v10 = vpop.f32.mrf.mxu1  ;;  %v1705_v11 = vpop.eup %1704  ;;  %1345 = vst.msk [vmem:[%s2129_s25 + $0x20] sm:$0xff] %vm1340_vm2, %v1703_v7 }
 0x10c   : > { %1728 = vpow2.f32 %v1536_v60  ;;  %v1539_v12 = vmul.f32 -1.442695, %v1136_v5  ;;  %v1139_v13 = vadd.f32 %v2107_v57, %v1074_v6  ;;  %v1066_v14 = vadd.f32 %v1065_v10, %v773_v9  ;;  %v1707_v15 = vpop.eup %1706  ;;  %v1615_v18 = vpop.f32.mrf.mxu0 }
 0x10d   : > { %1730 = vrcp.f32 %v1258_v8  ;;  %v1256_v17 = vadd.f32 1.0, %v1705_v11  ;;  %v1649_v20 = vpop.f32.mrf.mxu1  ;;  %v1709_v21 = vpop.eup %1708  ;;  %1348 = vst.msk [vmem:[%s2129_s25 + $0x38] sm:$0xff] %vm1340_vm2, %v1707_v15 }
 0x10e   : > { %1732 = vpow2.f32 %v1541_v4  ;;  %v1542_v22 = vmul.f32 -1.442695, %v1139_v13  ;;  %v1137_v23 = vadd.f32 %v2107_v57, %v1066_v14  ;;  %v1087_v24 = vadd.f32 %v1649_v20, %v1615_v18  ;;  %v1711_v25 = vpop.eup %1710  ;;  %v786_v27 = vpop.f32.mrf.mxu0 }
 0x10f   : > { %1734 = vrcp.f32 %v1256_v17  ;;  %v1259_v26 = vadd.f32 1.0, %v1709_v21  ;;  %v1078_v28 = vpop.f32.mrf.mxu1  ;;  %v1713_v29 = vpop.eup %1712  ;;  %1346 = vst.msk [vmem:[%s2129_s25 + $0x28] sm:$0xff] %vm1340_vm2, %v1711_v25 }
 0x110   : > { %1736 = vpow2.f32 %v1539_v12  ;;  %v1540_v30 = vmul.f32 -1.442695, %v1137_v23  ;;  %v1142_v31 = vadd.f32 %v2107_v57, %v1087_v24  ;;  %v1079_v32 = vadd.f32 %v1078_v28, %v786_v27  ;;  %v1616_v35 = vpop.f32.mrf.mxu0 }
 0x111   : > { %1738 = vrcp.f32 %v1259_v26  ;;  %v1257_v34 = vadd.f32 1.0, %v1713_v29  ;;  %v1650_v36 = vpop.f32.mrf.mxu1  ;;  %v1715_v37 = vpop.eup %1714 }
 0x112   : > { %1740 = vpow2.f32 %v1542_v22  ;;  %v1545_v38 = vmul.f32 -1.442695, %v1142_v31  ;;  %v1140_v39 = vadd.f32 %v2107_v57, %v1079_v32  ;;  %v1090_v40 = vadd.f32 %v1650_v36, %v1616_v35  ;;  %v1717_v41 = vpop.eup %1716  ;;  %1351 = vst.msk [vmem:[%s2129_s25 + $0x50] sm:$0xff] %vm1340_vm2, %v1715_v37  ;;  %v789_v42 = vpop.f32.mrf.mxu0 }
 0x113   : > { %1742 = vrcp.f32 %v1257_v34  ;;  %v1081_v43 = vpop.f32.mrf.mxu1  ;;  %v1262_v45 = vadd.f32 1.0, %v1717_v41 }
 0x114   : > { %v1719_v44 = vpop.eup %1718  ;;  %1744 = vpow2.f32 %v1540_v30  ;;  %v1543_v46 = vmul.f32 -1.442695, %v1140_v39  ;;  %v1143_v47 = vadd.f32 %v2107_v57, %v1090_v40  ;;  %v1082_v49 = vadd.f32 %v1081_v43, %v789_v42  ;;  %v1619_v50 = vpop.f32.mrf.mxu0 }
 0x115   : > { %v1721_v48 = vpop.eup %1720  ;;  %1349 = vst.msk [vmem:[%s2129_s25 + $0x40] sm:$0xff] %vm1340_vm2, %v1719_v44  ;;  %1746 = vpow2.f32 %v1545_v38  ;;  %v1653_v51 = vpop.f32.mrf.mxu1 }
 0x116   : > { %v1723_v52 = vpop.eup %1722  ;;  %1748 = vrcp.f32 %v1262_v45  ;;  %v1260_v53 = vadd.f32 1.0, %v1721_v48  ;;  %v1546_v54 = vmul.f32 -1.442695, %v1143_v47  ;;  %v1103_v16 = vadd.f32 %v1653_v51, %v1619_v50  ;;  %v802_v56 = vpop.f32.mrf.mxu0 }
 0x117   : > { %v1725_v19 = vpop.eup %1724  ;;  %1352 = vst.msk [vmem:[%s2129_s25 + $0x58] sm:$0xff] %vm1340_vm2, %v1723_v52  ;;  %1750 = vpow2.f32 %v1543_v46  ;;  %v1141_v55 = vadd.f32 %v2107_v57, %v1082_v49  ;;  %v1094_v58 = vpop.f32.mrf.mxu1 }
 0x118   : > { %v1727_v59 = vpop.eup %1726  ;;  %1752 = vrcp.f32 %v1260_v53  ;;  %v1263_v33 = vadd.f32 1.0, %v1725_v19  ;;  %v1146_v60 = vadd.f32 %v2107_v57, %v1103_v16  ;;  %v1095_v61 = vadd.f32 %v1094_v58, %v802_v56  ;;  %v1620_v0 = vpop.f32.mrf.mxu0 }
 0x119   : > { %v1729_v62 = vpop.eup %1728  ;;  %1350 = vst.msk [vmem:[%s2129_s25 + $0x48] sm:$0xff] %vm1340_vm2, %v1727_v59  ;;  %1754 = vpow2.f32 %v1546_v54  ;;  %v1544_v63 = vmul.f32 -1.442695, %v1141_v55  ;;  %v1654_v1 = vpop.f32.mrf.mxu1 }
 0x11a   : > { %v1731_v2 = vpop.eup %1730  ;;  %1756 = vrcp.f32 %v1263_v33  ;;  %v1261_v3 = vadd.f32 1.0, %v1729_v62  ;;  %v1549_v4 = vmul.f32 -1.442695, %v1146_v60  ;;  %v1144_v5 = vadd.f32 %v2107_v57, %v1095_v61  ;;  %v805_v8 = vpop.f32.mrf.mxu0 }
 0x11b   : > { %v1733_v6 = vpop.eup %1732  ;;  %1355 = vst.msk [vmem:[%s2129_s25 + $0x70] sm:$0xff] %vm1340_vm2, %v1731_v2  ;;  %1758 = vpow2.f32 %v1544_v63  ;;  %v1106_v7 = vadd.f32 %v1654_v1, %v1620_v0  ;;  %v1097_v9 = vpop.f32.mrf.mxu1 }
 0x11c   : > { %v1735_v10 = vpop.eup %1734  ;;  %1760 = vrcp.f32 %v1261_v3  ;;  %v1266_v11 = vadd.f32 1.0, %v1733_v6  ;;  %v1547_v12 = vmul.f32 -1.442695, %v1144_v5  ;;  %v1098_v13 = vadd.f32 %v1097_v9, %v805_v8 }
 0x11d   : > { %v1737_v14 = vpop.eup %1736  ;;  %1353 = vst.msk [vmem:[%s2129_s25 + $0x60] sm:$0xff] %vm1340_vm2, %v1735_v10  ;;  %1762 = vpow2.f32 %v1549_v4  ;;  %v1147_v15 = vadd.f32 %v2107_v57, %v1106_v7 }
 0x11e   : > { %v1739_v17 = vpop.eup %1738  ;;  %1764 = vrcp.f32 %v1266_v11  ;;  %v1264_v18 = vadd.f32 1.0, %v1737_v14  ;;  %v1145_v20 = vadd.f32 %v2107_v57, %v1098_v13 }
 0x11f   : > { %v1741_v21 = vpop.eup %1740  ;;  %1356 = vst.msk [vmem:[%s2129_s25 + $0x78] sm:$0xff] %vm1340_vm2, %v1739_v17  ;;  %1766 = vpow2.f32 %v1547_v12  ;;  %v1550_v22 = vmul.f32 -1.442695, %v1147_v15 }
 0x120   : > { %v1743_v23 = vpop.eup %1742  ;;  %1768 = vrcp.f32 %v1264_v18  ;;  %v1267_v24 = vadd.f32 1.0, %v1741_v21  ;;  %v1548_v25 = vmul.f32 -1.442695, %v1145_v20 }
 0x121   : > { %v1745_v26 = vpop.eup %1744  ;;  %1354 = vst.msk [vmem:[%s2129_s25 + $0x68] sm:$0xff] %vm1340_vm2, %v1743_v23  ;;  %1770 = vpow2.f32 %v1550_v22 }
 0x122   : > { %v1747_v27 = vpop.eup %1746  ;;  %1772 = vrcp.f32 %v1267_v24  ;;  %v1265_v28 = vadd.f32 1.0, %v1745_v26 }
 0x123   : > { %v1749_v57 = vpop.eup %1748  ;;  %v1270_v29 = vadd.f32 1.0, %v1747_v27  ;;  %1774 = vpow2.f32 %v1548_v25 }
 0x124   : > { %v1751_v30 = vpop.eup %1750  ;;  %1359 = vst.msk [vmem:[%s2129_s25 + $0x90] sm:$0xff] %vm1340_vm2, %v1749_v57  ;;  %1776 = vrcp.f32 %v1265_v28 }
 0x125   : > { %v1753_v31 = vpop.eup %1752  ;;  %1778 = vrcp.f32 %v1270_v29  ;;  %v1268_v32 = vadd.f32 1.0, %v1751_v30 }
 0x126   : > { %v1755_v34 = vpop.eup %1754  ;;  %1357 = vst.msk [vmem:[%s2129_s25 + $0x80] sm:$0xff] %vm1340_vm2, %v1753_v31 }
 0x127   : > { %v1757_v35 = vpop.eup %1756  ;;  %1780 = vrcp.f32 %v1268_v32  ;;  %v1271_v36 = vadd.f32 1.0, %v1755_v34 }
 0x128   : > { %v1759_v37 = vpop.eup %1758  ;;  %1360 = vst.msk [vmem:[%s2129_s25 + $0x98] sm:$0xff] %vm1340_vm2, %v1757_v35 }
 0x129   : > { %v1761_v38 = vpop.eup %1760  ;;  %1782 = vrcp.f32 %v1271_v36  ;;  %v1269_v39 = vadd.f32 1.0, %v1759_v37 }
 0x12a   : > { %v1763_v40 = vpop.eup %1762  ;;  %1358 = vst.msk [vmem:[%s2129_s25 + $0x88] sm:$0xff] %vm1340_vm2, %v1761_v38 }
 0x12b   : > { %v1765_v41 = vpop.eup %1764  ;;  %1784 = vrcp.f32 %v1269_v39  ;;  %v1274_v42 = vadd.f32 1.0, %v1763_v40 }
 0x12c   : > { %v1767_v43 = vpop.eup %1766  ;;  %1363 = vst.msk [vmem:[%s2129_s25 + $0xb0] sm:$0xff] %vm1340_vm2, %v1765_v41 }
 0x12d   : > { %v1769_v44 = vpop.eup %1768  ;;  %1786 = vrcp.f32 %v1274_v42  ;;  %v1272_v45 = vadd.f32 1.0, %v1767_v43 }
 0x12e   : > { %v1771_v46 = vpop.eup %1770  ;;  %1361 = vst.msk [vmem:[%s2129_s25 + $0xa0] sm:$0xff] %vm1340_vm2, %v1769_v44 }
 0x12f   : > { %v1773_v47 = vpop.eup %1772  ;;  %1788 = vrcp.f32 %v1272_v45  ;;  %v1275_v48 = vadd.f32 1.0, %v1771_v46 }
 0x130   : > { %v1775_v49 = vpop.eup %1774  ;;  %1364 = vst.msk [vmem:[%s2129_s25 + $0xb8] sm:$0xff] %vm1340_vm2, %v1773_v47 }
 0x131   : > { %v1777_v50 = vpop.eup %1776  ;;  %1790 = vrcp.f32 %v1275_v48  ;;  %v1273_v51 = vadd.f32 1.0, %v1775_v49 }
 0x132   : > { %v1779_v52 = vpop.eup %1778  ;;  %1362 = vst.msk [vmem:[%s2129_s25 + $0xa8] sm:$0xff] %vm1340_vm2, %v1777_v50 }
 0x133   : > { %1367 = vst.msk [vmem:[%s2129_s25 + $0xd0] sm:$0xff] %vm1340_vm2, %v1779_v52  ;;  %1792 = vrcp.f32 %v1273_v51 }
 0x134   : > { %v1781_v53 = vpop.eup %1780 }
 0x135   : > { %1365 = vst.msk [vmem:[%s2129_s25 + $0xc0] sm:$0xff] %vm1340_vm2, %v1781_v53 }
 0x136   : > { %v1783_v54 = vpop.eup %1782 }
 0x137   : > { %1368 = vst.msk [vmem:[%s2129_s25 + $0xd8] sm:$0xff] %vm1340_vm2, %v1783_v54 }
 0x138   : > { %v1785_v16 = vpop.eup %1784 }
 0x139   : > { %1366 = vst.msk [vmem:[%s2129_s25 + $0xc8] sm:$0xff] %vm1340_vm2, %v1785_v16 }
 0x13a   : > { %v1787_v19 = vpop.eup %1786 }
 0x13b   : > { %1371 = vst.msk [vmem:[%s2129_s25 + $0xf0] sm:$0xff] %vm1340_vm2, %v1787_v19 }
 0x13c   : > { %v1789_v55 = vpop.eup %1788 }
 0x13d   : > { %1369 = vst.msk [vmem:[%s2129_s25 + $0xe0] sm:$0xff] %vm1340_vm2, %v1789_v55 }
 0x13e   : > { %v1791_v56 = vpop.eup %1790 }
 0x13f   : > { %1372 = vst.msk [vmem:[%s2129_s25 + $0xf8] sm:$0xff] %vm1340_vm2, %v1791_v56 }
 0x140   : > { %v1793_v58 = vpop.eup %1792 }
 0x141   : > { %1370 = vst.msk [vmem:[%s2129_s25 + $0xe8] sm:$0xff] %vm1340_vm2, %v1793_v58 }
 0x142 PF: > { %s17_s24 = sadd.s32 1, %s1800_s24  }
 0x143   : > { %p14_p4 = scmp.ge.s32.totalorder %s17_s24, 4  }
 0x145   :  { %16 = sbr.rel (!%p14_p4) target bundleno = 1 (0x1), region = 81 }

</bundles_post_ra>
